<compile_context>
chip_gen: v6e
topology: v6e:2x2x1
jax: 0.10.0
libtpu: 0.0.40
codegen_flags: <defaults>
</compile_context>

<pallas_src>
import functools
import math

import jax
import jax.numpy as jnp
from jax.experimental import pallas as pl
from jax.experimental.pallas import tpu as pltpu


# ----------------------------- tile helpers --------------------------------

def _pick_tile(dim, prefs):
    for t in prefs:
        if dim >= t and dim % t == 0:
            return t
    return dim                                   # small dims: full extent


def _pick_q_tile(T):
    # query tile must be a multiple of 8 (sublane) or equal to full T.
    for t in (256, 128, 64, 32, 16, 8):
        if T % t == 0:
            return t
    return T


# ----------------------- tiled linear  y = x @ W + b -----------------------

def _matmul_kernel(x_ref, w_ref, b_ref, o_ref, acc_ref, *, relu):
    @pl.when(pl.program_id(2) == 0)
    def _():
        acc_ref[...] = jnp.zeros_like(acc_ref)

    acc_ref[...] += jnp.dot(x_ref[...], w_ref[...],
                            preferred_element_type=jnp.float32)

    @pl.when(pl.program_id(2) == pl.num_programs(2) - 1)
    def _():
        y = acc_ref[...] + b_ref[...]
        if relu:
            y = jnp.maximum(y, 0.0)
        o_ref[...] = y.astype(o_ref.dtype)


def pallas_linear(x, w, b, relu=False):
    M, K = x.shape
    _, N = w.shape
    tm = _pick_tile(M, (512, 256, 128))
    tn = _pick_tile(N, (512, 256, 128))
    tk = _pick_tile(K, (512, 256, 128))          # capped at 512 for v5e VMEM headroom
    grid = (M // tm, N // tn, K // tk)
    return pl.pallas_call(
        functools.partial(_matmul_kernel, relu=relu),
        out_shape=jax.ShapeDtypeStruct((M, N), jnp.float32),
        grid=grid,
        in_specs=[pl.BlockSpec((tm, tk), lambda i, j, k: (i, k)),
                  pl.BlockSpec((tk, tn), lambda i, j, k: (k, j)),
                  pl.BlockSpec((1, tn), lambda i, j, k: (0, j))],
        out_specs=pl.BlockSpec((tm, tn), lambda i, j, k: (i, j)),
        scratch_shapes=[pltpu.VMEM((tm, tn), jnp.float32)],
        compiler_params=pltpu.CompilerParams(
            dimension_semantics=("parallel", "parallel", "arbitrary")),
    )(x, w, b.reshape(1, N))


# -------------------- fused lin1 + ReLU + pos-embedding ---------------------

def _embed_kernel(x_ref, w_ref, b_ref, pos_ref, o_ref):
    h = jnp.dot(x_ref[0], w_ref[...], preferred_element_type=jnp.float32)
    h = jnp.maximum(h + b_ref[...], 0.0)
    o_ref[0] = (h + pos_ref[...]).astype(o_ref.dtype)


def pallas_embed(x, w, b, pos):
    B, T, Din = x.shape
    D = w.shape[1]
    return pl.pallas_call(
        _embed_kernel,
        out_shape=jax.ShapeDtypeStruct((B, T, D), jnp.float32),
        grid=(B,),
        in_specs=[pl.BlockSpec((1, T, Din), lambda b: (b, 0, 0)),
                  pl.BlockSpec((Din, D), lambda b: (0, 0)),
                  pl.BlockSpec((1, D), lambda b: (0, 0)),
                  pl.BlockSpec((T, D), lambda b: (0, 0))],
        out_specs=pl.BlockSpec((1, T, D), lambda b: (b, 0, 0)),
        compiler_params=pltpu.CompilerParams(dimension_semantics=("parallel",)),
    )(x, w, b.reshape(1, D), pos)


# -------------------- QKV projection: three lane-dense outputs --------------

def _qkv_kernel(x_ref, wq_ref, wk_ref, wv_ref, q_ref, k_ref, v_ref,
                accq, acck, accv):
    @pl.when(pl.program_id(2) == 0)
    def _():
        accq[...] = jnp.zeros_like(accq)
        acck[...] = jnp.zeros_like(acck)
        accv[...] = jnp.zeros_like(accv)

    x = x_ref[...]
    accq[...] += jnp.dot(x, wq_ref[...], preferred_element_type=jnp.float32)
    acck[...] += jnp.dot(x, wk_ref[...], preferred_element_type=jnp.float32)
    accv[...] += jnp.dot(x, wv_ref[...], preferred_element_type=jnp.float32)

    @pl.when(pl.program_id(2) == pl.num_programs(2) - 1)
    def _():
        q_ref[...] = accq[...].astype(q_ref.dtype)
        k_ref[...] = acck[...].astype(k_ref.dtype)
        v_ref[...] = accv[...].astype(v_ref.dtype)


def pallas_qkv(x, wq, wk, wv):
    """to_qkv (no bias). q-scale is already folded into wq."""
    M, K = x.shape
    N = wq.shape[1]
    tm = _pick_tile(M, (512, 256, 128))
    tn = _pick_tile(N, (512, 256, 128))
    tk = _pick_tile(K, (512, 256, 128))
    grid = (M // tm, N // tn, K // tk)
    out = jax.ShapeDtypeStruct((M, N), jnp.float32)
    return pl.pallas_call(
        _qkv_kernel,
        out_shape=(out, out, out),
        grid=grid,
        in_specs=[pl.BlockSpec((tm, tk), lambda i, j, k: (i, k)),
                  pl.BlockSpec((tk, tn), lambda i, j, k: (k, j)),
                  pl.BlockSpec((tk, tn), lambda i, j, k: (k, j)),
                  pl.BlockSpec((tk, tn), lambda i, j, k: (k, j))],
        out_specs=(pl.BlockSpec((tm, tn), lambda i, j, k: (i, j)),
                   pl.BlockSpec((tm, tn), lambda i, j, k: (i, j)),
                   pl.BlockSpec((tm, tn), lambda i, j, k: (i, j))),
        scratch_shapes=[pltpu.VMEM((tm, tn), jnp.float32)] * 3,
        compiler_params=pltpu.CompilerParams(
            dimension_semantics=("parallel", "parallel", "arbitrary")),
    )(x, wq, wk, wv)


# --- grouped-conv compression of K and V, null key/value folded into row 0 ---

def _compress_kernel(kwin_ref, vwin_ref, w_ref, b_ref, nk_ref, nv_ref,
                     kc_ref, vc_ref, gath, outbuf, *, heads, cf, dh):
    D = heads * dh
    Tc = gath.shape[0]

    def compress_one(win, null_row, out_ref):
        # per-head matmul: (Tc, cf*dh) @ (cf*dh, dh)  -- no block-diagonal zeros
        for g in range(heads):
            for r in range(cf):
                gath[:, r * dh:(r + 1) * dh] = (
                    win[:, r * D + g * dh: r * D + (g + 1) * dh])
            outbuf[:, g * dh:(g + 1) * dh] = jnp.dot(
                gath[...], w_ref[g], preferred_element_type=jnp.float32)
        out_ref[0, 0:1, :] = null_row                        # learned null key/value
        out_ref[0, pl.ds(1, Tc), :] = outbuf[...] + b_ref[...]

    compress_one(kwin_ref[0], nk_ref[...], kc_ref)
    compress_one(vwin_ref[0], nv_ref[...], vc_ref)


def pallas_compress(k_win, v_win, w_heads, conv_b, null_k, null_v, *, heads, cf):
    B, Tc, CFD = k_win.shape
    D = CFD // cf
    dh = D // heads
    TK = Tc + 1
    out = jax.ShapeDtypeStruct((B, TK, D), jnp.float32)
    kernel = functools.partial(_compress_kernel, heads=heads, cf=cf, dh=dh)
    return pl.pallas_call(
        kernel,
        out_shape=(out, out),
        grid=(B,),
        in_specs=[pl.BlockSpec((1, Tc, CFD), lambda b: (b, 0, 0)),
                  pl.BlockSpec((1, Tc, CFD), lambda b: (b, 0, 0)),
                  pl.BlockSpec((heads, cf * dh, dh), lambda b: (0, 0, 0)),
                  pl.BlockSpec((1, D), lambda b: (0, 0)),
                  pl.BlockSpec((1, D), lambda b: (0, 0)),
                  pl.BlockSpec((1, D), lambda b: (0, 0))],
        out_specs=(pl.BlockSpec((1, TK, D), lambda b: (b, 0, 0)),
                   pl.BlockSpec((1, TK, D), lambda b: (b, 0, 0))),
        scratch_shapes=[pltpu.VMEM((Tc, cf * dh), jnp.float32),
                        pltpu.VMEM((Tc, D), jnp.float32)],
        compiler_params=pltpu.CompilerParams(dimension_semantics=("parallel",)),
    )(k_win, v_win, w_heads, conv_b.reshape(1, D),
      null_k.reshape(1, D), null_v.reshape(1, D))


# ------ fused all-heads attention + out-projection + residual + LayerNorm ---

def _attn_block_kernel(q_ref, k_ref, v_ref, x_ref, wo_ref, bo_ref, g_ref,
                       bln_ref, o_ref, oall, *, heads, cf, pad, eps, tq):
    q = q_ref[0]                                  # (tq, D), scale folded into w_q
    k = k_ref[0]                                  # (TK, D), row 0 = null key
    v = v_ref[0]
    x = x_ref[0]
    D = q.shape[-1]
    TK = k.shape[0]
    dh = D // heads

    # causal compressed-key mask, generated in-kernel (no HBM bias stream).
    # column j>=1 is compressed block j-1, covering max original position
    # (j*cf - 1 - pad); column 0 (null key) is never masked.
    q0 = pl.program_id(1) * tq
    row = q0 + jax.lax.broadcasted_iota(jnp.int32, (tq, TK), 0)
    col = jax.lax.broadcasted_iota(jnp.int32, (tq, TK), 1)
    key_max = jnp.maximum(col * cf - 1 - pad, 0)
    masked = row < key_max

    # heads is small: unrolled python loop is fine; per-head AV result lands in
    # its lane slice of a (tq, D) scratch so the out-projection is one matmul.
    for h in range(heads):
        lo, hi = h * dh, (h + 1) * dh
        s = jax.lax.dot_general(q[:, lo:hi], k[:, lo:hi],
                                (((1,), (1,)), ((), ())),
                                preferred_element_type=jnp.float32)   # (tq, TK)
        s = jnp.where(masked, -jnp.inf, s)
        m = jnp.max(s, axis=-1, keepdims=True)
        p = jnp.exp(s - m)
        attn = p * pl.reciprocal(jnp.sum(p, axis=-1, keepdims=True), approx=True)
        oall[:, lo:hi] = jnp.dot(attn, v[:, lo:hi],
                                 preferred_element_type=jnp.float32)

    # single full-width out-projection matmul (K = D, full MXU fill)
    proj = jnp.dot(oall[...], wo_ref[...],
                   preferred_element_type=jnp.float32) + bo_ref[...]
    z = proj + x                                   # residual add
    # torch LayerNorm: unbiased std (divisor D-1), eps added to std; exact division
    mean = jnp.mean(z, axis=-1, keepdims=True)
    diff = z - mean
    var = jnp.sum(diff * diff, axis=-1, keepdims=True) * (1.0 / (D - 1))
    denom = jnp.sqrt(var) + eps
    o_ref[0] = (g_ref[...] * diff / denom + bln_ref[...]).astype(o_ref.dtype)


def pallas_attn_block(q, k, v, x, w_out, b_out, ln_g, ln_b, *,
                      heads, cf, pad, eps=1e-6):
    B, T, D = q.shape
    TK = k.shape[1]
    tq = _pick_q_tile(T)
    kernel = functools.partial(_attn_block_kernel, heads=heads, cf=cf, pad=pad,
                               eps=eps, tq=tq)
    return pl.pallas_call(
        kernel,
        out_shape=jax.ShapeDtypeStruct((B, T, D), jnp.float32),
        grid=(B, T // tq),
        in_specs=[pl.BlockSpec((1, tq, D), lambda b, i: (b, i, 0)),
                  pl.BlockSpec((1, TK, D), lambda b, i: (b, 0, 0)),
                  pl.BlockSpec((1, TK, D), lambda b, i: (b, 0, 0)),
                  pl.BlockSpec((1, tq, D), lambda b, i: (b, i, 0)),
                  pl.BlockSpec((D, D), lambda b, i: (0, 0)),
                  pl.BlockSpec((1, D), lambda b, i: (0, 0)),
                  pl.BlockSpec((1, D), lambda b, i: (0, 0)),
                  pl.BlockSpec((1, D), lambda b, i: (0, 0))],
        out_specs=pl.BlockSpec((1, tq, D), lambda b, i: (b, i, 0)),
        scratch_shapes=[pltpu.VMEM((tq, D), jnp.float32)],
        compiler_params=pltpu.CompilerParams(
            dimension_semantics=("parallel", "parallel")),
    )(q, k, v, x, w_out, b_out.reshape(1, D),
      ln_g.reshape(1, D), ln_b.reshape(1, D))


# ------------- fused FFN (w1 + ReLU, w2) + residual + LayerNorm -------------

def _ffn_block_kernel(x_ref, w1_ref, b1_ref, w2_ref, b2_ref, g_ref, bln_ref,
                      o_ref, *, eps):
    x = x_ref[...]                                 # (tm, D)
    D = x.shape[-1]
    h = jnp.maximum(jnp.dot(x, w1_ref[...], preferred_element_type=jnp.float32)
                    + b1_ref[...], 0.0)
    y = jnp.dot(h, w2_ref[...], preferred_element_type=jnp.float32) + b2_ref[...]
    z = x + y
    mean = jnp.mean(z, axis=-1, keepdims=True)
    diff = z - mean
    var = jnp.sum(diff * diff, axis=-1, keepdims=True) * (1.0 / (D - 1))
    denom = jnp.sqrt(var) + eps
    o_ref[...] = (g_ref[...] * diff / denom + bln_ref[...]).astype(o_ref.dtype)


def pallas_ffn_block(x, w1, b1, w2, b2, ln_g, ln_b, eps=1e-6):
    M, D = x.shape
    tm = _pick_tile(M, (512, 256, 128))
    return pl.pallas_call(
        functools.partial(_ffn_block_kernel, eps=eps),
        out_shape=jax.ShapeDtypeStruct((M, D), jnp.float32),
        grid=(M // tm,),
        in_specs=[pl.BlockSpec((tm, D), lambda i: (i, 0)),
                  pl.BlockSpec((D, D), lambda i: (0, 0)),
                  pl.BlockSpec((1, D), lambda i: (0, 0)),
                  pl.BlockSpec((D, D), lambda i: (0, 0)),
                  pl.BlockSpec((1, D), lambda i: (0, 0)),
                  pl.BlockSpec((1, D), lambda i: (0, 0)),
                  pl.BlockSpec((1, D), lambda i: (0, 0))],
        out_specs=pl.BlockSpec((tm, D), lambda i: (i, 0)),
        compiler_params=pltpu.CompilerParams(dimension_semantics=("parallel",)),
    )(x, w1, b1.reshape(1, D), w2, b2.reshape(1, D),
      ln_g.reshape(1, D), ln_b.reshape(1, D))


# ------------------------------- model glue --------------------------------

def mca_ln_block(x, p, ln_g, ln_b, heads, cf):
    """MemoryCompressedAttention (causal) + residual add + LayerNorm."""
    # TODO(synk): the input_mask branch of MemoryCompressedAttention is not
    # implemented; the demo calls the decoder with mask=None.
    B, T, D = x.shape
    M = B * T

    q, k, v = pallas_qkv(x.reshape(M, D), p["w_q"], p["w_k"], p["w_v"])
    q = q.reshape(B, T, D)
    k = k.reshape(B, T, D)
    v = v.reshape(B, T, D)

    pad = cf - T % cf
    pad_eff = pad if pad < cf else 0

    if cf != 1:
        if pad_eff:
            # TODO(synk): left-pad is one extra HBM pass over K/V; folding it into
            # the compression kernel would need strided-window DMA.
            k = jnp.pad(k, ((0, 0), (pad_eff, 0), (0, 0)))
            v = jnp.pad(v, ((0, 0), (pad_eff, 0), (0, 0)))
        Tp = k.shape[1]
        Tc = Tp // cf
        # reshape to window layout (B, Tc, cf*D) is free (contiguous); null row
        # and per-head conv weights are handled inside the compression kernel.
        k, v = pallas_compress(k.reshape(B, Tc, cf * D), v.reshape(B, Tc, cf * D),
                               p["conv_w_heads"], p["conv_b"],
                               p["null_k"], p["null_v"], heads=heads, cf=cf)
    else:
        # cf == 1: no compression/pad in the reference; just prepend null key/value.
        null_k = jnp.broadcast_to(p["null_k"].reshape(1, 1, D), (B, 1, D))
        null_v = jnp.broadcast_to(p["null_v"].reshape(1, 1, D), (B, 1, D))
        k = jnp.concatenate([null_k, k], axis=1)
        v = jnp.concatenate([null_v, v], axis=1)

    return pallas_attn_block(q, k, v, x, p["w_out"], p["b_out"], ln_g, ln_b,
                             heads=heads, cf=cf, pad=pad_eff)


def decoder_block(x, p, heads, cf):
    """decoder_only_module forward (dropout = identity, eval semantics)."""
    B, T, D = x.shape
    out2 = mca_ln_block(x, p["attn"], p["ln_g"], p["ln_b"], heads, cf)
    xo = pallas_ffn_block(out2.reshape(B * T, D), p["ff_w1"], p["ff_b1"],
                          p["ff_w2"], p["ff_b2"], p["ln_g"], p["ln_b"])
    return xo.reshape(B, T, D)


def transformer_decoder_forward(x, params, heads, cf):
    B, T, d_old = x.shape
    D = params["lin1_w"].shape[1]
    h = pallas_embed(x, params["lin1_w"], params["lin1_b"],
                     params["pos_embedding"].reshape(T, D))     # T == max_len
    h = decoder_block(h, params["dec1"], heads, cf)
    h = decoder_block(h, params["dec2"], heads, cf)
    out = pallas_linear(h.reshape(B * T, D), params["lin2_w"],
                        params["lin2_b"]).reshape(B, T, d_old)
    return out


# ----------------------------- parameter init -------------------------------

def make_conv_heads(w_group, heads):
    """Grouped Conv1d weight (D, D//heads, cf) -> per-head matmul weight
    (heads, cf*dh, dh) so W[g, r*dh + cl, ol] = conv_w[g*dh + ol, cl, r]."""
    D, dh, cf = w_group.shape
    w = w_group.reshape(heads, dh, dh, cf)        # (g, out_local, in_local, tap)
    w = jnp.transpose(w, (0, 3, 2, 1))            # (g, tap, in_local, out_local)
    return w.reshape(heads, cf * dh, dh)


def init_params(key, d_old, d, heads, cf, max_len):
    keys = iter(jax.random.split(key, 32))

    def uni(shape, a):
        return jax.random.uniform(next(keys), shape, jnp.float32, -a, a)

    scale = float(d) ** (-0.5)                    # torch scales by full model dim

    def make_decoder():
        dh = d // heads
        conv_w = uni((d, dh, cf), 1.0 / math.sqrt(dh * cf))
        w_qkv = uni((d, 3 * d), 1.0 / math.sqrt(d))
        attn = {
            "w_q": w_qkv[:, :d] * scale,          # query scale folded in
            "w_k": w_qkv[:, d:2 * d],
            "w_v": w_qkv[:, 2 * d:],
            "w_out": uni((d, d), 1.0 / math.sqrt(d)),
            "b_out": uni((d,), 1.0 / math.sqrt(d)),
            "conv_w_heads": make_conv_heads(conv_w, heads),
            "conv_b": uni((d,), 1.0 / math.sqrt(dh * cf)),
            "null_k": jnp.zeros((d,), jnp.float32),
            "null_v": jnp.zeros((d,), jnp.float32),
        }
        return {
            "attn": attn,
            "ln_g": jnp.ones((d,), jnp.float32),
            "ln_b": jnp.zeros((d,), jnp.float32),
            "ff_w1": uni((d, d), 1.0 / math.sqrt(d)),
            "ff_b1": uni((d,), 1.0 / math.sqrt(d)),
            "ff_w2": uni((d, d), 1.0 / math.sqrt(d)),
            "ff_b2": uni((d,), 1.0 / math.sqrt(d)),
        }

    a2 = math.sqrt(6.0 / (d + d_old))
    return {
        "lin1_w": jax.random.normal(next(keys), (d_old, d), jnp.float32)
                  * math.sqrt(2.0 / d_old),
        "lin1_b": jnp.zeros((d,), jnp.float32),
        "lin2_w": uni((d, d_old), a2),
        "lin2_b": uni((d_old,), 1.0 / math.sqrt(d)),
        "pos_embedding": jax.random.normal(next(keys), (1, max_len, d), jnp.float32),
        "dec1": make_decoder(),
        "dec2": make_decoder(),
    }


# --------------------------------- main --------------------------------------

if __name__ == "__main__":
    d_old, d, heads, cf, max_len, layers = 16, 32, 4, 3, 12, 2
    B = 2

    key = jax.random.PRNGKey(0)
    kx, kp = jax.random.split(key)
    params = init_params(kp, d_old, d, heads, cf, max_len)
    x = jax.random.normal(kx, (B, max_len, d_old), jnp.float32)

    fwd = jax.jit(functools.partial(transformer_decoder_forward, heads=heads, cf=cf))
    out = fwd(x, params)
    jax.block_until_ready(out)

    assert out.shape == (B, max_len, d_old)
    assert bool(jnp.all(jnp.isfinite(out)))
    print("KERNEL_OK")
</pallas_src>

<mosaic_0001>
module attributes {stable_mosaic.version = 11 : i64} {
  func.func @_embed_kernel(%arg0: i32, %arg1: memref<1x12x16xf32, #tpu.memory_space<vmem>>, %arg2: memref<16x32xf32, #tpu.memory_space<vmem>>, %arg3: memref<1x32xf32, #tpu.memory_space<vmem>>, %arg4: memref<12x32xf32, #tpu.memory_space<vmem>>, %arg5: memref<1x12x32xf32, #tpu.memory_space<vmem>>) attributes {dimension_semantics = [#tpu.dimension_semantics<parallel>], iteration_bounds = array<i64: 2>, scalar_prefetch = 0 : i64, scratch_operands = 0 : i64, tpu.core_type = #tpu.core_type<tc>, window_params = [{transform_indices = @transform_0, window_bounds = array<i64: 1, 12, 16>}, {pipeline_mode = #tpu.pipeline_mode<synchronous>, transform_indices = @transform_1, window_bounds = array<i64: 16, 32>}, {pipeline_mode = #tpu.pipeline_mode<synchronous>, transform_indices = @transform_2, window_bounds = array<i64: 1, 32>}, {pipeline_mode = #tpu.pipeline_mode<synchronous>, transform_indices = @transform_3, window_bounds = array<i64: 12, 32>}, {transform_indices = @transform_4, window_bounds = array<i64: 1, 12, 32>}]} {
    %c0 = arith.constant 0 : index
    %c0_0 = arith.constant 0 : index
    %c0_1 = arith.constant 0 : index
    %0 = vector.load %arg1[%c0, %c0_0, %c0_1] : memref<1x12x16xf32, #tpu.memory_space<vmem>>, vector<1x12x16xf32>
    %1 = vector.shape_cast %0 : vector<1x12x16xf32> to vector<12x16xf32>
    %c0_2 = arith.constant 0 : index
    %c0_3 = arith.constant 0 : index
    %2 = vector.load %arg2[%c0_2, %c0_3] : memref<16x32xf32, #tpu.memory_space<vmem>>, vector<16x32xf32>
    %cst = arith.constant dense<0.000000e+00> : vector<12x32xf32>
    %3 = tpu.matmul %1, %2, %cst {dimension_numbers = #tpu.dot_dimension_numbers<[1], [0], [0], [1], [0, 0, 1, 1], [], []>} : vector<12x16xf32>, vector<16x32xf32>, vector<12x32xf32> -> vector<12x32xf32>
    %c0_4 = arith.constant 0 : index
    %c0_5 = arith.constant 0 : index
    %4 = vector.load %arg3[%c0_4, %c0_5] : memref<1x32xf32, #tpu.memory_space<vmem>>, vector<1x32xf32>
    %5 = vector.broadcast %4 : vector<1x32xf32> to vector<12x32xf32>
    %6 = arith.addf %3, %5 : vector<12x32xf32>
    %cst_6 = arith.constant 0.000000e+00 : f32
    %7 = vector.broadcast %cst_6 : f32 to vector<12x32xf32>
    %8 = arith.maximumf %6, %7 : vector<12x32xf32>
    %c0_7 = arith.constant 0 : index
    %c0_8 = arith.constant 0 : index
    %9 = vector.load %arg4[%c0_7, %c0_8] : memref<12x32xf32, #tpu.memory_space<vmem>>, vector<12x32xf32>
    %10 = arith.addf %8, %9 : vector<12x32xf32>
    %c0_9 = arith.constant 0 : index
    %c0_10 = arith.constant 0 : index
    %c0_11 = arith.constant 0 : index
    %11 = vector.load %arg5[%c0_9, %c0_10, %c0_11] : memref<1x12x32xf32, #tpu.memory_space<vmem>>, vector<1x12x32xf32>
    %12 = vector.shape_cast %11 : vector<1x12x32xf32> to vector<12x32xf32>
    %13 = vector.shape_cast %10 : vector<12x32xf32> to vector<1x12x32xf32>
    tpu.vector_store %arg5[%c0_9, %c0_10, %c0_11], %13 {strides = array<i32>} : memref<1x12x32xf32, #tpu.memory_space<vmem>>, vector<1x12x32xf32>,
    return
  }
  func.func @transform_0(%arg0: i32) -> (i32, i32, i32) {
    %c0_i32 = arith.constant 0 : i32
    %c0_i32_0 = arith.constant 0 : i32
    %c0_i32_1 = arith.constant 0 : i32
    return %arg0, %c0_i32, %c0_i32_0 : i32, i32, i32
  }
  func.func @transform_1(%arg0: i32) -> (i32, i32) {
    %c0_i32 = arith.constant 0 : i32
    %c0_i32_0 = arith.constant 0 : i32
    %c0_i32_1 = arith.constant 0 : i32
    return %c0_i32, %c0_i32_0 : i32, i32
  }
  func.func @transform_2(%arg0: i32) -> (i32, i32) {
    %c0_i32 = arith.constant 0 : i32
    %c0_i32_0 = arith.constant 0 : i32
    %c0_i32_1 = arith.constant 0 : i32
    return %c0_i32, %c0_i32_0 : i32, i32
  }
  func.func @transform_3(%arg0: i32) -> (i32, i32) {
    %c0_i32 = arith.constant 0 : i32
    %c0_i32_0 = arith.constant 0 : i32
    %c0_i32_1 = arith.constant 0 : i32
    return %c0_i32, %c0_i32_0 : i32, i32
  }
  func.func @transform_4(%arg0: i32) -> (i32, i32, i32) {
    %c0_i32 = arith.constant 0 : i32
    %c0_i32_0 = arith.constant 0 : i32
    %c0_i32_1 = arith.constant 0 : i32
    return %arg0, %c0_i32, %c0_i32_0 : i32, i32, i32
  }
}

module attributes {stable_mosaic.version = 11 : i64} {
  func.func @_qkv_kernel(%arg0: i32, %arg1: i32, %arg2: i32, %arg3: memref<24x32xf32, #tpu.memory_space<vmem>>, %arg4: memref<32x32xf32, #tpu.memory_space<vmem>>, %arg5: memref<32x32xf32, #tpu.memory_space<vmem>>, %arg6: memref<32x32xf32, #tpu.memory_space<vmem>>, %arg7: memref<24x32xf32, #tpu.memory_space<vmem>>, %arg8: memref<24x32xf32, #tpu.memory_space<vmem>>, %arg9: memref<24x32xf32, #tpu.memory_space<vmem>>, %arg10: memref<24x32xf32, #tpu.memory_space<vmem>>, %arg11: memref<24x32xf32, #tpu.memory_space<vmem>>, %arg12: memref<24x32xf32, #tpu.memory_space<vmem>>) attributes {dimension_semantics = [#tpu.dimension_semantics<parallel>, #tpu.dimension_semantics<parallel>, #tpu.dimension_semantics<arbitrary>], iteration_bounds = array<i64: 1, 1, 1>, scalar_prefetch = 0 : i64, scratch_operands = 3 : i64, tpu.core_type = #tpu.core_type<tc>, window_params = [{transform_indices = @transform_0, window_bounds = array<i64: 24, 32>}, {transform_indices = @transform_1, window_bounds = array<i64: 32, 32>}, {transform_indices = @transform_2, window_bounds = array<i64: 32, 32>}, {transform_indices = @transform_3, window_bounds = array<i64: 32, 32>}, {transform_indices = @transform_4, window_bounds = array<i64: 24, 32>}, {transform_indices = @transform_5, window_bounds = array<i64: 24, 32>}, {transform_indices = @transform_6, window_bounds = array<i64: 24, 32>}]} {
    %c0_i32 = arith.constant 0 : i32
    %0 = arith.cmpi eq, %arg2, %c0_i32 : i32
    %1 = arith.extui %0 : i1 to i32
    %c0_i32_0 = arith.constant 0 : i32
    %2 = arith.cmpi ne, %1, %c0_i32_0 : i32
    scf.if %2 {
      %cst_24 = arith.constant 0.000000e+00 : f32
      %22 = vector.broadcast %cst_24 : f32 to vector<24x32xf32>
      %c0_25 = arith.constant 0 : index
      %c0_26 = arith.constant 0 : index
      %23 = vector.load %arg10[%c0_25, %c0_26] : memref<24x32xf32, #tpu.memory_space<vmem>>, vector<24x32xf32>
      tpu.vector_store %arg10[%c0_25, %c0_26], %22 {strides = array<i32>} : memref<24x32xf32, #tpu.memory_space<vmem>>, vector<24x32xf32>,
      %cst_27 = arith.constant 0.000000e+00 : f32
      %24 = vector.broadcast %cst_27 : f32 to vector<24x32xf32>
      %c0_28 = arith.constant 0 : index
      %c0_29 = arith.constant 0 : index
      %25 = vector.load %arg11[%c0_28, %c0_29] : memref<24x32xf32, #tpu.memory_space<vmem>>, vector<24x32xf32>
      tpu.vector_store %arg11[%c0_28, %c0_29], %24 {strides = array<i32>} : memref<24x32xf32, #tpu.memory_space<vmem>>, vector<24x32xf32>,
      %cst_30 = arith.constant 0.000000e+00 : f32
      %26 = vector.broadcast %cst_30 : f32 to vector<24x32xf32>
      %c0_31 = arith.constant 0 : index
      %c0_32 = arith.constant 0 : index
      %27 = vector.load %arg12[%c0_31, %c0_32] : memref<24x32xf32, #tpu.memory_space<vmem>>, vector<24x32xf32>
      tpu.vector_store %arg12[%c0_31, %c0_32], %26 {strides = array<i32>} : memref<24x32xf32, #tpu.memory_space<vmem>>, vector<24x32xf32>,
    } else {
    }
    %c0 = arith.constant 0 : index
    %c0_1 = arith.constant 0 : index
    %3 = vector.load %arg3[%c0, %c0_1] : memref<24x32xf32, #tpu.memory_space<vmem>>, vector<24x32xf32>
    %c0_2 = arith.constant 0 : index
    %c0_3 = arith.constant 0 : index
    %4 = vector.load %arg10[%c0_2, %c0_3] : memref<24x32xf32, #tpu.memory_space<vmem>>, vector<24x32xf32>
    %c0_4 = arith.constant 0 : index
    %c0_5 = arith.constant 0 : index
    %5 = vector.load %arg4[%c0_4, %c0_5] : memref<32x32xf32, #tpu.memory_space<vmem>>, vector<32x32xf32>
    %cst = arith.constant dense<0.000000e+00> : vector<24x32xf32>
    %6 = tpu.matmul %3, %5, %cst {dimension_numbers = #tpu.dot_dimension_numbers<[1], [0], [0], [1], [0, 0, 1, 1], [], []>} : vector<24x32xf32>, vector<32x32xf32>, vector<24x32xf32> -> vector<24x32xf32>
    %7 = arith.addf %4, %6 : vector<24x32xf32>
    %c0_6 = arith.constant 0 : index
    %c0_7 = arith.constant 0 : index
    %8 = vector.load %arg10[%c0_6, %c0_7] : memref<24x32xf32, #tpu.memory_space<vmem>>, vector<24x32xf32>
    tpu.vector_store %arg10[%c0_6, %c0_7], %7 {strides = array<i32>} : memref<24x32xf32, #tpu.memory_space<vmem>>, vector<24x32xf32>,
    %c0_8 = arith.constant 0 : index
    %c0_9 = arith.constant 0 : index
    %9 = vector.load %arg11[%c0_8, %c0_9] : memref<24x32xf32, #tpu.memory_space<vmem>>, vector<24x32xf32>
    %c0_10 = arith.constant 0 : index
    %c0_11 = arith.constant 0 : index
    %10 = vector.load %arg5[%c0_10, %c0_11] : memref<32x32xf32, #tpu.memory_space<vmem>>, vector<32x32xf32>
    %cst_12 = arith.constant dense<0.000000e+00> : vector<24x32xf32>
    %11 = tpu.matmul %3, %10, %cst_12 {dimension_numbers = #tpu.dot_dimension_numbers<[1], [0], [0], [1], [0, 0, 1, 1], [], []>} : vector<24x32xf32>, vector<32x32xf32>, vector<24x32xf32> -> vector<24x32xf32>
    %12 = arith.addf %9, %11 : vector<24x32xf32>
    %c0_13 = arith.constant 0 : index
    %c0_14 = arith.constant 0 : index
    %13 = vector.load %arg11[%c0_13, %c0_14] : memref<24x32xf32, #tpu.memory_space<vmem>>, vector<24x32xf32>
    tpu.vector_store %arg11[%c0_13, %c0_14], %12 {strides = array<i32>} : memref<24x32xf32, #tpu.memory_space<vmem>>, vector<24x32xf32>,
    %c0_15 = arith.constant 0 : index
    %c0_16 = arith.constant 0 : index
    %14 = vector.load %arg12[%c0_15, %c0_16] : memref<24x32xf32, #tpu.memory_space<vmem>>, vector<24x32xf32>
    %c0_17 = arith.constant 0 : index
    %c0_18 = arith.constant 0 : index
    %15 = vector.load %arg6[%c0_17, %c0_18] : memref<32x32xf32, #tpu.memory_space<vmem>>, vector<32x32xf32>
    %cst_19 = arith.constant dense<0.000000e+00> : vector<24x32xf32>
    %16 = tpu.matmul %3, %15, %cst_19 {dimension_numbers = #tpu.dot_dimension_numbers<[1], [0], [0], [1], [0, 0, 1, 1], [], []>} : vector<24x32xf32>, vector<32x32xf32>, vector<24x32xf32> -> vector<24x32xf32>
    %17 = arith.addf %14, %16 : vector<24x32xf32>
    %c0_20 = arith.constant 0 : index
    %c0_21 = arith.constant 0 : index
    %18 = vector.load %arg12[%c0_20, %c0_21] : memref<24x32xf32, #tpu.memory_space<vmem>>, vector<24x32xf32>
    tpu.vector_store %arg12[%c0_20, %c0_21], %17 {strides = array<i32>} : memref<24x32xf32, #tpu.memory_space<vmem>>, vector<24x32xf32>,
    %c0_i32_22 = arith.constant 0 : i32
    %19 = arith.cmpi eq, %arg2, %c0_i32_22 : i32
    %20 = arith.extui %19 : i1 to i32
    %c0_i32_23 = arith.constant 0 : i32
    %21 = arith.cmpi ne, %20, %c0_i32_23 : i32
    scf.if %21 {
      %c0_24 = arith.constant 0 : index
      %c0_25 = arith.constant 0 : index
      %22 = vector.load %arg10[%c0_24, %c0_25] : memref<24x32xf32, #tpu.memory_space<vmem>>, vector<24x32xf32>
      %c0_26 = arith.constant 0 : index
      %c0_27 = arith.constant 0 : index
      %23 = vector.load %arg7[%c0_26, %c0_27] : memref<24x32xf32, #tpu.memory_space<vmem>>, vector<24x32xf32>
      tpu.vector_store %arg7[%c0_26, %c0_27], %22 {strides = array<i32>} : memref<24x32xf32, #tpu.memory_space<vmem>>, vector<24x32xf32>,
      %c0_28 = arith.constant 0 : index
      %c0_29 = arith.constant 0 : index
      %24 = vector.load %arg11[%c0_28, %c0_29] : memref<24x32xf32, #tpu.memory_space<vmem>>, vector<24x32xf32>
      %c0_30 = arith.constant 0 : index
      %c0_31 = arith.constant 0 : index
      %25 = vector.load %arg8[%c0_30, %c0_31] : memref<24x32xf32, #tpu.memory_space<vmem>>, vector<24x32xf32>
      tpu.vector_store %arg8[%c0_30, %c0_31], %24 {strides = array<i32>} : memref<24x32xf32, #tpu.memory_space<vmem>>, vector<24x32xf32>,
      %c0_32 = arith.constant 0 : index
      %c0_33 = arith.constant 0 : index
      %26 = vector.load %arg12[%c0_32, %c0_33] : memref<24x32xf32, #tpu.memory_space<vmem>>, vector<24x32xf32>
      %c0_34 = arith.constant 0 : index
      %c0_35 = arith.constant 0 : index
      %27 = vector.load %arg9[%c0_34, %c0_35] : memref<24x32xf32, #tpu.memory_space<vmem>>, vector<24x32xf32>
      tpu.vector_store %arg9[%c0_34, %c0_35], %26 {strides = array<i32>} : memref<24x32xf32, #tpu.memory_space<vmem>>, vector<24x32xf32>,
    } else {
    }
    return
  }
  func.func @transform_0(%arg0: i32, %arg1: i32, %arg2: i32) -> (i32, i32) {
    %c0_i32 = arith.constant 0 : i32
    return %arg0, %arg2 : i32, i32
  }
  func.func @transform_1(%arg0: i32, %arg1: i32, %arg2: i32) -> (i32, i32) {
    %c0_i32 = arith.constant 0 : i32
    return %arg2, %arg1 : i32, i32
  }
  func.func @transform_2(%arg0: i32, %arg1: i32, %arg2: i32) -> (i32, i32) {
    %c0_i32 = arith.constant 0 : i32
    return %arg2, %arg1 : i32, i32
  }
  func.func @transform_3(%arg0: i32, %arg1: i32, %arg2: i32) -> (i32, i32) {
    %c0_i32 = arith.constant 0 : i32
    return %arg2, %arg1 : i32, i32
  }
  func.func @transform_4(%arg0: i32, %arg1: i32, %arg2: i32) -> (i32, i32) {
    %c0_i32 = arith.constant 0 : i32
    return %arg0, %arg1 : i32, i32
  }
  func.func @transform_5(%arg0: i32, %arg1: i32, %arg2: i32) -> (i32, i32) {
    %c0_i32 = arith.constant 0 : i32
    return %arg0, %arg1 : i32, i32
  }
  func.func @transform_6(%arg0: i32, %arg1: i32, %arg2: i32) -> (i32, i32) {
    %c0_i32 = arith.constant 0 : i32
    return %arg0, %arg1 : i32, i32
  }
}

module attributes {stable_mosaic.version = 11 : i64} {
  func.func @_compress_kernel(%arg0: i32, %arg1: memref<1x4x96xf32, #tpu.memory_space<vmem>>, %arg2: memref<1x4x96xf32, #tpu.memory_space<vmem>>, %arg3: memref<4x24x8xf32, #tpu.memory_space<vmem>>, %arg4: memref<1x32xf32, #tpu.memory_space<vmem>>, %arg5: memref<1x32xf32, #tpu.memory_space<vmem>>, %arg6: memref<1x32xf32, #tpu.memory_space<vmem>>, %arg7: memref<1x5x32xf32, #tpu.memory_space<vmem>>, %arg8: memref<1x5x32xf32, #tpu.memory_space<vmem>>, %arg9: memref<4x24xf32, #tpu.memory_space<vmem>>, %arg10: memref<4x32xf32, #tpu.memory_space<vmem>>) attributes {dimension_semantics = [#tpu.dimension_semantics<parallel>], iteration_bounds = array<i64: 2>, scalar_prefetch = 0 : i64, scratch_operands = 2 : i64, tpu.core_type = #tpu.core_type<tc>, window_params = [{transform_indices = @transform_0, window_bounds = array<i64: 1, 4, 96>}, {transform_indices = @transform_1, window_bounds = array<i64: 1, 4, 96>}, {pipeline_mode = #tpu.pipeline_mode<synchronous>, transform_indices = @transform_2, window_bounds = array<i64: 4, 24, 8>}, {pipeline_mode = #tpu.pipeline_mode<synchronous>, transform_indices = @transform_3, window_bounds = array<i64: 1, 32>}, {pipeline_mode = #tpu.pipeline_mode<synchronous>, transform_indices = @transform_4, window_bounds = array<i64: 1, 32>}, {pipeline_mode = #tpu.pipeline_mode<synchronous>, transform_indices = @transform_5, window_bounds = array<i64: 1, 32>}, {transform_indices = @transform_6, window_bounds = array<i64: 1, 5, 32>}, {transform_indices = @transform_7, window_bounds = array<i64: 1, 5, 32>}]} {
    %c0 = arith.constant 0 : index
    %c0_0 = arith.constant 0 : index
    %c0_1 = arith.constant 0 : index
    %0 = vector.load %arg1[%c0, %c0_0, %c0_1] : memref<1x4x96xf32, #tpu.memory_space<vmem>>, vector<1x4x96xf32>
    %1 = vector.shape_cast %0 : vector<1x4x96xf32> to vector<4x96xf32>
    %c0_2 = arith.constant 0 : index
    %c0_3 = arith.constant 0 : index
    %2 = vector.load %arg5[%c0_2, %c0_3] : memref<1x32xf32, #tpu.memory_space<vmem>>, vector<1x32xf32>
    %3 = vector.extract_strided_slice %1 {offsets = [0, 0], sizes = [4, 8], strides = [1, 1]} : vector<4x96xf32> to vector<4x8xf32>
    %c0_4 = arith.constant 0 : index
    %c0_5 = arith.constant 0 : index
    %4 = vector.load %arg9[%c0_4, %c0_5] : memref<4x24xf32, #tpu.memory_space<vmem>>, vector<4x8xf32>
    tpu.vector_store %arg9[%c0_4, %c0_5], %3 {strides = array<i32>} : memref<4x24xf32, #tpu.memory_space<vmem>>, vector<4x8xf32>,
    %5 = vector.extract_strided_slice %1 {offsets = [0, 32], sizes = [4, 8], strides = [1, 1]} : vector<4x96xf32> to vector<4x8xf32>
    %c0_6 = arith.constant 0 : index
    %c8 = arith.constant 8 : index
    %6 = vector.load %arg9[%c0_6, %c8] : memref<4x24xf32, #tpu.memory_space<vmem>>, vector<4x8xf32>
    tpu.vector_store %arg9[%c0_6, %c8], %5 {strides = array<i32>} : memref<4x24xf32, #tpu.memory_space<vmem>>, vector<4x8xf32>,
    %7 = vector.extract_strided_slice %1 {offsets = [0, 64], sizes = [4, 8], strides = [1, 1]} : vector<4x96xf32> to vector<4x8xf32>
    %c0_7 = arith.constant 0 : index
    %c16 = arith.constant 16 : index
    %8 = vector.load %arg9[%c0_7, %c16] : memref<4x24xf32, #tpu.memory_space<vmem>>, vector<4x8xf32>
    tpu.vector_store %arg9[%c0_7, %c16], %7 {strides = array<i32>} : memref<4x24xf32, #tpu.memory_space<vmem>>, vector<4x8xf32>,
    %c0_8 = arith.constant 0 : index
    %c0_9 = arith.constant 0 : index
    %9 = vector.load %arg9[%c0_8, %c0_9] : memref<4x24xf32, #tpu.memory_space<vmem>>, vector<4x24xf32>
    %c0_10 = arith.constant 0 : index
    %c0_11 = arith.constant 0 : index
    %c0_12 = arith.constant 0 : index
    %10 = vector.load %arg3[%c0_10, %c0_11, %c0_12] : memref<4x24x8xf32, #tpu.memory_space<vmem>>, vector<1x24x8xf32>
    %11 = vector.shape_cast %10 : vector<1x24x8xf32> to vector<24x8xf32>
    %cst = arith.constant dense<0.000000e+00> : vector<4x8xf32>
    %12 = tpu.matmul %9, %11, %cst {dimension_numbers = #tpu.dot_dimension_numbers<[1], [0], [0], [1], [0, 0, 1, 1], [], []>} : vector<4x24xf32>, vector<24x8xf32>, vector<4x8xf32> -> vector<4x8xf32>
    %c0_13 = arith.constant 0 : index
    %c0_14 = arith.constant 0 : index
    %13 = vector.load %arg10[%c0_13, %c0_14] : memref<4x32xf32, #tpu.memory_space<vmem>>, vector<4x8xf32>
    tpu.vector_store %arg10[%c0_13, %c0_14], %12 {strides = array<i32>} : memref<4x32xf32, #tpu.memory_space<vmem>>, vector<4x8xf32>,
    %14 = vector.extract_strided_slice %1 {offsets = [0, 8], sizes = [4, 8], strides = [1, 1]} : vector<4x96xf32> to vector<4x8xf32>
    %c0_15 = arith.constant 0 : index
    %c0_16 = arith.constant 0 : index
    %15 = vector.load %arg9[%c0_15, %c0_16] : memref<4x24xf32, #tpu.memory_space<vmem>>, vector<4x8xf32>
    tpu.vector_store %arg9[%c0_15, %c0_16], %14 {strides = array<i32>} : memref<4x24xf32, #tpu.memory_space<vmem>>, vector<4x8xf32>,
    %16 = vector.extract_strided_slice %1 {offsets = [0, 40], sizes = [4, 8], strides = [1, 1]} : vector<4x96xf32> to vector<4x8xf32>
    %c0_17 = arith.constant 0 : index
    %c8_18 = arith.constant 8 : index
    %17 = vector.load %arg9[%c0_17, %c8_18] : memref<4x24xf32, #tpu.memory_space<vmem>>, vector<4x8xf32>
    tpu.vector_store %arg9[%c0_17, %c8_18], %16 {strides = array<i32>} : memref<4x24xf32, #tpu.memory_space<vmem>>, vector<4x8xf32>,
    %18 = vector.extract_strided_slice %1 {offsets = [0, 72], sizes = [4, 8], strides = [1, 1]} : vector<4x96xf32> to vector<4x8xf32>
    %c0_19 = arith.constant 0 : index
    %c16_20 = arith.constant 16 : index
    %19 = vector.load %arg9[%c0_19, %c16_20] : memref<4x24xf32, #tpu.memory_space<vmem>>, vector<4x8xf32>
    tpu.vector_store %arg9[%c0_19, %c16_20], %18 {strides = array<i32>} : memref<4x24xf32, #tpu.memory_space<vmem>>, vector<4x8xf32>,
    %c0_21 = arith.constant 0 : index
    %c0_22 = arith.constant 0 : index
    %20 = vector.load %arg9[%c0_21, %c0_22] : memref<4x24xf32, #tpu.memory_space<vmem>>, vector<4x24xf32>
    %c1 = arith.constant 1 : index
    %c0_23 = arith.constant 0 : index
    %c0_24 = arith.constant 0 : index
    %21 = vector.load %arg3[%c1, %c0_23, %c0_24] : memref<4x24x8xf32, #tpu.memory_space<vmem>>, vector<1x24x8xf32>
    %22 = vector.shape_cast %21 : vector<1x24x8xf32> to vector<24x8xf32>
    %cst_25 = arith.constant dense<0.000000e+00> : vector<4x8xf32>
    %23 = tpu.matmul %20, %22, %cst_25 {dimension_numbers = #tpu.dot_dimension_numbers<[1], [0], [0], [1], [0, 0, 1, 1], [], []>} : vector<4x24xf32>, vector<24x8xf32>, vector<4x8xf32> -> vector<4x8xf32>
    %c0_26 = arith.constant 0 : index
    %c8_27 = arith.constant 8 : index
    %24 = vector.load %arg10[%c0_26, %c8_27] : memref<4x32xf32, #tpu.memory_space<vmem>>, vector<4x8xf32>
    tpu.vector_store %arg10[%c0_26, %c8_27], %23 {strides = array<i32>} : memref<4x32xf32, #tpu.memory_space<vmem>>, vector<4x8xf32>,
    %25 = vector.extract_strided_slice %1 {offsets = [0, 16], sizes = [4, 8], strides = [1, 1]} : vector<4x96xf32> to vector<4x8xf32>
    %c0_28 = arith.constant 0 : index
    %c0_29 = arith.constant 0 : index
    %26 = vector.load %arg9[%c0_28, %c0_29] : memref<4x24xf32, #tpu.memory_space<vmem>>, vector<4x8xf32>
    tpu.vector_store %arg9[%c0_28, %c0_29], %25 {strides = array<i32>} : memref<4x24xf32, #tpu.memory_space<vmem>>, vector<4x8xf32>,
    %27 = vector.extract_strided_slice %1 {offsets = [0, 48], sizes = [4, 8], strides = [1, 1]} : vector<4x96xf32> to vector<4x8xf32>
    %c0_30 = arith.constant 0 : index
    %c8_31 = arith.constant 8 : index
    %28 = vector.load %arg9[%c0_30, %c8_31] : memref<4x24xf32, #tpu.memory_space<vmem>>, vector<4x8xf32>
    tpu.vector_store %arg9[%c0_30, %c8_31], %27 {strides = array<i32>} : memref<4x24xf32, #tpu.memory_space<vmem>>, vector<4x8xf32>,
    %29 = vector.extract_strided_slice %1 {offsets = [0, 80], sizes = [4, 8], strides = [1, 1]} : vector<4x96xf32> to vector<4x8xf32>
    %c0_32 = arith.constant 0 : index
    %c16_33 = arith.constant 16 : index
    %30 = vector.load %arg9[%c0_32, %c16_33] : memref<4x24xf32, #tpu.memory_space<vmem>>, vector<4x8xf32>
    tpu.vector_store %arg9[%c0_32, %c16_33], %29 {strides = array<i32>} : memref<4x24xf32, #tpu.memory_space<vmem>>, vector<4x8xf32>,
    %c0_34 = arith.constant 0 : index
    %c0_35 = arith.constant 0 : index
    %31 = vector.load %arg9[%c0_34, %c0_35] : memref<4x24xf32, #tpu.memory_space<vmem>>, vector<4x24xf32>
    %c2 = arith.constant 2 : index
    %c0_36 = arith.constant 0 : index
    %c0_37 = arith.constant 0 : index
    %32 = vector.load %arg3[%c2, %c0_36, %c0_37] : memref<4x24x8xf32, #tpu.memory_space<vmem>>, vector<1x24x8xf32>
    %33 = vector.shape_cast %32 : vector<1x24x8xf32> to vector<24x8xf32>
    %cst_38 = arith.constant dense<0.000000e+00> : vector<4x8xf32>
    %34 = tpu.matmul %31, %33, %cst_38 {dimension_numbers = #tpu.dot_dimension_numbers<[1], [0], [0], [1], [0, 0, 1, 1], [], []>} : vector<4x24xf32>, vector<24x8xf32>, vector<4x8xf32> -> vector<4x8xf32>
    %c0_39 = arith.constant 0 : index
    %c16_40 = arith.constant 16 : index
    %35 = vector.load %arg10[%c0_39, %c16_40] : memref<4x32xf32, #tpu.memory_space<vmem>>, vector<4x8xf32>
    tpu.vector_store %arg10[%c0_39, %c16_40], %34 {strides = array<i32>} : memref<4x32xf32, #tpu.memory_space<vmem>>, vector<4x8xf32>,
    %36 = vector.extract_strided_slice %1 {offsets = [0, 24], sizes = [4, 8], strides = [1, 1]} : vector<4x96xf32> to vector<4x8xf32>
    %c0_41 = arith.constant 0 : index
    %c0_42 = arith.constant 0 : index
    %37 = vector.load %arg9[%c0_41, %c0_42] : memref<4x24xf32, #tpu.memory_space<vmem>>, vector<4x8xf32>
    tpu.vector_store %arg9[%c0_41, %c0_42], %36 {strides = array<i32>} : memref<4x24xf32, #tpu.memory_space<vmem>>, vector<4x8xf32>,
    %38 = vector.extract_strided_slice %1 {offsets = [0, 56], sizes = [4, 8], strides = [1, 1]} : vector<4x96xf32> to vector<4x8xf32>
    %c0_43 = arith.constant 0 : index
    %c8_44 = arith.constant 8 : index
    %39 = vector.load %arg9[%c0_43, %c8_44] : memref<4x24xf32, #tpu.memory_space<vmem>>, vector<4x8xf32>
    tpu.vector_store %arg9[%c0_43, %c8_44], %38 {strides = array<i32>} : memref<4x24xf32, #tpu.memory_space<vmem>>, vector<4x8xf32>,
    %40 = vector.extract_strided_slice %1 {offsets = [0, 88], sizes = [4, 8], strides = [1, 1]} : vector<4x96xf32> to vector<4x8xf32>
    %c0_45 = arith.constant 0 : index
    %c16_46 = arith.constant 16 : index
    %41 = vector.load %arg9[%c0_45, %c16_46] : memref<4x24xf32, #tpu.memory_space<vmem>>, vector<4x8xf32>
    tpu.vector_store %arg9[%c0_45, %c16_46], %40 {strides = array<i32>} : memref<4x24xf32, #tpu.memory_space<vmem>>, vector<4x8xf32>,
    %c0_47 = arith.constant 0 : index
    %c0_48 = arith.constant 0 : index
    %42 = vector.load %arg9[%c0_47, %c0_48] : memref<4x24xf32, #tpu.memory_space<vmem>>, vector<4x24xf32>
    %c3 = arith.constant 3 : index
    %c0_49 = arith.constant 0 : index
    %c0_50 = arith.constant 0 : index
    %43 = vector.load %arg3[%c3, %c0_49, %c0_50] : memref<4x24x8xf32, #tpu.memory_space<vmem>>, vector<1x24x8xf32>
    %44 = vector.shape_cast %43 : vector<1x24x8xf32> to vector<24x8xf32>
    %cst_51 = arith.constant dense<0.000000e+00> : vector<4x8xf32>
    %45 = tpu.matmul %42, %44, %cst_51 {dimension_numbers = #tpu.dot_dimension_numbers<[1], [0], [0], [1], [0, 0, 1, 1], [], []>} : vector<4x24xf32>, vector<24x8xf32>, vector<4x8xf32> -> vector<4x8xf32>
    %c0_52 = arith.constant 0 : index
    %c24 = arith.constant 24 : index
    %46 = vector.load %arg10[%c0_52, %c24] : memref<4x32xf32, #tpu.memory_space<vmem>>, vector<4x8xf32>
    tpu.vector_store %arg10[%c0_52, %c24], %45 {strides = array<i32>} : memref<4x32xf32, #tpu.memory_space<vmem>>, vector<4x8xf32>,
    %c0_53 = arith.constant 0 : index
    %c0_54 = arith.constant 0 : index
    %c0_55 = arith.constant 0 : index
    %47 = vector.load %arg7[%c0_53, %c0_54, %c0_55] : memref<1x5x32xf32, #tpu.memory_space<vmem>>, vector<1x1x32xf32>
    %48 = vector.shape_cast %47 : vector<1x1x32xf32> to vector<1x32xf32>
    %49 = vector.shape_cast %2 : vector<1x32xf32> to vector<1x1x32xf32>
    tpu.vector_store %arg7[%c0_53, %c0_54, %c0_55], %49 {strides = array<i32>} : memref<1x5x32xf32, #tpu.memory_space<vmem>>, vector<1x1x32xf32>,
    %c0_56 = arith.constant 0 : index
    %c0_57 = arith.constant 0 : index
    %50 = vector.load %arg10[%c0_56, %c0_57] : memref<4x32xf32, #tpu.memory_space<vmem>>, vector<4x32xf32>
    %c0_58 = arith.constant 0 : index
    %c0_59 = arith.constant 0 : index
    %51 = vector.load %arg4[%c0_58, %c0_59] : memref<1x32xf32, #tpu.memory_space<vmem>>, vector<1x32xf32>
    %52 = vector.broadcast %51 : vector<1x32xf32> to vector<4x32xf32>
    %53 = arith.addf %50, %52 : vector<4x32xf32>
    %c0_60 = arith.constant 0 : index
    %c1_61 = arith.constant 1 : index
    %c0_62 = arith.constant 0 : index
    %54 = vector.load %arg7[%c0_60, %c1_61, %c0_62] : memref<1x5x32xf32, #tpu.memory_space<vmem>>, vector<1x4x32xf32>
    %55 = vector.shape_cast %54 : vector<1x4x32xf32> to vector<4x32xf32>
    %56 = vector.shape_cast %53 : vector<4x32xf32> to vector<1x4x32xf32>
    tpu.vector_store %arg7[%c0_60, %c1_61, %c0_62], %56 {strides = array<i32>} : memref<1x5x32xf32, #tpu.memory_space<vmem>>, vector<1x4x32xf32>,
    %c0_63 = arith.constant 0 : index
    %c0_64 = arith.constant 0 : index
    %c0_65 = arith.constant 0 : index
    %57 = vector.load %arg2[%c0_63, %c0_64, %c0_65] : memref<1x4x96xf32, #tpu.memory_space<vmem>>, vector<1x4x96xf32>
    %58 = vector.shape_cast %57 : vector<1x4x96xf32> to vector<4x96xf32>
    %c0_66 = arith.constant 0 : index
    %c0_67 = arith.constant 0 : index
    %59 = vector.load %arg6[%c0_66, %c0_67] : memref<1x32xf32, #tpu.memory_space<vmem>>, vector<1x32xf32>
    %60 = vector.extract_strided_slice %58 {offsets = [0, 0], sizes = [4, 8], strides = [1, 1]} : vector<4x96xf32> to vector<4x8xf32>
    %c0_68 = arith.constant 0 : index
    %c0_69 = arith.constant 0 : index
    %61 = vector.load %arg9[%c0_68, %c0_69] : memref<4x24xf32, #tpu.memory_space<vmem>>, vector<4x8xf32>
    tpu.vector_store %arg9[%c0_68, %c0_69], %60 {strides = array<i32>} : memref<4x24xf32, #tpu.memory_space<vmem>>, vector<4x8xf32>,
    %62 = vector.extract_strided_slice %58 {offsets = [0, 32], sizes = [4, 8], strides = [1, 1]} : vector<4x96xf32> to vector<4x8xf32>
    %c0_70 = arith.constant 0 : index
    %c8_71 = arith.constant 8 : index
    %63 = vector.load %arg9[%c0_70, %c8_71] : memref<4x24xf32, #tpu.memory_space<vmem>>, vector<4x8xf32>
    tpu.vector_store %arg9[%c0_70, %c8_71], %62 {strides = array<i32>} : memref<4x24xf32, #tpu.memory_space<vmem>>, vector<4x8xf32>,
    %64 = vector.extract_strided_slice %58 {offsets = [0, 64], sizes = [4, 8], strides = [1, 1]} : vector<4x96xf32> to vector<4x8xf32>
    %c0_72 = arith.constant 0 : index
    %c16_73 = arith.constant 16 : index
    %65 = vector.load %arg9[%c0_72, %c16_73] : memref<4x24xf32, #tpu.memory_space<vmem>>, vector<4x8xf32>
    tpu.vector_store %arg9[%c0_72, %c16_73], %64 {strides = array<i32>} : memref<4x24xf32, #tpu.memory_space<vmem>>, vector<4x8xf32>,
    %c0_74 = arith.constant 0 : index
    %c0_75 = arith.constant 0 : index
    %66 = vector.load %arg9[%c0_74, %c0_75] : memref<4x24xf32, #tpu.memory_space<vmem>>, vector<4x24xf32>
    %c0_76 = arith.constant 0 : index
    %c0_77 = arith.constant 0 : index
    %c0_78 = arith.constant 0 : index
    %67 = vector.load %arg3[%c0_76, %c0_77, %c0_78] : memref<4x24x8xf32, #tpu.memory_space<vmem>>, vector<1x24x8xf32>
    %68 = vector.shape_cast %67 : vector<1x24x8xf32> to vector<24x8xf32>
    %cst_79 = arith.constant dense<0.000000e+00> : vector<4x8xf32>
    %69 = tpu.matmul %66, %68, %cst_79 {dimension_numbers = #tpu.dot_dimension_numbers<[1], [0], [0], [1], [0, 0, 1, 1], [], []>} : vector<4x24xf32>, vector<24x8xf32>, vector<4x8xf32> -> vector<4x8xf32>
    %c0_80 = arith.constant 0 : index
    %c0_81 = arith.constant 0 : index
    %70 = vector.load %arg10[%c0_80, %c0_81] : memref<4x32xf32, #tpu.memory_space<vmem>>, vector<4x8xf32>
    tpu.vector_store %arg10[%c0_80, %c0_81], %69 {strides = array<i32>} : memref<4x32xf32, #tpu.memory_space<vmem>>, vector<4x8xf32>,
    %71 = vector.extract_strided_slice %58 {offsets = [0, 8], sizes = [4, 8], strides = [1, 1]} : vector<4x96xf32> to vector<4x8xf32>
    %c0_82 = arith.constant 0 : index
    %c0_83 = arith.constant 0 : index
    %72 = vector.load %arg9[%c0_82, %c0_83] : memref<4x24xf32, #tpu.memory_space<vmem>>, vector<4x8xf32>
    tpu.vector_store %arg9[%c0_82, %c0_83], %71 {strides = array<i32>} : memref<4x24xf32, #tpu.memory_space<vmem>>, vector<4x8xf32>,
    %73 = vector.extract_strided_slice %58 {offsets = [0, 40], sizes = [4, 8], strides = [1, 1]} : vector<4x96xf32> to vector<4x8xf32>
    %c0_84 = arith.constant 0 : index
    %c8_85 = arith.constant 8 : index
    %74 = vector.load %arg9[%c0_84, %c8_85] : memref<4x24xf32, #tpu.memory_space<vmem>>, vector<4x8xf32>
    tpu.vector_store %arg9[%c0_84, %c8_85], %73 {strides = array<i32>} : memref<4x24xf32, #tpu.memory_space<vmem>>, vector<4x8xf32>,
    %75 = vector.extract_strided_slice %58 {offsets = [0, 72], sizes = [4, 8], strides = [1, 1]} : vector<4x96xf32> to vector<4x8xf32>
    %c0_86 = arith.constant 0 : index
    %c16_87 = arith.constant 16 : index
    %76 = vector.load %arg9[%c0_86, %c16_87] : memref<4x24xf32, #tpu.memory_space<vmem>>, vector<4x8xf32>
    tpu.vector_store %arg9[%c0_86, %c16_87], %75 {strides = array<i32>} : memref<4x24xf32, #tpu.memory_space<vmem>>, vector<4x8xf32>,
    %c0_88 = arith.constant 0 : index
    %c0_89 = arith.constant 0 : index
    %77 = vector.load %arg9[%c0_88, %c0_89] : memref<4x24xf32, #tpu.memory_space<vmem>>, vector<4x24xf32>
    %c1_90 = arith.constant 1 : index
    %c0_91 = arith.constant 0 : index
    %c0_92 = arith.constant 0 : index
    %78 = vector.load %arg3[%c1_90, %c0_91, %c0_92] : memref<4x24x8xf32, #tpu.memory_space<vmem>>, vector<1x24x8xf32>
    %79 = vector.shape_cast %78 : vector<1x24x8xf32> to vector<24x8xf32>
    %cst_93 = arith.constant dense<0.000000e+00> : vector<4x8xf32>
    %80 = tpu.matmul %77, %79, %cst_93 {dimension_numbers = #tpu.dot_dimension_numbers<[1], [0], [0], [1], [0, 0, 1, 1], [], []>} : vector<4x24xf32>, vector<24x8xf32>, vector<4x8xf32> -> vector<4x8xf32>
    %c0_94 = arith.constant 0 : index
    %c8_95 = arith.constant 8 : index
    %81 = vector.load %arg10[%c0_94, %c8_95] : memref<4x32xf32, #tpu.memory_space<vmem>>, vector<4x8xf32>
    tpu.vector_store %arg10[%c0_94, %c8_95], %80 {strides = array<i32>} : memref<4x32xf32, #tpu.memory_space<vmem>>, vector<4x8xf32>,
    %82 = vector.extract_strided_slice %58 {offsets = [0, 16], sizes = [4, 8], strides = [1, 1]} : vector<4x96xf32> to vector<4x8xf32>
    %c0_96 = arith.constant 0 : index
    %c0_97 = arith.constant 0 : index
    %83 = vector.load %arg9[%c0_96, %c0_97] : memref<4x24xf32, #tpu.memory_space<vmem>>, vector<4x8xf32>
    tpu.vector_store %arg9[%c0_96, %c0_97], %82 {strides = array<i32>} : memref<4x24xf32, #tpu.memory_space<vmem>>, vector<4x8xf32>,
    %84 = vector.extract_strided_slice %58 {offsets = [0, 48], sizes = [4, 8], strides = [1, 1]} : vector<4x96xf32> to vector<4x8xf32>
    %c0_98 = arith.constant 0 : index
    %c8_99 = arith.constant 8 : index
    %85 = vector.load %arg9[%c0_98, %c8_99] : memref<4x24xf32, #tpu.memory_space<vmem>>, vector<4x8xf32>
    tpu.vector_store %arg9[%c0_98, %c8_99], %84 {strides = array<i32>} : memref<4x24xf32, #tpu.memory_space<vmem>>, vector<4x8xf32>,
    %86 = vector.extract_strided_slice %58 {offsets = [0, 80], sizes = [4, 8], strides = [1, 1]} : vector<4x96xf32> to vector<4x8xf32>
    %c0_100 = arith.constant 0 : index
    %c16_101 = arith.constant 16 : index
    %87 = vector.load %arg9[%c0_100, %c16_101] : memref<4x24xf32, #tpu.memory_space<vmem>>, vector<4x8xf32>
    tpu.vector_store %arg9[%c0_100, %c16_101], %86 {strides = array<i32>} : memref<4x24xf32, #tpu.memory_space<vmem>>, vector<4x8xf32>,
    %c0_102 = arith.constant 0 : index
    %c0_103 = arith.constant 0 : index
    %88 = vector.load %arg9[%c0_102, %c0_103] : memref<4x24xf32, #tpu.memory_space<vmem>>, vector<4x24xf32>
    %c2_104 = arith.constant 2 : index
    %c0_105 = arith.constant 0 : index
    %c0_106 = arith.constant 0 : index
    %89 = vector.load %arg3[%c2_104, %c0_105, %c0_106] : memref<4x24x8xf32, #tpu.memory_space<vmem>>, vector<1x24x8xf32>
    %90 = vector.shape_cast %89 : vector<1x24x8xf32> to vector<24x8xf32>
    %cst_107 = arith.constant dense<0.000000e+00> : vector<4x8xf32>
    %91 = tpu.matmul %88, %90, %cst_107 {dimension_numbers = #tpu.dot_dimension_numbers<[1], [0], [0], [1], [0, 0, 1, 1], [], []>} : vector<4x24xf32>, vector<24x8xf32>, vector<4x8xf32> -> vector<4x8xf32>
    %c0_108 = arith.constant 0 : index
    %c16_109 = arith.constant 16 : index
    %92 = vector.load %arg10[%c0_108, %c16_109] : memref<4x32xf32, #tpu.memory_space<vmem>>, vector<4x8xf32>
    tpu.vector_store %arg10[%c0_108, %c16_109], %91 {strides = array<i32>} : memref<4x32xf32, #tpu.memory_space<vmem>>, vector<4x8xf32>,
    %93 = vector.extract_strided_slice %58 {offsets = [0, 24], sizes = [4, 8], strides = [1, 1]} : vector<4x96xf32> to vector<4x8xf32>
    %c0_110 = arith.constant 0 : index
    %c0_111 = arith.constant 0 : index
    %94 = vector.load %arg9[%c0_110, %c0_111] : memref<4x24xf32, #tpu.memory_space<vmem>>, vector<4x8xf32>
    tpu.vector_store %arg9[%c0_110, %c0_111], %93 {strides = array<i32>} : memref<4x24xf32, #tpu.memory_space<vmem>>, vector<4x8xf32>,
    %95 = vector.extract_strided_slice %58 {offsets = [0, 56], sizes = [4, 8], strides = [1, 1]} : vector<4x96xf32> to vector<4x8xf32>
    %c0_112 = arith.constant 0 : index
    %c8_113 = arith.constant 8 : index
    %96 = vector.load %arg9[%c0_112, %c8_113] : memref<4x24xf32, #tpu.memory_space<vmem>>, vector<4x8xf32>
    tpu.vector_store %arg9[%c0_112, %c8_113], %95 {strides = array<i32>} : memref<4x24xf32, #tpu.memory_space<vmem>>, vector<4x8xf32>,
    %97 = vector.extract_strided_slice %58 {offsets = [0, 88], sizes = [4, 8], strides = [1, 1]} : vector<4x96xf32> to vector<4x8xf32>
    %c0_114 = arith.constant 0 : index
    %c16_115 = arith.constant 16 : index
    %98 = vector.load %arg9[%c0_114, %c16_115] : memref<4x24xf32, #tpu.memory_space<vmem>>, vector<4x8xf32>
    tpu.vector_store %arg9[%c0_114, %c16_115], %97 {strides = array<i32>} : memref<4x24xf32, #tpu.memory_space<vmem>>, vector<4x8xf32>,
    %c0_116 = arith.constant 0 : index
    %c0_117 = arith.constant 0 : index
    %99 = vector.load %arg9[%c0_116, %c0_117] : memref<4x24xf32, #tpu.memory_space<vmem>>, vector<4x24xf32>
    %c3_118 = arith.constant 3 : index
    %c0_119 = arith.constant 0 : index
    %c0_120 = arith.constant 0 : index
    %100 = vector.load %arg3[%c3_118, %c0_119, %c0_120] : memref<4x24x8xf32, #tpu.memory_space<vmem>>, vector<1x24x8xf32>
    %101 = vector.shape_cast %100 : vector<1x24x8xf32> to vector<24x8xf32>
    %cst_121 = arith.constant dense<0.000000e+00> : vector<4x8xf32>
    %102 = tpu.matmul %99, %101, %cst_121 {dimension_numbers = #tpu.dot_dimension_numbers<[1], [0], [0], [1], [0, 0, 1, 1], [], []>} : vector<4x24xf32>, vector<24x8xf32>, vector<4x8xf32> -> vector<4x8xf32>
    %c0_122 = arith.constant 0 : index
    %c24_123 = arith.constant 24 : index
    %103 = vector.load %arg10[%c0_122, %c24_123] : memref<4x32xf32, #tpu.memory_space<vmem>>, vector<4x8xf32>
    tpu.vector_store %arg10[%c0_122, %c24_123], %102 {strides = array<i32>} : memref<4x32xf32, #tpu.memory_space<vmem>>, vector<4x8xf32>,
    %c0_124 = arith.constant 0 : index
    %c0_125 = arith.constant 0 : index
    %c0_126 = arith.constant 0 : index
    %104 = vector.load %arg8[%c0_124, %c0_125, %c0_126] : memref<1x5x32xf32, #tpu.memory_space<vmem>>, vector<1x1x32xf32>
    %105 = vector.shape_cast %104 : vector<1x1x32xf32> to vector<1x32xf32>
    %106 = vector.shape_cast %59 : vector<1x32xf32> to vector<1x1x32xf32>
    tpu.vector_store %arg8[%c0_124, %c0_125, %c0_126], %106 {strides = array<i32>} : memref<1x5x32xf32, #tpu.memory_space<vmem>>, vector<1x1x32xf32>,
    %c0_127 = arith.constant 0 : index
    %c0_128 = arith.constant 0 : index
    %107 = vector.load %arg10[%c0_127, %c0_128] : memref<4x32xf32, #tpu.memory_space<vmem>>, vector<4x32xf32>
    %c0_129 = arith.constant 0 : index
    %c0_130 = arith.constant 0 : index
    %108 = vector.load %arg4[%c0_129, %c0_130] : memref<1x32xf32, #tpu.memory_space<vmem>>, vector<1x32xf32>
    %109 = vector.broadcast %108 : vector<1x32xf32> to vector<4x32xf32>
    %110 = arith.addf %107, %109 : vector<4x32xf32>
    %c0_131 = arith.constant 0 : index
    %c1_132 = arith.constant 1 : index
    %c0_133 = arith.constant 0 : index
    %111 = vector.load %arg8[%c0_131, %c1_132, %c0_133] : memref<1x5x32xf32, #tpu.memory_space<vmem>>, vector<1x4x32xf32>
    %112 = vector.shape_cast %111 : vector<1x4x32xf32> to vector<4x32xf32>
    %113 = vector.shape_cast %110 : vector<4x32xf32> to vector<1x4x32xf32>
    tpu.vector_store %arg8[%c0_131, %c1_132, %c0_133], %113 {strides = array<i32>} : memref<1x5x32xf32, #tpu.memory_space<vmem>>, vector<1x4x32xf32>,
    return
  }
  func.func @transform_0(%arg0: i32) -> (i32, i32, i32) {
    %c0_i32 = arith.constant 0 : i32
    %c0_i32_0 = arith.constant 0 : i32
    %c0_i32_1 = arith.constant 0 : i32
    return %arg0, %c0_i32, %c0_i32_0 : i32, i32, i32
  }
  func.func @transform_1(%arg0: i32) -> (i32, i32, i32) {
    %c0_i32 = arith.constant 0 : i32
    %c0_i32_0 = arith.constant 0 : i32
    %c0_i32_1 = arith.constant 0 : i32
    return %arg0, %c0_i32, %c0_i32_0 : i32, i32, i32
  }
  func.func @transform_2(%arg0: i32) -> (i32, i32, i32) {
    %c0_i32 = arith.constant 0 : i32
    %c0_i32_0 = arith.constant 0 : i32
    %c0_i32_1 = arith.constant 0 : i32
    %c0_i32_2 = arith.constant 0 : i32
    return %c0_i32, %c0_i32_0, %c0_i32_1 : i32, i32, i32
  }
  func.func @transform_3(%arg0: i32) -> (i32, i32) {
    %c0_i32 = arith.constant 0 : i32
    %c0_i32_0 = arith.constant 0 : i32
    %c0_i32_1 = arith.constant 0 : i32
    return %c0_i32, %c0_i32_0 : i32, i32
  }
  func.func @transform_4(%arg0: i32) -> (i32, i32) {
    %c0_i32 = arith.constant 0 : i32
    %c0_i32_0 = arith.constant 0 : i32
    %c0_i32_1 = arith.constant 0 : i32
    return %c0_i32, %c0_i32_0 : i32, i32
  }
  func.func @transform_5(%arg0: i32) -> (i32, i32) {
    %c0_i32 = arith.constant 0 : i32
    %c0_i32_0 = arith.constant 0 : i32
    %c0_i32_1 = arith.constant 0 : i32
    return %c0_i32, %c0_i32_0 : i32, i32
  }
  func.func @transform_6(%arg0: i32) -> (i32, i32, i32) {
    %c0_i32 = arith.constant 0 : i32
    %c0_i32_0 = arith.constant 0 : i32
    %c0_i32_1 = arith.constant 0 : i32
    return %arg0, %c0_i32, %c0_i32_0 : i32, i32, i32
  }
  func.func @transform_7(%arg0: i32) -> (i32, i32, i32) {
    %c0_i32 = arith.constant 0 : i32
    %c0_i32_0 = arith.constant 0 : i32
    %c0_i32_1 = arith.constant 0 : i32
    return %arg0, %c0_i32, %c0_i32_0 : i32, i32, i32
  }
}

module attributes {stable_mosaic.version = 11 : i64} {
  func.func @_attn_block_kernel(%arg0: i32, %arg1: i32, %arg2: memref<1x12x32xf32, #tpu.memory_space<vmem>>, %arg3: memref<1x5x32xf32, #tpu.memory_space<vmem>>, %arg4: memref<1x5x32xf32, #tpu.memory_space<vmem>>, %arg5: memref<1x12x32xf32, #tpu.memory_space<vmem>>, %arg6: memref<32x32xf32, #tpu.memory_space<vmem>>, %arg7: memref<1x32xf32, #tpu.memory_space<vmem>>, %arg8: memref<1x32xf32, #tpu.memory_space<vmem>>, %arg9: memref<1x32xf32, #tpu.memory_space<vmem>>, %arg10: memref<1x12x32xf32, #tpu.memory_space<vmem>>, %arg11: memref<12x32xf32, #tpu.memory_space<vmem>>) attributes {dimension_semantics = [#tpu.dimension_semantics<parallel>, #tpu.dimension_semantics<parallel>], iteration_bounds = array<i64: 2, 1>, scalar_prefetch = 0 : i64, scratch_operands = 1 : i64, tpu.core_type = #tpu.core_type<tc>, window_params = [{transform_indices = @transform_0, window_bounds = array<i64: 1, 12, 32>}, {transform_indices = @transform_1, window_bounds = array<i64: 1, 5, 32>}, {transform_indices = @transform_2, window_bounds = array<i64: 1, 5, 32>}, {transform_indices = @transform_3, window_bounds = array<i64: 1, 12, 32>}, {pipeline_mode = #tpu.pipeline_mode<synchronous>, transform_indices = @transform_4, window_bounds = array<i64: 32, 32>}, {pipeline_mode = #tpu.pipeline_mode<synchronous>, transform_indices = @transform_5, window_bounds = array<i64: 1, 32>}, {pipeline_mode = #tpu.pipeline_mode<synchronous>, transform_indices = @transform_6, window_bounds = array<i64: 1, 32>}, {pipeline_mode = #tpu.pipeline_mode<synchronous>, transform_indices = @transform_7, window_bounds = array<i64: 1, 32>}, {transform_indices = @transform_8, window_bounds = array<i64: 1, 12, 32>}]} {
    %c0 = arith.constant 0 : index
    %c0_0 = arith.constant 0 : index
    %c0_1 = arith.constant 0 : index
    %0 = vector.load %arg2[%c0, %c0_0, %c0_1] : memref<1x12x32xf32, #tpu.memory_space<vmem>>, vector<1x12x32xf32>
    %1 = vector.shape_cast %0 : vector<1x12x32xf32> to vector<12x32xf32>
    %c0_2 = arith.constant 0 : index
    %c0_3 = arith.constant 0 : index
    %c0_4 = arith.constant 0 : index
    %2 = vector.load %arg3[%c0_2, %c0_3, %c0_4] : memref<1x5x32xf32, #tpu.memory_space<vmem>>, vector<1x5x32xf32>
    %3 = vector.shape_cast %2 : vector<1x5x32xf32> to vector<5x32xf32>
    %c0_5 = arith.constant 0 : index
    %c0_6 = arith.constant 0 : index
    %c0_7 = arith.constant 0 : index
    %4 = vector.load %arg4[%c0_5, %c0_6, %c0_7] : memref<1x5x32xf32, #tpu.memory_space<vmem>>, vector<1x5x32xf32>
    %5 = vector.shape_cast %4 : vector<1x5x32xf32> to vector<5x32xf32>
    %c0_8 = arith.constant 0 : index
    %c0_9 = arith.constant 0 : index
    %c0_10 = arith.constant 0 : index
    %6 = vector.load %arg5[%c0_8, %c0_9, %c0_10] : memref<1x12x32xf32, #tpu.memory_space<vmem>>, vector<1x12x32xf32>
    %7 = vector.shape_cast %6 : vector<1x12x32xf32> to vector<12x32xf32>
    %c12_i32 = arith.constant 12 : i32
    %8 = arith.muli %arg1, %c12_i32 : i32
    %9 = tpu.iota {dimensions = array<i32: 0>} : vector<12x5xi32>
    %10 = vector.broadcast %8 : i32 to vector<12x5xi32>
    %11 = arith.addi %10, %9 : vector<12x5xi32>
    %12 = tpu.iota {dimensions = array<i32: 1>} : vector<12x5xi32>
    %c3_i32 = arith.constant 3 : i32
    %13 = vector.broadcast %c3_i32 : i32 to vector<12x5xi32>
    %14 = arith.muli %12, %13 : vector<12x5xi32>
    %c1_i32 = arith.constant 1 : i32
    %15 = vector.broadcast %c1_i32 : i32 to vector<12x5xi32>
    %16 = arith.subi %14, %15 : vector<12x5xi32>
    %c0_i32 = arith.constant 0 : i32
    %17 = vector.broadcast %c0_i32 : i32 to vector<12x5xi32>
    %18 = arith.subi %16, %17 : vector<12x5xi32>
    %c0_i32_11 = arith.constant 0 : i32
    %19 = vector.broadcast %c0_i32_11 : i32 to vector<12x5xi32>
    %20 = arith.maxsi %18, %19 : vector<12x5xi32>
    %21 = arith.cmpi slt, %11, %20 : vector<12x5xi32>
    %22 = vector.extract_strided_slice %1 {offsets = [0, 0], sizes = [12, 8], strides = [1, 1]} : vector<12x32xf32> to vector<12x8xf32>
    %23 = vector.extract_strided_slice %3 {offsets = [0, 0], sizes = [5, 8], strides = [1, 1]} : vector<5x32xf32> to vector<5x8xf32>
    %cst = arith.constant dense<0.000000e+00> : vector<12x5xf32>
    %24 = tpu.matmul %22, %23, %cst {dimension_numbers = #tpu.dot_dimension_numbers<[1], [1], [0], [0], [0, 0, 1, 0], [], []>} : vector<12x8xf32>, vector<5x8xf32>, vector<12x5xf32> -> vector<12x5xf32>
    %cst_12 = arith.constant 0xFF800000 : f32
    %25 = vector.broadcast %cst_12 : f32 to vector<12x5xf32>
    %26 = arith.select %21, %25, %24 : vector<12x5xi1>, vector<12x5xf32>
    %cst_13 = arith.constant dense<0xFF800000> : vector<12xf32>
    %27 = vector.multi_reduction <maximumf>, %26, %cst_13 [1] : vector<12x5xf32> to vector<12xf32>
    %28 = vector.shape_cast %27 : vector<12xf32> to vector<12x1xf32>
    %29 = vector.broadcast %28 : vector<12x1xf32> to vector<12x5xf32>
    %30 = arith.subf %26, %29 : vector<12x5xf32>
    %31 = math.exp %30 : vector<12x5xf32>
    %cst_14 = arith.constant dense<0.000000e+00> : vector<12xf32>
    %32 = vector.multi_reduction <add>, %31, %cst_14 [1] : vector<12x5xf32> to vector<12xf32>
    %33 = vector.shape_cast %32 : vector<12xf32> to vector<12x1xf32>
    %34 = tpu.reciprocal %33 {approx = true} : vector<12x1xf32> -> vector<12x1xf32>
    %35 = vector.broadcast %34 : vector<12x1xf32> to vector<12x5xf32>
    %36 = arith.mulf %31, %35 : vector<12x5xf32>
    %37 = vector.extract_strided_slice %5 {offsets = [0, 0], sizes = [5, 8], strides = [1, 1]} : vector<5x32xf32> to vector<5x8xf32>
    %cst_15 = arith.constant dense<0.000000e+00> : vector<12x8xf32>
    %38 = tpu.matmul %36, %37, %cst_15 {dimension_numbers = #tpu.dot_dimension_numbers<[1], [0], [0], [1], [0, 0, 1, 1], [], []>} : vector<12x5xf32>, vector<5x8xf32>, vector<12x8xf32> -> vector<12x8xf32>
    %c0_16 = arith.constant 0 : index
    %c0_17 = arith.constant 0 : index
    %39 = vector.load %arg11[%c0_16, %c0_17] : memref<12x32xf32, #tpu.memory_space<vmem>>, vector<12x8xf32>
    tpu.vector_store %arg11[%c0_16, %c0_17], %38 {strides = array<i32>} : memref<12x32xf32, #tpu.memory_space<vmem>>, vector<12x8xf32>,
    %40 = vector.extract_strided_slice %1 {offsets = [0, 8], sizes = [12, 8], strides = [1, 1]} : vector<12x32xf32> to vector<12x8xf32>
    %41 = vector.extract_strided_slice %3 {offsets = [0, 8], sizes = [5, 8], strides = [1, 1]} : vector<5x32xf32> to vector<5x8xf32>
    %cst_18 = arith.constant dense<0.000000e+00> : vector<12x5xf32>
    %42 = tpu.matmul %40, %41, %cst_18 {dimension_numbers = #tpu.dot_dimension_numbers<[1], [1], [0], [0], [0, 0, 1, 0], [], []>} : vector<12x8xf32>, vector<5x8xf32>, vector<12x5xf32> -> vector<12x5xf32>
    %cst_19 = arith.constant 0xFF800000 : f32
    %43 = vector.broadcast %cst_19 : f32 to vector<12x5xf32>
    %44 = arith.select %21, %43, %42 : vector<12x5xi1>, vector<12x5xf32>
    %cst_20 = arith.constant dense<0xFF800000> : vector<12xf32>
    %45 = vector.multi_reduction <maximumf>, %44, %cst_20 [1] : vector<12x5xf32> to vector<12xf32>
    %46 = vector.shape_cast %45 : vector<12xf32> to vector<12x1xf32>
    %47 = vector.broadcast %46 : vector<12x1xf32> to vector<12x5xf32>
    %48 = arith.subf %44, %47 : vector<12x5xf32>
    %49 = math.exp %48 : vector<12x5xf32>
    %cst_21 = arith.constant dense<0.000000e+00> : vector<12xf32>
    %50 = vector.multi_reduction <add>, %49, %cst_21 [1] : vector<12x5xf32> to vector<12xf32>
    %51 = vector.shape_cast %50 : vector<12xf32> to vector<12x1xf32>
    %52 = tpu.reciprocal %51 {approx = true} : vector<12x1xf32> -> vector<12x1xf32>
    %53 = vector.broadcast %52 : vector<12x1xf32> to vector<12x5xf32>
    %54 = arith.mulf %49, %53 : vector<12x5xf32>
    %55 = vector.extract_strided_slice %5 {offsets = [0, 8], sizes = [5, 8], strides = [1, 1]} : vector<5x32xf32> to vector<5x8xf32>
    %cst_22 = arith.constant dense<0.000000e+00> : vector<12x8xf32>
    %56 = tpu.matmul %54, %55, %cst_22 {dimension_numbers = #tpu.dot_dimension_numbers<[1], [0], [0], [1], [0, 0, 1, 1], [], []>} : vector<12x5xf32>, vector<5x8xf32>, vector<12x8xf32> -> vector<12x8xf32>
    %c0_23 = arith.constant 0 : index
    %c8 = arith.constant 8 : index
    %57 = vector.load %arg11[%c0_23, %c8] : memref<12x32xf32, #tpu.memory_space<vmem>>, vector<12x8xf32>
    tpu.vector_store %arg11[%c0_23, %c8], %56 {strides = array<i32>} : memref<12x32xf32, #tpu.memory_space<vmem>>, vector<12x8xf32>,
    %58 = vector.extract_strided_slice %1 {offsets = [0, 16], sizes = [12, 8], strides = [1, 1]} : vector<12x32xf32> to vector<12x8xf32>
    %59 = vector.extract_strided_slice %3 {offsets = [0, 16], sizes = [5, 8], strides = [1, 1]} : vector<5x32xf32> to vector<5x8xf32>
    %cst_24 = arith.constant dense<0.000000e+00> : vector<12x5xf32>
    %60 = tpu.matmul %58, %59, %cst_24 {dimension_numbers = #tpu.dot_dimension_numbers<[1], [1], [0], [0], [0, 0, 1, 0], [], []>} : vector<12x8xf32>, vector<5x8xf32>, vector<12x5xf32> -> vector<12x5xf32>
    %cst_25 = arith.constant 0xFF800000 : f32
    %61 = vector.broadcast %cst_25 : f32 to vector<12x5xf32>
    %62 = arith.select %21, %61, %60 : vector<12x5xi1>, vector<12x5xf32>
    %cst_26 = arith.constant dense<0xFF800000> : vector<12xf32>
    %63 = vector.multi_reduction <maximumf>, %62, %cst_26 [1] : vector<12x5xf32> to vector<12xf32>
    %64 = vector.shape_cast %63 : vector<12xf32> to vector<12x1xf32>
    %65 = vector.broadcast %64 : vector<12x1xf32> to vector<12x5xf32>
    %66 = arith.subf %62, %65 : vector<12x5xf32>
    %67 = math.exp %66 : vector<12x5xf32>
    %cst_27 = arith.constant dense<0.000000e+00> : vector<12xf32>
    %68 = vector.multi_reduction <add>, %67, %cst_27 [1] : vector<12x5xf32> to vector<12xf32>
    %69 = vector.shape_cast %68 : vector<12xf32> to vector<12x1xf32>
    %70 = tpu.reciprocal %69 {approx = true} : vector<12x1xf32> -> vector<12x1xf32>
    %71 = vector.broadcast %70 : vector<12x1xf32> to vector<12x5xf32>
    %72 = arith.mulf %67, %71 : vector<12x5xf32>
    %73 = vector.extract_strided_slice %5 {offsets = [0, 16], sizes = [5, 8], strides = [1, 1]} : vector<5x32xf32> to vector<5x8xf32>
    %cst_28 = arith.constant dense<0.000000e+00> : vector<12x8xf32>
    %74 = tpu.matmul %72, %73, %cst_28 {dimension_numbers = #tpu.dot_dimension_numbers<[1], [0], [0], [1], [0, 0, 1, 1], [], []>} : vector<12x5xf32>, vector<5x8xf32>, vector<12x8xf32> -> vector<12x8xf32>
    %c0_29 = arith.constant 0 : index
    %c16 = arith.constant 16 : index
    %75 = vector.load %arg11[%c0_29, %c16] : memref<12x32xf32, #tpu.memory_space<vmem>>, vector<12x8xf32>
    tpu.vector_store %arg11[%c0_29, %c16], %74 {strides = array<i32>} : memref<12x32xf32, #tpu.memory_space<vmem>>, vector<12x8xf32>,
    %76 = vector.extract_strided_slice %1 {offsets = [0, 24], sizes = [12, 8], strides = [1, 1]} : vector<12x32xf32> to vector<12x8xf32>
    %77 = vector.extract_strided_slice %3 {offsets = [0, 24], sizes = [5, 8], strides = [1, 1]} : vector<5x32xf32> to vector<5x8xf32>
    %cst_30 = arith.constant dense<0.000000e+00> : vector<12x5xf32>
    %78 = tpu.matmul %76, %77, %cst_30 {dimension_numbers = #tpu.dot_dimension_numbers<[1], [1], [0], [0], [0, 0, 1, 0], [], []>} : vector<12x8xf32>, vector<5x8xf32>, vector<12x5xf32> -> vector<12x5xf32>
    %cst_31 = arith.constant 0xFF800000 : f32
    %79 = vector.broadcast %cst_31 : f32 to vector<12x5xf32>
    %80 = arith.select %21, %79, %78 : vector<12x5xi1>, vector<12x5xf32>
    %cst_32 = arith.constant dense<0xFF800000> : vector<12xf32>
    %81 = vector.multi_reduction <maximumf>, %80, %cst_32 [1] : vector<12x5xf32> to vector<12xf32>
    %82 = vector.shape_cast %81 : vector<12xf32> to vector<12x1xf32>
    %83 = vector.broadcast %82 : vector<12x1xf32> to vector<12x5xf32>
    %84 = arith.subf %80, %83 : vector<12x5xf32>
    %85 = math.exp %84 : vector<12x5xf32>
    %cst_33 = arith.constant dense<0.000000e+00> : vector<12xf32>
    %86 = vector.multi_reduction <add>, %85, %cst_33 [1] : vector<12x5xf32> to vector<12xf32>
    %87 = vector.shape_cast %86 : vector<12xf32> to vector<12x1xf32>
    %88 = tpu.reciprocal %87 {approx = true} : vector<12x1xf32> -> vector<12x1xf32>
    %89 = vector.broadcast %88 : vector<12x1xf32> to vector<12x5xf32>
    %90 = arith.mulf %85, %89 : vector<12x5xf32>
    %91 = vector.extract_strided_slice %5 {offsets = [0, 24], sizes = [5, 8], strides = [1, 1]} : vector<5x32xf32> to vector<5x8xf32>
    %cst_34 = arith.constant dense<0.000000e+00> : vector<12x8xf32>
    %92 = tpu.matmul %90, %91, %cst_34 {dimension_numbers = #tpu.dot_dimension_numbers<[1], [0], [0], [1], [0, 0, 1, 1], [], []>} : vector<12x5xf32>, vector<5x8xf32>, vector<12x8xf32> -> vector<12x8xf32>
    %c0_35 = arith.constant 0 : index
    %c24 = arith.constant 24 : index
    %93 = vector.load %arg11[%c0_35, %c24] : memref<12x32xf32, #tpu.memory_space<vmem>>, vector<12x8xf32>
    tpu.vector_store %arg11[%c0_35, %c24], %92 {strides = array<i32>} : memref<12x32xf32, #tpu.memory_space<vmem>>, vector<12x8xf32>,
    %c0_36 = arith.constant 0 : index
    %c0_37 = arith.constant 0 : index
    %94 = vector.load %arg11[%c0_36, %c0_37] : memref<12x32xf32, #tpu.memory_space<vmem>>, vector<12x32xf32>
    %c0_38 = arith.constant 0 : index
    %c0_39 = arith.constant 0 : index
    %95 = vector.load %arg6[%c0_38, %c0_39] : memref<32x32xf32, #tpu.memory_space<vmem>>, vector<32x32xf32>
    %cst_40 = arith.constant dense<0.000000e+00> : vector<12x32xf32>
    %96 = tpu.matmul %94, %95, %cst_40 {dimension_numbers = #tpu.dot_dimension_numbers<[1], [0], [0], [1], [0, 0, 1, 1], [], []>} : vector<12x32xf32>, vector<32x32xf32>, vector<12x32xf32> -> vector<12x32xf32>
    %c0_41 = arith.constant 0 : index
    %c0_42 = arith.constant 0 : index
    %97 = vector.load %arg7[%c0_41, %c0_42] : memref<1x32xf32, #tpu.memory_space<vmem>>, vector<1x32xf32>
    %98 = vector.broadcast %97 : vector<1x32xf32> to vector<12x32xf32>
    %99 = arith.addf %96, %98 : vector<12x32xf32>
    %100 = arith.addf %99, %7 : vector<12x32xf32>
    %cst_43 = arith.constant dense<0.000000e+00> : vector<12xf32>
    %101 = vector.multi_reduction <add>, %100, %cst_43 [1] : vector<12x32xf32> to vector<12xf32>
    %102 = vector.shape_cast %101 : vector<12xf32> to vector<12x1xf32>
    %cst_44 = arith.constant 3.200000e+01 : f32
    %103 = vector.broadcast %cst_44 : f32 to vector<12x1xf32>
    %104 = arith.divf %102, %103 : vector<12x1xf32>
    %105 = vector.broadcast %104 : vector<12x1xf32> to vector<12x32xf32>
    %106 = arith.subf %100, %105 : vector<12x32xf32>
    %107 = arith.mulf %106, %106 : vector<12x32xf32>
    %cst_45 = arith.constant dense<0.000000e+00> : vector<12xf32>
    %108 = vector.multi_reduction <add>, %107, %cst_45 [1] : vector<12x32xf32> to vector<12xf32>
    %109 = vector.shape_cast %108 : vector<12xf32> to vector<12x1xf32>
    %cst_46 = arith.constant 0.0322580636 : f32
    %110 = vector.broadcast %cst_46 : f32 to vector<12x1xf32>
    %111 = arith.mulf %109, %110 : vector<12x1xf32>
    %112 = math.sqrt %111 : vector<12x1xf32>
    %cst_47 = arith.constant 9.99999997E-7 : f32
    %113 = vector.broadcast %cst_47 : f32 to vector<12x1xf32>
    %114 = arith.addf %112, %113 : vector<12x1xf32>
    %c0_48 = arith.constant 0 : index
    %c0_49 = arith.constant 0 : index
    %115 = vector.load %arg8[%c0_48, %c0_49] : memref<1x32xf32, #tpu.memory_space<vmem>>, vector<1x32xf32>
    %116 = vector.broadcast %115 : vector<1x32xf32> to vector<12x32xf32>
    %117 = arith.mulf %116, %106 : vector<12x32xf32>
    %118 = vector.broadcast %114 : vector<12x1xf32> to vector<12x32xf32>
    %119 = arith.divf %117, %118 : vector<12x32xf32>
    %c0_50 = arith.constant 0 : index
    %c0_51 = arith.constant 0 : index
    %120 = vector.load %arg9[%c0_50, %c0_51] : memref<1x32xf32, #tpu.memory_space<vmem>>, vector<1x32xf32>
    %121 = vector.broadcast %120 : vector<1x32xf32> to vector<12x32xf32>
    %122 = arith.addf %119, %121 : vector<12x32xf32>
    %c0_52 = arith.constant 0 : index
    %c0_53 = arith.constant 0 : index
    %c0_54 = arith.constant 0 : index
    %123 = vector.load %arg10[%c0_52, %c0_53, %c0_54] : memref<1x12x32xf32, #tpu.memory_space<vmem>>, vector<1x12x32xf32>
    %124 = vector.shape_cast %123 : vector<1x12x32xf32> to vector<12x32xf32>
    %125 = vector.shape_cast %122 : vector<12x32xf32> to vector<1x12x32xf32>
    tpu.vector_store %arg10[%c0_52, %c0_53, %c0_54], %125 {strides = array<i32>} : memref<1x12x32xf32, #tpu.memory_space<vmem>>, vector<1x12x32xf32>,
    return
  }
  func.func @transform_0(%arg0: i32, %arg1: i32) -> (i32, i32, i32) {
    %c0_i32 = arith.constant 0 : i32
    %c0_i32_0 = arith.constant 0 : i32
    return %arg0, %arg1, %c0_i32 : i32, i32, i32
  }
  func.func @transform_1(%arg0: i32, %arg1: i32) -> (i32, i32, i32) {
    %c0_i32 = arith.constant 0 : i32
    %c0_i32_0 = arith.constant 0 : i32
    %c0_i32_1 = arith.constant 0 : i32
    return %arg0, %c0_i32, %c0_i32_0 : i32, i32, i32
  }
  func.func @transform_2(%arg0: i32, %arg1: i32) -> (i32, i32, i32) {
    %c0_i32 = arith.constant 0 : i32
    %c0_i32_0 = arith.constant 0 : i32
    %c0_i32_1 = arith.constant 0 : i32
    return %arg0, %c0_i32, %c0_i32_0 : i32, i32, i32
  }
  func.func @transform_3(%arg0: i32, %arg1: i32) -> (i32, i32, i32) {
    %c0_i32 = arith.constant 0 : i32
    %c0_i32_0 = arith.constant 0 : i32
    return %arg0, %arg1, %c0_i32 : i32, i32, i32
  }
  func.func @transform_4(%arg0: i32, %arg1: i32) -> (i32, i32) {
    %c0_i32 = arith.constant 0 : i32
    %c0_i32_0 = arith.constant 0 : i32
    %c0_i32_1 = arith.constant 0 : i32
    return %c0_i32, %c0_i32_0 : i32, i32
  }
  func.func @transform_5(%arg0: i32, %arg1: i32) -> (i32, i32) {
    %c0_i32 = arith.constant 0 : i32
    %c0_i32_0 = arith.constant 0 : i32
    %c0_i32_1 = arith.constant 0 : i32
    return %c0_i32, %c0_i32_0 : i32, i32
  }
  func.func @transform_6(%arg0: i32, %arg1: i32) -> (i32, i32) {
    %c0_i32 = arith.constant 0 : i32
    %c0_i32_0 = arith.constant 0 : i32
    %c0_i32_1 = arith.constant 0 : i32
    return %c0_i32, %c0_i32_0 : i32, i32
  }
  func.func @transform_7(%arg0: i32, %arg1: i32) -> (i32, i32) {
    %c0_i32 = arith.constant 0 : i32
    %c0_i32_0 = arith.constant 0 : i32
    %c0_i32_1 = arith.constant 0 : i32
    return %c0_i32, %c0_i32_0 : i32, i32
  }
  func.func @transform_8(%arg0: i32, %arg1: i32) -> (i32, i32, i32) {
    %c0_i32 = arith.constant 0 : i32
    %c0_i32_0 = arith.constant 0 : i32
    return %arg0, %arg1, %c0_i32 : i32, i32, i32
  }
}

module attributes {stable_mosaic.version = 11 : i64} {
  func.func @_ffn_block_kernel(%arg0: i32, %arg1: memref<24x32xf32, #tpu.memory_space<vmem>>, %arg2: memref<32x32xf32, #tpu.memory_space<vmem>>, %arg3: memref<1x32xf32, #tpu.memory_space<vmem>>, %arg4: memref<32x32xf32, #tpu.memory_space<vmem>>, %arg5: memref<1x32xf32, #tpu.memory_space<vmem>>, %arg6: memref<1x32xf32, #tpu.memory_space<vmem>>, %arg7: memref<1x32xf32, #tpu.memory_space<vmem>>, %arg8: memref<24x32xf32, #tpu.memory_space<vmem>>) attributes {dimension_semantics = [#tpu.dimension_semantics<parallel>], iteration_bounds = array<i64: 1>, scalar_prefetch = 0 : i64, scratch_operands = 0 : i64, tpu.core_type = #tpu.core_type<tc>, window_params = [{transform_indices = @transform_0, window_bounds = array<i64: 24, 32>}, {pipeline_mode = #tpu.pipeline_mode<synchronous>, transform_indices = @transform_1, window_bounds = array<i64: 32, 32>}, {pipeline_mode = #tpu.pipeline_mode<synchronous>, transform_indices = @transform_2, window_bounds = array<i64: 1, 32>}, {pipeline_mode = #tpu.pipeline_mode<synchronous>, transform_indices = @transform_3, window_bounds = array<i64: 32, 32>}, {pipeline_mode = #tpu.pipeline_mode<synchronous>, transform_indices = @transform_4, window_bounds = array<i64: 1, 32>}, {pipeline_mode = #tpu.pipeline_mode<synchronous>, transform_indices = @transform_5, window_bounds = array<i64: 1, 32>}, {pipeline_mode = #tpu.pipeline_mode<synchronous>, transform_indices = @transform_6, window_bounds = array<i64: 1, 32>}, {transform_indices = @transform_7, window_bounds = array<i64: 24, 32>}]} {
    %c0 = arith.constant 0 : index
    %c0_0 = arith.constant 0 : index
    %0 = vector.load %arg1[%c0, %c0_0] : memref<24x32xf32, #tpu.memory_space<vmem>>, vector<24x32xf32>
    %c0_1 = arith.constant 0 : index
    %c0_2 = arith.constant 0 : index
    %1 = vector.load %arg2[%c0_1, %c0_2] : memref<32x32xf32, #tpu.memory_space<vmem>>, vector<32x32xf32>
    %cst = arith.constant dense<0.000000e+00> : vector<24x32xf32>
    %2 = tpu.matmul %0, %1, %cst {dimension_numbers = #tpu.dot_dimension_numbers<[1], [0], [0], [1], [0, 0, 1, 1], [], []>} : vector<24x32xf32>, vector<32x32xf32>, vector<24x32xf32> -> vector<24x32xf32>
    %c0_3 = arith.constant 0 : index
    %c0_4 = arith.constant 0 : index
    %3 = vector.load %arg3[%c0_3, %c0_4] : memref<1x32xf32, #tpu.memory_space<vmem>>, vector<1x32xf32>
    %4 = vector.broadcast %3 : vector<1x32xf32> to vector<24x32xf32>
    %5 = arith.addf %2, %4 : vector<24x32xf32>
    %cst_5 = arith.constant 0.000000e+00 : f32
    %6 = vector.broadcast %cst_5 : f32 to vector<24x32xf32>
    %7 = arith.maximumf %5, %6 : vector<24x32xf32>
    %c0_6 = arith.constant 0 : index
    %c0_7 = arith.constant 0 : index
    %8 = vector.load %arg4[%c0_6, %c0_7] : memref<32x32xf32, #tpu.memory_space<vmem>>, vector<32x32xf32>
    %cst_8 = arith.constant dense<0.000000e+00> : vector<24x32xf32>
    %9 = tpu.matmul %7, %8, %cst_8 {dimension_numbers = #tpu.dot_dimension_numbers<[1], [0], [0], [1], [0, 0, 1, 1], [], []>} : vector<24x32xf32>, vector<32x32xf32>, vector<24x32xf32> -> vector<24x32xf32>
    %c0_9 = arith.constant 0 : index
    %c0_10 = arith.constant 0 : index
    %10 = vector.load %arg5[%c0_9, %c0_10] : memref<1x32xf32, #tpu.memory_space<vmem>>, vector<1x32xf32>
    %11 = vector.broadcast %10 : vector<1x32xf32> to vector<24x32xf32>
    %12 = arith.addf %9, %11 : vector<24x32xf32>
    %13 = arith.addf %0, %12 : vector<24x32xf32>
    %cst_11 = arith.constant dense<0.000000e+00> : vector<24xf32>
    %14 = vector.multi_reduction <add>, %13, %cst_11 [1] : vector<24x32xf32> to vector<24xf32>
    %15 = vector.shape_cast %14 : vector<24xf32> to vector<24x1xf32>
    %cst_12 = arith.constant 3.200000e+01 : f32
    %16 = vector.broadcast %cst_12 : f32 to vector<24x1xf32>
    %17 = arith.divf %15, %16 : vector<24x1xf32>
    %18 = vector.broadcast %17 : vector<24x1xf32> to vector<24x32xf32>
    %19 = arith.subf %13, %18 : vector<24x32xf32>
    %20 = arith.mulf %19, %19 : vector<24x32xf32>
    %cst_13 = arith.constant dense<0.000000e+00> : vector<24xf32>
    %21 = vector.multi_reduction <add>, %20, %cst_13 [1] : vector<24x32xf32> to vector<24xf32>
    %22 = vector.shape_cast %21 : vector<24xf32> to vector<24x1xf32>
    %cst_14 = arith.constant 0.0322580636 : f32
    %23 = vector.broadcast %cst_14 : f32 to vector<24x1xf32>
    %24 = arith.mulf %22, %23 : vector<24x1xf32>
    %25 = math.sqrt %24 : vector<24x1xf32>
    %cst_15 = arith.constant 9.99999997E-7 : f32
    %26 = vector.broadcast %cst_15 : f32 to vector<24x1xf32>
    %27 = arith.addf %25, %26 : vector<24x1xf32>
    %c0_16 = arith.constant 0 : index
    %c0_17 = arith.constant 0 : index
    %28 = vector.load %arg6[%c0_16, %c0_17] : memref<1x32xf32, #tpu.memory_space<vmem>>, vector<1x32xf32>
    %29 = vector.broadcast %28 : vector<1x32xf32> to vector<24x32xf32>
    %30 = arith.mulf %29, %19 : vector<24x32xf32>
    %31 = vector.broadcast %27 : vector<24x1xf32> to vector<24x32xf32>
    %32 = arith.divf %30, %31 : vector<24x32xf32>
    %c0_18 = arith.constant 0 : index
    %c0_19 = arith.constant 0 : index
    %33 = vector.load %arg7[%c0_18, %c0_19] : memref<1x32xf32, #tpu.memory_space<vmem>>, vector<1x32xf32>
    %34 = vector.broadcast %33 : vector<1x32xf32> to vector<24x32xf32>
    %35 = arith.addf %32, %34 : vector<24x32xf32>
    %c0_20 = arith.constant 0 : index
    %c0_21 = arith.constant 0 : index
    %36 = vector.load %arg8[%c0_20, %c0_21] : memref<24x32xf32, #tpu.memory_space<vmem>>, vector<24x32xf32>
    tpu.vector_store %arg8[%c0_20, %c0_21], %35 {strides = array<i32>} : memref<24x32xf32, #tpu.memory_space<vmem>>, vector<24x32xf32>,
    return
  }
  func.func @transform_0(%arg0: i32) -> (i32, i32) {
    %c0_i32 = arith.constant 0 : i32
    %c0_i32_0 = arith.constant 0 : i32
    return %arg0, %c0_i32 : i32, i32
  }
  func.func @transform_1(%arg0: i32) -> (i32, i32) {
    %c0_i32 = arith.constant 0 : i32
    %c0_i32_0 = arith.constant 0 : i32
    %c0_i32_1 = arith.constant 0 : i32
    return %c0_i32, %c0_i32_0 : i32, i32
  }
  func.func @transform_2(%arg0: i32) -> (i32, i32) {
    %c0_i32 = arith.constant 0 : i32
    %c0_i32_0 = arith.constant 0 : i32
    %c0_i32_1 = arith.constant 0 : i32
    return %c0_i32, %c0_i32_0 : i32, i32
  }
  func.func @transform_3(%arg0: i32) -> (i32, i32) {
    %c0_i32 = arith.constant 0 : i32
    %c0_i32_0 = arith.constant 0 : i32
    %c0_i32_1 = arith.constant 0 : i32
    return %c0_i32, %c0_i32_0 : i32, i32
  }
  func.func @transform_4(%arg0: i32) -> (i32, i32) {
    %c0_i32 = arith.constant 0 : i32
    %c0_i32_0 = arith.constant 0 : i32
    %c0_i32_1 = arith.constant 0 : i32
    return %c0_i32, %c0_i32_0 : i32, i32
  }
  func.func @transform_5(%arg0: i32) -> (i32, i32) {
    %c0_i32 = arith.constant 0 : i32
    %c0_i32_0 = arith.constant 0 : i32
    %c0_i32_1 = arith.constant 0 : i32
    return %c0_i32, %c0_i32_0 : i32, i32
  }
  func.func @transform_6(%arg0: i32) -> (i32, i32) {
    %c0_i32 = arith.constant 0 : i32
    %c0_i32_0 = arith.constant 0 : i32
    %c0_i32_1 = arith.constant 0 : i32
    return %c0_i32, %c0_i32_0 : i32, i32
  }
  func.func @transform_7(%arg0: i32) -> (i32, i32) {
    %c0_i32 = arith.constant 0 : i32
    %c0_i32_0 = arith.constant 0 : i32
    return %arg0, %c0_i32 : i32, i32
  }
}

module attributes {stable_mosaic.version = 11 : i64} {
  func.func @_matmul_kernel(%arg0: i32, %arg1: i32, %arg2: i32, %arg3: memref<24x32xf32, #tpu.memory_space<vmem>>, %arg4: memref<32x16xf32, #tpu.memory_space<vmem>>, %arg5: memref<1x16xf32, #tpu.memory_space<vmem>>, %arg6: memref<24x16xf32, #tpu.memory_space<vmem>>, %arg7: memref<24x16xf32, #tpu.memory_space<vmem>>) attributes {dimension_semantics = [#tpu.dimension_semantics<parallel>, #tpu.dimension_semantics<parallel>, #tpu.dimension_semantics<arbitrary>], iteration_bounds = array<i64: 1, 1, 1>, scalar_prefetch = 0 : i64, scratch_operands = 1 : i64, tpu.core_type = #tpu.core_type<tc>, window_params = [{transform_indices = @transform_0, window_bounds = array<i64: 24, 32>}, {transform_indices = @transform_1, window_bounds = array<i64: 32, 16>}, {transform_indices = @transform_2, window_bounds = array<i64: 1, 16>}, {transform_indices = @transform_3, window_bounds = array<i64: 24, 16>}]} {
    %c0_i32 = arith.constant 0 : i32
    %0 = arith.cmpi eq, %arg2, %c0_i32 : i32
    %1 = arith.extui %0 : i1 to i32
    %c0_i32_0 = arith.constant 0 : i32
    %2 = arith.cmpi ne, %1, %c0_i32_0 : i32
    scf.if %2 {
      %cst_10 = arith.constant 0.000000e+00 : f32
      %12 = vector.broadcast %cst_10 : f32 to vector<24x16xf32>
      %c0_11 = arith.constant 0 : index
      %c0_12 = arith.constant 0 : index
      %13 = vector.load %arg7[%c0_11, %c0_12] : memref<24x16xf32, #tpu.memory_space<vmem>>, vector<24x16xf32>
      tpu.vector_store %arg7[%c0_11, %c0_12], %12 {strides = array<i32>} : memref<24x16xf32, #tpu.memory_space<vmem>>, vector<24x16xf32>,
    } else {
    }
    %c0 = arith.constant 0 : index
    %c0_1 = arith.constant 0 : index
    %3 = vector.load %arg7[%c0, %c0_1] : memref<24x16xf32, #tpu.memory_space<vmem>>, vector<24x16xf32>
    %c0_2 = arith.constant 0 : index
    %c0_3 = arith.constant 0 : index
    %4 = vector.load %arg3[%c0_2, %c0_3] : memref<24x32xf32, #tpu.memory_space<vmem>>, vector<24x32xf32>
    %c0_4 = arith.constant 0 : index
    %c0_5 = arith.constant 0 : index
    %5 = vector.load %arg4[%c0_4, %c0_5] : memref<32x16xf32, #tpu.memory_space<vmem>>, vector<32x16xf32>
    %cst = arith.constant dense<0.000000e+00> : vector<24x16xf32>
    %6 = tpu.matmul %4, %5, %cst {dimension_numbers = #tpu.dot_dimension_numbers<[1], [0], [0], [1], [0, 0, 1, 1], [], []>} : vector<24x32xf32>, vector<32x16xf32>, vector<24x16xf32> -> vector<24x16xf32>
    %7 = arith.addf %3, %6 : vector<24x16xf32>
    %c0_6 = arith.constant 0 : index
    %c0_7 = arith.constant 0 : index
    %8 = vector.load %arg7[%c0_6, %c0_7] : memref<24x16xf32, #tpu.memory_space<vmem>>, vector<24x16xf32>
    tpu.vector_store %arg7[%c0_6, %c0_7], %7 {strides = array<i32>} : memref<24x16xf32, #tpu.memory_space<vmem>>, vector<24x16xf32>,
    %c0_i32_8 = arith.constant 0 : i32
    %9 = arith.cmpi eq, %arg2, %c0_i32_8 : i32
    %10 = arith.extui %9 : i1 to i32
    %c0_i32_9 = arith.constant 0 : i32
    %11 = arith.cmpi ne, %10, %c0_i32_9 : i32
    scf.if %11 {
      %c0_10 = arith.constant 0 : index
      %c0_11 = arith.constant 0 : index
      %12 = vector.load %arg7[%c0_10, %c0_11] : memref<24x16xf32, #tpu.memory_space<vmem>>, vector<24x16xf32>
      %c0_12 = arith.constant 0 : index
      %c0_13 = arith.constant 0 : index
      %13 = vector.load %arg5[%c0_12, %c0_13] : memref<1x16xf32, #tpu.memory_space<vmem>>, vector<1x16xf32>
      %14 = vector.broadcast %13 : vector<1x16xf32> to vector<24x16xf32>
      %15 = arith.addf %12, %14 : vector<24x16xf32>
      %c0_14 = arith.constant 0 : index
      %c0_15 = arith.constant 0 : index
      %16 = vector.load %arg6[%c0_14, %c0_15] : memref<24x16xf32, #tpu.memory_space<vmem>>, vector<24x16xf32>
      tpu.vector_store %arg6[%c0_14, %c0_15], %15 {strides = array<i32>} : memref<24x16xf32, #tpu.memory_space<vmem>>, vector<24x16xf32>,
    } else {
    }
    return
  }
  func.func @transform_0(%arg0: i32, %arg1: i32, %arg2: i32) -> (i32, i32) {
    %c0_i32 = arith.constant 0 : i32
    return %arg0, %arg2 : i32, i32
  }
  func.func @transform_1(%arg0: i32, %arg1: i32, %arg2: i32) -> (i32, i32) {
    %c0_i32 = arith.constant 0 : i32
    return %arg2, %arg1 : i32, i32
  }
  func.func @transform_2(%arg0: i32, %arg1: i32, %arg2: i32) -> (i32, i32) {
    %c0_i32 = arith.constant 0 : i32
    %c0_i32_0 = arith.constant 0 : i32
    return %c0_i32, %arg1 : i32, i32
  }
  func.func @transform_3(%arg0: i32, %arg1: i32, %arg2: i32) -> (i32, i32) {
    %c0_i32 = arith.constant 0 : i32
    return %arg0, %arg1 : i32, i32
  }
}

</mosaic_0001>

<bundles_post_ra>
// kernel: transformer_decoder_forward.11
= control target key start
LH: loop header
LB: loop body
LE: loop exit
PB: predicated region body
PF: predicated region fallthrough
CT: control target
= control target key end

     0   :  { %vm24_vm0 = vcmask 261120   ;;  %v450_v0 = vmov 0.0   ;;  %vm451_vm1 = vmmov 0   ;;  %s638_s1 = inlined_call_operand.vmem [shape: f32[32,32], index: 1, kind: input, shape index: {}]   ;;  %s639_s0 = inlined_call_operand.vmem [shape: f32[24,32], index: 0, kind: input, shape index: {}]   ;;  %s640_s2 = inlined_call_operand.vmem [shape: f32[32,32], index: 2, kind: input, shape index: {}]   ;;  %s641_s3 = inlined_call_operand.vmem [shape: f32[32,32], index: 3, kind: input, shape index: {}]   ;;  %s642_s4 = inlined_call_operand.vmem [shape: f32[24,32], index: 4, kind: output, shape index: {0}]   ;;  %s643_s5 = inlined_call_operand.vmem [shape: f32[24,32], index: 5, kind: output, shape index: {1}]   ;;  %s644_s6 = inlined_call_operand.vmem [shape: f32[24,32], index: 6, kind: output, shape index: {2}]  }
   0x1   :  { %389 = vmatprep.subr.mxu0 %v450_v0  ;;  %440 = vmatprep.subr.mxu1 %v450_v0  ;;  %v43_v1 = vld [vmem:[%s638_s1 + $0x18] sm:$0xff]  ;;  %v42_v2 = vld [vmem:[%s638_s1 + $0x10] sm:$0xff]  ;;  %25 = vst.msk [vmem:[#allocation2] sm:$0xff] %vm24_vm0, %v450_v0  ;;  %26 = vst.msk [vmem:[#allocation2 + $0x8] sm:$0xff] %vm24_vm0, %v450_v0 }
   0x2   :  { %27 = vst.msk [vmem:[#allocation2 + $0x10] sm:$0xff] %vm24_vm0, %v450_v0  ;;  %28 = vst.msk [vmem:[#allocation3] sm:$0xff] %vm24_vm0, %v450_v0  ;;  %390 = vmatpush3.msra.mxu0 %v43_v1  ;;  %444 = vmatpush3.msra.mxu1 %v43_v1  ;;  %v41_v3 = vld [vmem:[%s638_s1 + $0x8] sm:$0xff]  ;;  %v40_v4 = vld [vmem:[%s638_s1] sm:$0xff] }
   0x3   :  { %29 = vst.msk [vmem:[#allocation3 + $0x8] sm:$0xff] %vm24_vm0, %v450_v0  ;;  %30 = vst.msk [vmem:[#allocation3 + $0x10] sm:$0xff] %vm24_vm0, %v450_v0  ;;  %391 = vmatprep.subr.mxu0 %v450_v0  ;;  %441 = vmatprep.subr.mxu1 %v450_v0  ;;  %v34_v5 = vld [vmem:[%s639_s0] sm:$0xff]  ;;  %v36_v6 = vld [vmem:[%s639_s0 + $0x10] sm:$0xff] }
   0x4   :  { %31 = vst.msk [vmem:[#allocation4] sm:$0xff] %vm24_vm0, %v450_v0  ;;  %32 = vst.msk [vmem:[#allocation4 + $0x8] sm:$0xff] %vm24_vm0, %v450_v0  ;;  %392 = vmatpush3.msra.mxu0 %v42_v2  ;;  %445 = vmatpush3.msra.mxu1 %v42_v2  ;;  %v146_v7 = vld [vmem:[%s640_s2 + $0x18] sm:$0xff]  ;;  %v145_v9 = vld [vmem:[%s640_s2 + $0x10] sm:$0xff] }
   0x5   :  { %33 = vst.msk [vmem:[#allocation4 + $0x10] sm:$0xff] %vm24_vm0, %v450_v0  ;;  %393 = vmatprep.subr.mxu0 %v450_v0  ;;  %442 = vmatprep.subr.mxu1 %v450_v0  ;;  %v239_v8 = vld [vmem:[%s641_s3 + $0x18] sm:$0xff]  ;;  %v238_v10 = vld [vmem:[%s641_s3 + $0x10] sm:$0xff]  ;;  %v35_v11 = vld [vmem:[%s639_s0 + $0x8] sm:$0xff] }
   0x6   :  { %394 = vmatpush3.msra.mxu0 %v41_v3  ;;  %446 = vmatpush3.msra.mxu1 %v41_v3  ;;  %v144_v12 = vld [vmem:[%s640_s2 + $0x8] sm:$0xff]  ;;  %v143_v14 = vld [vmem:[%s640_s2] sm:$0xff] }
   0x7   :  { %395 = vmatprep.subr.mxu0 %v450_v0  ;;  %443 = vmatprep.subr.mxu1 %v450_v0  ;;  %v237_v13 = vld [vmem:[%s641_s3 + $0x8] sm:$0xff]  ;;  %v236_v15 = vld [vmem:[%s641_s3] sm:$0xff] }
   0x8   :  { %396 = vmatpush3.msra.mxu0 %v40_v4  ;;  %447 = vmatpush3.msra.mxu1 %v40_v4  ;;  %v37_v16 = vld [vmem:[#allocation2] sm:$0xff]  ;;  %v38_v24 = vld [vmem:[#allocation2 + $0x8] sm:$0xff] }
   0x9   :  { %397 = vmatprep.mubr.msk.f32.mxu0 %vm451_vm1, %v450_v0  ;;  %403 = vmatprep.mubr.msk.f32.mxu1 %vm451_vm1, %v450_v0  ;;  %v39_v17 = vld [vmem:[#allocation2 + $0x10] sm:$0xff]  ;;  %v140_v28 = vld [vmem:[#allocation3] sm:$0xff] }
   0xa   :  { %398 = vmatmul.mubr.msk.f32.vlgmr.msra.gmra.mxu0 %vm24_vm0, %v34_v5  ;;  %404 = vmatmul.mubr.msk.f32.vlgmr.msra.gmra.mxu1 %vm24_vm0, %v36_v6  ;;  %v141_v38 = vld [vmem:[#allocation3 + $0x8] sm:$0xff]  ;;  %v142_v47 = vld [vmem:[#allocation3 + $0x10] sm:$0xff] }
   0xb   :  { %406 = vmatprep.subr.mxu1 %v450_v0  ;;  %423 = vmatprep.subr.mxu0 %v450_v0  ;;  %v233_v29 = vld [vmem:[#allocation4] sm:$0xff]  ;;  %v234_v39 = vld [vmem:[#allocation4 + $0x8] sm:$0xff] }
   0xc   :  { %407 = vmatpush3.msra.mxu1 %v146_v7  ;;  %424 = vmatpush3.msra.mxu0 %v239_v8  ;;  %v235_v48 = vld [vmem:[#allocation4 + $0x10] sm:$0xff] }
   0xd   :  { %408 = vmatprep.subr.mxu1 %v450_v0  ;;  %425 = vmatprep.subr.mxu0 %v450_v0 }
   0xe   :  { %400 = vmatprep.mubr.msk.f32.mxu0 %vm451_vm1, %v450_v0  ;;  %409 = vmatpush3.msra.mxu1 %v145_v9 }
   0xf   :  { %426 = vmatpush3.msra.mxu0 %v238_v10  ;;  %410 = vmatprep.subr.mxu1 %v450_v0 }
  0x10   :  { %401 = vmatmul.mubr.msk.f32.gmra.mxu0 %vm24_vm0, %v35_v11  ;;  %427 = vmatprep.subr.mxu0 %v450_v0 }
  0x11   :  { %411 = vmatpush3.msra.mxu1 %v144_v12  ;;  %428 = vmatpush3.msra.mxu0 %v237_v13 }
  0x12   :  { %412 = vmatprep.subr.mxu1 %v450_v0  ;;  %429 = vmatprep.subr.mxu0 %v450_v0 }
  0x13   :  { %413 = vmatpush3.msra.mxu1 %v143_v14  ;;  %414 = vmatprep.mubr.msk.f32.mxu1 %vm451_vm1, %v450_v0 }
  0x14   :  { %430 = vmatpush3.msra.mxu0 %v236_v15  ;;  %431 = vmatprep.mubr.msk.f32.mxu0 %vm451_vm1, %v450_v0 }
  0x15   :  { %415 = vmatmul.mubr.msk.f32.vlgmr.msra.gmra.mxu1 %vm24_vm0, %v34_v5  ;;  %432 = vmatmul.mubr.msk.f32.vlgmr.msra.gmra.mxu0 %vm24_vm0, %v34_v5 }
  0x16   :  { %417 = vmatprep.mubr.msk.f32.mxu1 %vm451_vm1, %v450_v0  ;;  %434 = vmatprep.mubr.msk.f32.mxu0 %vm451_vm1, %v450_v0 }
  0x19   :  { %418 = vmatmul.mubr.msk.f32.gmra.mxu1 %vm24_vm0, %v35_v11  ;;  %435 = vmatmul.mubr.msk.f32.gmra.mxu0 %vm24_vm0, %v35_v11 }
  0x1a   :  { %420 = vmatprep.mubr.msk.f32.mxu1 %vm451_vm1, %v450_v0  ;;  %437 = vmatprep.mubr.msk.f32.mxu0 %vm451_vm1, %v450_v0 }
  0x1d   :  { %421 = vmatmul.mubr.msk.f32.gmra.mxu1 %vm24_vm0, %v36_v6  ;;  %438 = vmatmul.mubr.msk.f32.gmra.mxu0 %vm24_vm0, %v36_v6 }
  0xca   :  { %v120_v18 = vpop.f32.mrf.mxu0  ;;  %v130_v19 = vpop.f32.mrf.mxu1 }
  0xcb   :  { %v134_v20 = vadd.f32 %v120_v18, %v37_v16  ;;  %v136_v21 = vadd.f32 %v130_v19, %v39_v17 }
  0xcc   :  { %v399_v22 = vpop.f32.mrf.mxu0  ;;  %v405_v23 = vpop.f32.mrf.mxu1 }
  0xcd   :  { %137 = vst.msk [vmem:[#allocation2] sm:$0xff] %vm24_vm0, %v134_v20  ;;  %139 = vst.msk [vmem:[#allocation2 + $0x10] sm:$0xff] %vm24_vm0, %v136_v21 }
  0xd0   :  { %v125_v25 = vpop.f32.mrf.mxu0 }
  0xd1   :  { %v135_v26 = vadd.f32 %v125_v25, %v38_v24 }
  0xd2   :  { %v402_v27 = vpop.f32.mrf.mxu0 }
  0xd3   :  { %138 = vst.msk [vmem:[#allocation2 + $0x8] sm:$0xff] %vm24_vm0, %v135_v26 }
  0xd4   :  { %v329_v30 = vld [vmem:[#allocation2] sm:$0xff]  ;;  %v331_v31 = vld [vmem:[#allocation2 + $0x10] sm:$0xff] }
  0xd5   :  { %332 = vst.msk [vmem:[%s642_s4] sm:$0xff] %vm24_vm0, %v329_v30  ;;  %334 = vst.msk [vmem:[%s642_s4 + $0x10] sm:$0xff] %vm24_vm0, %v331_v31  ;;  %v213_v32 = vpop.f32.mrf.mxu1  ;;  %v306_v33 = vpop.f32.mrf.mxu0 }
  0xd6   :  { %v227_v34 = vadd.f32 %v213_v32, %v140_v28  ;;  %v320_v35 = vadd.f32 %v306_v33, %v233_v29 }
  0xd7   :  { %v416_v36 = vpop.f32.mrf.mxu1  ;;  %v433_v37 = vpop.f32.mrf.mxu0 }
  0xd8   :  { %230 = vst.msk [vmem:[#allocation3] sm:$0xff] %vm24_vm0, %v227_v34  ;;  %323 = vst.msk [vmem:[#allocation4] sm:$0xff] %vm24_vm0, %v320_v35 }
  0xd9   :  { %v218_v40 = vpop.f32.mrf.mxu1  ;;  %v311_v41 = vpop.f32.mrf.mxu0 }
  0xda   :  { %v330_v42 = vld [vmem:[#allocation2 + $0x8] sm:$0xff]  ;;  %v228_v43 = vadd.f32 %v218_v40, %v141_v38  ;;  %v321_v44 = vadd.f32 %v311_v41, %v234_v39 }
  0xdb   :  { %333 = vst.msk [vmem:[%s642_s4 + $0x8] sm:$0xff] %vm24_vm0, %v330_v42  ;;  %v419_v45 = vpop.f32.mrf.mxu1  ;;  %v436_v46 = vpop.f32.mrf.mxu0 }
  0xdc   :  { %231 = vst.msk [vmem:[#allocation3 + $0x8] sm:$0xff] %vm24_vm0, %v228_v43  ;;  %324 = vst.msk [vmem:[#allocation4 + $0x8] sm:$0xff] %vm24_vm0, %v321_v44 }
  0xdd   :  { %v223_v49 = vpop.f32.mrf.mxu1  ;;  %v316_v50 = vpop.f32.mrf.mxu0 }
  0xde   :  { %v229_v51 = vadd.f32 %v223_v49, %v142_v47  ;;  %v322_v52 = vadd.f32 %v316_v50, %v235_v48 }
  0xdf   :  { %v335_v53 = vld [vmem:[#allocation3] sm:$0xff]  ;;  %v341_v54 = vld [vmem:[#allocation4] sm:$0xff]  ;;  %v422_v55 = vpop.f32.mrf.mxu1  ;;  %v439_v56 = vpop.f32.mrf.mxu0 }
  0xe0   :  { %338 = vst.msk [vmem:[%s643_s5] sm:$0xff] %vm24_vm0, %v335_v53  ;;  %344 = vst.msk [vmem:[%s644_s6] sm:$0xff] %vm24_vm0, %v341_v54 }
  0xe1   :  { %232 = vst.msk [vmem:[#allocation3 + $0x10] sm:$0xff] %vm24_vm0, %v229_v51  ;;  %325 = vst.msk [vmem:[#allocation4 + $0x10] sm:$0xff] %vm24_vm0, %v322_v52 }
  0xe3   :  { %v336_v57 = vld [vmem:[#allocation3 + $0x8] sm:$0xff]  ;;  %v342_v58 = vld [vmem:[#allocation4 + $0x8] sm:$0xff] }
  0xe4   :  { %339 = vst.msk [vmem:[%s643_s5 + $0x8] sm:$0xff] %vm24_vm0, %v336_v57  ;;  %345 = vst.msk [vmem:[%s644_s6 + $0x8] sm:$0xff] %vm24_vm0, %v342_v58 }
  0xe8   :  { %v337_v59 = vld [vmem:[#allocation3 + $0x10] sm:$0xff]  ;;  %v343_v60 = vld [vmem:[#allocation4 + $0x10] sm:$0xff] }
  0xe9   :  { %340 = vst.msk [vmem:[%s643_s5 + $0x10] sm:$0xff] %vm24_vm0, %v337_v59  ;;  %346 = vst.msk [vmem:[%s644_s6 + $0x10] sm:$0xff] %vm24_vm0, %v343_v60 }

// kernel: transformer_decoder_forward.10
= control target key start
LH: loop header
LB: loop body
LE: loop exit
PB: predicated region body
PF: predicated region fallthrough
CT: control target
= control target key end

     0   :  { %s424_s15 = smov 0   ;;  %s456_s0 = inlined_call_operand.vmem [shape: f32[2,12,16], index: 0, kind: input, shape index: {}]   ;;  %s457_s1 = inlined_call_operand.vmem [shape: f32[16,32], index: 1, kind: input, shape index: {}]   ;;  %s458_s2 = inlined_call_operand.vmem [shape: f32[1,32], index: 2, kind: input, shape index: {}]   ;;  %s459_s3 = inlined_call_operand.vmem [shape: f32[12,32], index: 3, kind: input, shape index: {}]   ;;  %s460_s4 = inlined_call_operand.vmem [shape: f32[2,12,32], index: 4, kind: output, shape index: {}]  }
   0x1 LB: > { %s356_s16 = sadd.s32 4294967295, %s397_s15   ;;  %p360_p0 = scmp.ge.s32.totalorder %s397_s15, 1  ;;  %s397_s15 = sphi %s424_s15, %s14_s15  }
   0x2   : > { %p162_p1 = scmp.lt.s32.totalorder %s397_s15, 3 }
   0x4   : > { %p163_p2 = pnand %p360_p0, %p162_p1 }
   0x5   : > { %p188_p3 = scmp.lt.s32.totalorder (!%p163_p2), %s356_s16, 1 }
   0x6   : > { %166 = sbr.rel (%p163_p2) target bundleno = 218 (0xda), region = 36 }
   0xb   : > { %v201_v0 = vld [vmem:[%s457_s1 + $0x8] sm:$0xff]  ;;  %v200_v1 = vld [vmem:[%s457_s1] sm:$0xff]  ;;  %s462_s16 = smov (!%p188_p3, %s356_s16), 1  ;;  %vm209_vm0 = vcmask 130048   ;;  %vm299_vm1 = vcmask 257024   ;;  %vm297_vm2 = vcmask 261120  }
   0xc   : > { %376 = vmatprep.subr.mxu0 %v201_v0  ;;  %s370_s21 = sshll.u32 %s462_s16, 4  ;;  %v365_v4 = vld [vmem:[%s458_s2] ss:$0 sm:$0xff]  ;;  %v294_v7 = vld [vmem:[%s459_s3 + $0x8] sm:$0xf] }
   0xd   : > { %377 = vmatpush3.msra.mxu0 %v201_v0  ;;  %s192_s24 = scalar_lea.vmem %s456_s0, %s370_s21  ;;  %s197_s5 = scalar_lea.vmem %s460_s4, %s370_s21  ;;  %v293_v11 = vld [vmem:[%s459_s3] sm:$0xff] }
   0xe   : > { %378 = vmatprep.subr.mxu0 %v200_v1  ;;  %v198_v2 = vld [vmem:[%s192_s24] sm:$0xff]  ;;  %v199_v3 = vld [vmem:[%s192_s24 + $0x8] sm:$0xf] }
   0xf   : > { %379 = vmatpush3.msra.mxu0 %v200_v1  ;;  %380 = vmatprep.mubr.msk.f32.mxu0 %vm209_vm0, %v198_v2 }
  0x10   : > { %381 = vmatmul.mubr.msk.f32.vlgmr.msra.gmra.mxu0 %vm209_vm0, %v199_v3 }
  0xd0   : > { %v382_v5 = vpop.f32.mrf.mxu0 }
  0xd1   : > { %v288_v6 = vadd.f32 %v382_v5, %v365_v4 }
  0xd2   : > { %v282_v8 = vpop.f32.mrf.mxu0 }
  0xd3   : > { %v292_v9 = vmax.f32 %v288_v6, 0.0  ;;  %v283_v10 = vadd.f32 %v365_v4, %v282_v8 }
  0xd5   : > { %v296_v12 = vadd.f32 %v294_v7, %v292_v9  ;;  %v291_v13 = vmax.f32 %v283_v10, 0.0 }
  0xd7   : > { %300 = vst.msk [vmem:[%s197_s5 + $0x8] sm:$0xf] %vm299_vm1, %v296_v12  ;;  %v295_v14 = vadd.f32 %v293_v11, %v291_v13 }
  0xd9   : > { %298 = vst.msk [vmem:[%s197_s5] sm:$0xff] %vm297_vm2, %v295_v14 }
  0xda PF: > { %s14_s15 = sadd.s32 1, %s397_s15  }
  0xdb   : > { %p11_p4 = scmp.ge.s32.totalorder %s14_s15, 4  }
  0xdd   :  { %13 = sbr.rel (!%p11_p4) target bundleno = 1 (0x1), region = 66 }

// kernel: transformer_decoder_forward.12
= control target key start
LH: loop header
LB: loop body
LE: loop exit
PB: predicated region body
PF: predicated region fallthrough
CT: control target
= control target key end

     0   :  { %s1389_s24 = smov 0   ;;  %s1607_s0 = inlined_call_operand.vmem [shape: f32[2,4,96], index: 0, kind: input, shape index: {}]   ;;  %s1608_s1 = inlined_call_operand.vmem [shape: f32[2,4,96], index: 1, kind: input, shape index: {}]   ;;  %s1609_s2 = inlined_call_operand.vmem [shape: f32[4,24,8], index: 2, kind: input, shape index: {}]   ;;  %s1610_s3 = inlined_call_operand.vmem [shape: f32[1,32], index: 3, kind: input, shape index: {}]   ;;  %s1611_s4 = inlined_call_operand.vmem [shape: f32[1,32], index: 4, kind: input, shape index: {}]   ;;  %s1612_s5 = inlined_call_operand.vmem [shape: f32[1,32], index: 5, kind: input, shape index: {}]   ;;  %s1613_s6 = inlined_call_operand.vmem [shape: f32[2,5,32], index: 6, kind: output, shape index: {0}]   ;;  %s1614_s7 = inlined_call_operand.vmem [shape: f32[2,5,32], index: 7, kind: output, shape index: {1}]  }
   0x1 LB: > { %s1162_s25 = sadd.s32 4294967295, %s1333_s24   ;;  %p1166_p0 = scmp.ge.s32.totalorder %s1333_s24, 1  ;;  %s1333_s24 = sphi %s1389_s24, %s18_s24  }
   0x2   : > { %p248_p1 = scmp.lt.s32.totalorder %s1333_s24, 3 }
   0x4   : > { %p249_p2 = pnand %p1166_p0, %p248_p1 }
   0x5   : > { %p286_p3 = scmp.lt.s32.totalorder (!%p249_p2), %s1162_s25, 1  ;;  %s1337_s13 = smov (!%p249_p2), 104  }
   0x6   : > { %252 = sbr.rel (%p249_p2) target bundleno = 531 (0x213), region = 44  ;;  %s1338_s14 = smov (!%p249_p2), 120  }
   0x7   : > { %s1339_s17 = smov (!%p249_p2), 80   ;;  %s1340_s18 = smov (!%p249_p2), 96  }
   0x8   : > { %s1341_s23 = smov (!%p249_p2), 72   ;;  %s1342_s26 = smov (!%p249_p2), 112  }
   0x9   : > { %s1343_s8 = smov (!%p249_p2), 88   ;;  %s1344_s9 = smov (!%p249_p2), 64  }
   0xa   : > { %s1345_s10 = smov (!%p249_p2), 56  }
   0xb   : > { %v1335_v0 = vmov 0.0   ;;  %v1401_v1 = vld [vmem:[%s1609_s2 + $0x10] sm:$0xff]  ;;  %s1616_s25 = smov (!%p286_p3, %s1162_s25), 1  ;;  %v1410_v2 = vld [vmem:[%s1609_s2 + $0x8] sm:$0xff]  ;;  %vm304_vm0 = vcmask 60416   ;;  %v1418_v3 = vld [vmem:[%s1609_s2] sm:$0xff] }
   0xc   : > { %1233 = vmatprep.subr.mxu0 %v1335_v0  ;;  %1242 = vmatprep.subr.mxu1 %v1335_v0  ;;  %s1167_s30 = sshll.u32 %s1616_s25, 2  ;;  %vm1336_vm1 = vmmov 0   ;;  %v1438_v5 = vld [vmem:[%s1609_s2 + $0x28] sm:$0xff]  ;;  %v1444_v6 = vld [vmem:[%s1609_s2 + $0x20] sm:$0xff]  ;;  %v1451_v7 = vld [vmem:[%s1609_s2 + $0x18] sm:$0xff]  ;;  %vm310_vm2 = vcmask 126016  }
   0xd   : > { %1234 = vmatpush3.msra.mxu0 %v1401_v1  ;;  %s289_s12 = scalar_lea.vmem %s1607_s0, %s1167_s30  ;;  %1239 = vmatprep.mubr.msk.f32.mxu0 %vm1336_vm1, %v1335_v0  ;;  %s293_s29 = scalar_lea.vmem %s1608_s1, %s1167_s30  ;;  %vm315_vm3 = vcmask 191616   ;;  %vm321_vm4 = vcmask 195584   ;;  %v1479_v13 = vld [vmem:[%s1609_s2 + $0x40] sm:$0xff]  ;;  %v1486_v16 = vld [vmem:[%s1609_s2 + $0x38] sm:$0xff]  ;;  %v1497_v17 = vld [vmem:[%s1609_s2 + $0x30] sm:$0xff]  ;;  %vm676_vm5 = vcmask 253952  }
   0xe   : > { %1235 = vmatprep.subr.mxu0 %v1335_v0  ;;  %v302_v4 = vld [vmem:[%s289_s12] sm:$0xf]  ;;  %1248 = vmatprep.mubr.msk.f32.mxu1 %vm1336_vm1, %v1335_v0  ;;  %v1506_v20 = vld [vmem:[%s1609_s2 + $0x58] sm:$0xff]  ;;  %v1181_v23 = vld [vmem:[%s1609_s2 + $0x50] sm:$0xff]  ;;  %s1169_s22 = sshll.u32 %s1616_s25, 3  ;;  %s1346_s25 = smov 8  }
   0xf   : > { %1236 = vmatpush3.msra.mxu0 %v1410_v2  ;;  %307 = vrot.lane.b32.xlu0 %v302_v4, %s1337_s13  ;;  %305 = vst.msk [vmem:[#allocation2] sm:$0xf] %vm304_vm0, %v302_v4  ;;  %v1461_v8 = vld [vmem:[%s293_s29] sm:$0xf]  ;;  %v1180_v24 = vld [vmem:[%s1609_s2 + $0x48] sm:$0xff]  ;;  %s1582_s29 = scalar_lea.vmem %s1613_s6, %s1169_s22  ;;  %s1347_s12 = smov 16  }
  0x10   : > { %1237 = vmatprep.subr.mxu0 %v1335_v0  ;;  %396 = vrot.lane.b32.xlu1 %v302_v4, %s1338_s14  ;;  %v303_v43 = vld [vmem:[%s1611_s4] sm:$0x1]  ;;  %vm674_vm6 = vcmask 257216   ;;  %vm687_vm7 = vcmask 257024  }
  0x11   : > { %1238 = vmatpush3.msra.mxu0 %v1418_v3  ;;  %1243 = vmatpush3.msra.mxu1 %v1438_v5  ;;  %v690_v44 = vld [vmem:[%s1612_s5] sm:$0x1]  ;;  %677 = vst.msk [vmem:[%s1582_s29] sm:$0x1] %vm676_vm5, %v303_v43 }
  0x12   : > { %1251 = vmatprep.subr.mxu0 %v1335_v0  ;;  %1244 = vmatprep.subr.mxu1 %v1335_v0  ;;  %v1184_v62 = vld [vmem:[%s1610_s3] ss:$0 sm:$0xff] }
  0x13   : > { %312 = vrot.lane.b32.xlu0 %v302_v4, %s1339_s17  ;;  %1245 = vmatpush3.msra.mxu1 %v1444_v6 }
  0x14   : > { %400 = vrot.lane.b32.xlu1 %v302_v4, %s1340_s18  ;;  %1246 = vmatprep.subr.mxu1 %v1335_v0 }
  0x15   : > { %1247 = vmatpush3.msra.mxu1 %v1451_v7 }
  0x16   : > { %1260 = vmatprep.subr.mxu1 %v1335_v0 }
  0x17   : > { %404 = vrot.lane.b32.xlu0 %v302_v4, %s1341_s23 }
  0x18   : > { %491 = vrot.lane.b32.xlu1 %v302_v4, %s1342_s26 }
  0x1b   : > { %495 = vrot.lane.b32.xlu0 %v302_v4, %s1343_s8 }
  0x1c   : > { %499 = vrot.lane.b32.xlu1 %v302_v4, %s1344_s9 }
  0x1f   : > { %588 = vrot.lane.b32.xlu0 %v302_v4, %s1345_s10 }
  0x20   : > { %693 = vrot.lane.b32.xlu1 %v1461_v8, %s1337_s13  ;;  %s1348_s13 = smov 24  }
  0x23   : > { %697 = vrot.lane.b32.xlu0 %v1461_v8, %s1339_s17 }
  0x24   : > { %779 = vrot.lane.b32.xlu1 %v1461_v8, %s1338_s14 }
  0x27   : > { %783 = vrot.lane.b32.xlu0 %v1461_v8, %s1340_s18 }
  0x28   : > { %787 = vrot.lane.b32.xlu1 %v1461_v8, %s1341_s23 }
  0x2b   : > { %873 = vrot.lane.b32.xlu0 %v1461_v8, %s1342_s26 }
  0x2c   : > { %877 = vrot.lane.b32.xlu1 %v1461_v8, %s1343_s8 }
  0x2f   : > { %881 = vrot.lane.b32.xlu0 %v1461_v8, %s1344_s9 }
  0x30   : > { %969 = vrot.lane.b32.xlu1 %v1461_v8, %s1345_s10  ;;  %s1587_s10 = scalar_lea.vmem %s1614_s7, %s1169_s22 }
  0x31   : > { %1055 = vst.msk [vmem:[%s1587_s10] sm:$0x1] %vm676_vm5, %v690_v44 }
  0x81   : > { %v308_v9 = vpop.permute.xlu0 %307 }
  0x82   : > { %311 = vst.msk [vmem:[#allocation2] sm:$0xf] %vm310_vm2, %v308_v9  ;;  %v397_v11 = vpop.permute.xlu1 %396 }
  0x85   : > { %v313_v10 = vpop.permute.xlu0 %312 }
  0x86   : > { %316 = vst.msk [vmem:[#allocation2] sm:$0xf] %vm315_vm3, %v313_v10  ;;  %v401_v12 = vpop.permute.xlu1 %400 }
  0x89   : > { %v405_v15 = vpop.permute.xlu0 %404 }
  0x8a   : > { %v492_v18 = vpop.permute.xlu1 %491 }
  0x8d   : > { %v317_v14 = vld [vmem:[#allocation2] sm:$0xf]  ;;  %v496_v19 = vpop.permute.xlu0 %495 }
  0x8e   : > { %399 = vst.msk [vmem:[#allocation2] sm:$0xf] %vm304_vm0, %v397_v11  ;;  %1240 = vmatmul.mubr.msk.f32.vlgmr.msra.gmra.mxu0 %vm321_vm4, %v317_v14  ;;  %v500_v22 = vpop.permute.xlu1 %499 }
  0x8f   : > { %403 = vst.msk [vmem:[#allocation2] sm:$0xf] %vm310_vm2, %v401_v12  ;;  %1252 = vmatpush3.msra.mxu0 %v1479_v13  ;;  %1257 = vmatprep.mubr.msk.f32.mxu0 %vm1336_vm1, %v1335_v0 }
  0x90   : > { %407 = vst.msk [vmem:[#allocation2] sm:$0xf] %vm315_vm3, %v405_v15  ;;  %1253 = vmatprep.subr.mxu0 %v1335_v0 }
  0x91   : > { %1254 = vmatpush3.msra.mxu0 %v1486_v16  ;;  %v589_v26 = vpop.permute.xlu0 %588 }
  0x92   : > { %1255 = vmatprep.subr.mxu0 %v1335_v0  ;;  %v694_v27 = vpop.permute.xlu1 %693 }
  0x93   : > { %1256 = vmatpush3.msra.mxu0 %v1497_v17 }
  0x94   : > { %1269 = vmatprep.subr.mxu0 %v1335_v0 }
  0x95   : > { %v698_v29 = vpop.permute.xlu0 %697 }
  0x96   : > { %v780_v30 = vpop.permute.xlu1 %779 }
  0x97   : > { %v408_v21 = vld [vmem:[#allocation2] sm:$0xf] }
  0x98   : > { %494 = vst.msk [vmem:[#allocation2] sm:$0xf] %vm304_vm0, %v492_v18  ;;  %1249 = vmatmul.mubr.msk.f32.vlgmr.msra.gmra.mxu1 %vm321_vm4, %v408_v21 }
  0x99   : > { %498 = vst.msk [vmem:[#allocation2] sm:$0xf] %vm310_vm2, %v496_v19  ;;  %1261 = vmatpush3.msra.mxu1 %v1506_v20  ;;  %1266 = vmatprep.mubr.msk.f32.mxu1 %vm1336_vm1, %v1335_v0  ;;  %v784_v31 = vpop.permute.xlu0 %783 }
  0x9a   : > { %502 = vst.msk [vmem:[#allocation2] sm:$0xf] %vm315_vm3, %v500_v22  ;;  %1262 = vmatprep.subr.mxu1 %v1335_v0  ;;  %v788_v33 = vpop.permute.xlu1 %787 }
  0x9b   : > { %1263 = vmatpush3.msra.mxu1 %v1181_v23 }
  0x9c   : > { %1264 = vmatprep.subr.mxu1 %v1335_v0 }
  0x9d   : > { %1265 = vmatpush3.msra.mxu1 %v1180_v24  ;;  %v874_v34 = vpop.permute.xlu0 %873 }
  0x9e   : > { %1278 = vmatprep.subr.mxu1 %v1335_v0  ;;  %v878_v35 = vpop.permute.xlu1 %877 }
  0xa1   : > { %v503_v25 = vld [vmem:[#allocation2] sm:$0xf]  ;;  %v882_v37 = vpop.permute.xlu0 %881 }
  0xa2   : > { %586 = vst.msk [vmem:[#allocation2] sm:$0xf] %vm304_vm0, %v308_v9  ;;  %1258 = vmatmul.mubr.msk.f32.vlgmr.msra.gmra.mxu0 %vm321_vm4, %v503_v25  ;;  %v970_v39 = vpop.permute.xlu1 %969 }
  0xa3   : > { %587 = vst.msk [vmem:[#allocation2] sm:$0xf] %vm310_vm2, %v313_v10  ;;  %1270 = vmatpush3.msra.mxu0 %v1401_v1  ;;  %1275 = vmatprep.mubr.msk.f32.mxu0 %vm1336_vm1, %v1335_v0 }
  0xa4   : > { %591 = vst.msk [vmem:[#allocation2] sm:$0xf] %vm315_vm3, %v589_v26  ;;  %1271 = vmatprep.subr.mxu0 %v1335_v0 }
  0xa5   : > { %1272 = vmatpush3.msra.mxu0 %v1410_v2 }
  0xa6   : > { %1273 = vmatprep.subr.mxu0 %v1335_v0 }
  0xa7   : > { %1274 = vmatpush3.msra.mxu0 %v1418_v3 }
  0xa8   : > { %1287 = vmatprep.subr.mxu0 %v1335_v0 }
  0xab   : > { %v592_v28 = vld [vmem:[#allocation2] sm:$0xf] }
  0xac   : > { %691 = vst.msk [vmem:[#allocation2] sm:$0xf] %vm304_vm0, %v1461_v8  ;;  %1267 = vmatmul.mubr.msk.f32.vlgmr.msra.gmra.mxu1 %vm321_vm4, %v592_v28 }
  0xad   : > { %696 = vst.msk [vmem:[#allocation2] sm:$0xf] %vm310_vm2, %v694_v27  ;;  %1279 = vmatpush3.msra.mxu1 %v1438_v5  ;;  %1284 = vmatprep.mubr.msk.f32.mxu1 %vm1336_vm1, %v1335_v0 }
  0xae   : > { %700 = vst.msk [vmem:[#allocation2] sm:$0xf] %vm315_vm3, %v698_v29  ;;  %1280 = vmatprep.subr.mxu1 %v1335_v0 }
  0xaf   : > { %1281 = vmatpush3.msra.mxu1 %v1444_v6 }
  0xb0   : > { %1282 = vmatprep.subr.mxu1 %v1335_v0 }
  0xb1   : > { %1283 = vmatpush3.msra.mxu1 %v1451_v7 }
  0xb2   : > { %1296 = vmatprep.subr.mxu1 %v1335_v0 }
  0xb5   : > { %v701_v32 = vld [vmem:[#allocation2] sm:$0xf] }
  0xb6   : > { %782 = vst.msk [vmem:[#allocation2] sm:$0xf] %vm304_vm0, %v780_v30  ;;  %1276 = vmatmul.mubr.msk.f32.vlgmr.msra.gmra.mxu0 %vm321_vm4, %v701_v32 }
  0xb7   : > { %786 = vst.msk [vmem:[#allocation2] sm:$0xf] %vm310_vm2, %v784_v31  ;;  %1288 = vmatpush3.msra.mxu0 %v1479_v13  ;;  %1293 = vmatprep.mubr.msk.f32.mxu0 %vm1336_vm1, %v1335_v0 }
  0xb8   : > { %790 = vst.msk [vmem:[#allocation2] sm:$0xf] %vm315_vm3, %v788_v33  ;;  %1289 = vmatprep.subr.mxu0 %v1335_v0 }
  0xb9   : > { %1290 = vmatpush3.msra.mxu0 %v1486_v16 }
  0xba   : > { %1291 = vmatprep.subr.mxu0 %v1335_v0 }
  0xbb   : > { %1292 = vmatpush3.msra.mxu0 %v1497_v17 }
  0xbf   : > { %v791_v36 = vld [vmem:[#allocation2] sm:$0xf] }
  0xc0   : > { %1285 = vmatmul.mubr.msk.f32.vlgmr.msra.gmra.mxu1 %vm321_vm4, %v791_v36  ;;  %876 = vst.msk [vmem:[#allocation2] sm:$0xf] %vm304_vm0, %v874_v34 }
  0xc1   : > { %880 = vst.msk [vmem:[#allocation2] sm:$0xf] %vm310_vm2, %v878_v35  ;;  %1297 = vmatpush3.msra.mxu1 %v1506_v20  ;;  %1302 = vmatprep.mubr.msk.f32.mxu1 %vm1336_vm1, %v1335_v0 }
  0xc2   : > { %884 = vst.msk [vmem:[#allocation2] sm:$0xf] %vm315_vm3, %v882_v37  ;;  %1298 = vmatprep.subr.mxu1 %v1335_v0 }
  0xc3   : > { %1299 = vmatpush3.msra.mxu1 %v1181_v23 }
  0xc4   : > { %1300 = vmatprep.subr.mxu1 %v1335_v0 }
  0xc5   : > { %1301 = vmatpush3.msra.mxu1 %v1180_v24 }
  0xc9   : > { %v885_v38 = vld [vmem:[#allocation2] sm:$0xf] }
  0xca   : > { %1294 = vmatmul.mubr.msk.f32.vlgmr.msra.gmra.mxu0 %vm321_vm4, %v885_v38  ;;  %967 = vst.msk [vmem:[#allocation2] sm:$0xf] %vm304_vm0, %v694_v27 }
  0xcb   : > { %968 = vst.msk [vmem:[#allocation2] sm:$0xf] %vm310_vm2, %v698_v29 }
  0xcc   : > { %972 = vst.msk [vmem:[#allocation2] sm:$0xf] %vm315_vm3, %v970_v39 }
  0xd3   : > { %v973_v40 = vld [vmem:[#allocation2] sm:$0xf] }
  0xd4   : > { %1303 = vmatmul.mubr.msk.f32.vlgmr.msra.gmra.mxu1 %vm321_vm4, %v973_v40 }
 0x14e   : > { %v391_v41 = vpop.f32.mrf.mxu0 }
 0x14f   : > { %395 = vst.msk [vmem:[#allocation3] sm:$0xf] %vm304_vm0, %v391_v41 }
 0x150   : > { %v1241_v42 = vpop.f32.mrf.mxu0 }
 0x158   : > { %v482_v45 = vpop.f32.mrf.mxu1 }
 0x159   : > { %487 = vrot.lane.b32.xlu0 %v482_v45, %s1346_s25 }
 0x15a   : > { %v1250_v46 = vpop.f32.mrf.mxu1 }
 0x162   : > { %v577_v47 = vpop.f32.mrf.mxu0 }
 0x163   : > { %582 = vrot.lane.b32.xlu1 %v577_v47, %s1347_s12 }
 0x164   : > { %v1259_v48 = vpop.f32.mrf.mxu0 }
 0x16c   : > { %v666_v49 = vpop.f32.mrf.mxu1 }
 0x16d   : > { %671 = vrot.lane.b32.xlu0 %v666_v49, %s1348_s13 }
 0x16e   : > { %v1268_v50 = vpop.f32.mrf.mxu1 }
 0x176   : > { %v774_v51 = vpop.f32.mrf.mxu0 }
 0x178   : > { %v1277_v52 = vpop.f32.mrf.mxu0 }
 0x180   : > { %v864_v53 = vpop.f32.mrf.mxu1 }
 0x181   : > { %869 = vrot.lane.b32.xlu1 %v864_v53, %s1346_s25 }
 0x182   : > { %v1286_v54 = vpop.f32.mrf.mxu1 }
 0x18a   : > { %v958_v55 = vpop.f32.mrf.mxu0 }
 0x18b   : > { %963 = vrot.lane.b32.xlu0 %v958_v55, %s1347_s12 }
 0x18c   : > { %v1295_v56 = vpop.f32.mrf.mxu0 }
 0x194   : > { %v1046_v57 = vpop.f32.mrf.mxu1 }
 0x195   : > { %1051 = vrot.lane.b32.xlu1 %v1046_v57, %s1348_s13 }
 0x196   : > { %v1304_v58 = vpop.f32.mrf.mxu1 }
 0x1cb   : > { %v488_v59 = vpop.permute.xlu0 %487 }
 0x1cc   : > { %490 = vst.msk [vmem:[#allocation3] sm:$0xf] %vm310_vm2, %v488_v59 }
 0x1d5   : > { %v583_v60 = vpop.permute.xlu1 %582 }
 0x1d6   : > { %585 = vst.msk [vmem:[#allocation3] sm:$0xf] %vm315_vm3, %v583_v60 }
 0x1df   : > { %v672_v61 = vpop.permute.xlu0 %671 }
 0x1e0   : > { %675 = vst.msk [vmem:[#allocation3] sm:$0xf] %vm674_vm6, %v672_v61 }
 0x1e7   : > { %v678_v63 = vld [vmem:[#allocation3] sm:$0xf] }
 0x1e8   : > { %v686_v0 = vadd.f32 %v1184_v62, %v678_v63  ;;  %778 = vst.msk [vmem:[#allocation3] sm:$0xf] %vm304_vm0, %v774_v51 }
 0x1ea   : > { %688 = vst.msk [vmem:[%s1582_s29 + $0x1] sm:$0xf] %vm687_vm7, %v686_v0 }
 0x1f3   : > { %v870_v1 = vpop.permute.xlu1 %869 }
 0x1f4   : > { %872 = vst.msk [vmem:[#allocation3] sm:$0xf] %vm310_vm2, %v870_v1 }
 0x1fd   : > { %v964_v2 = vpop.permute.xlu0 %963 }
 0x1fe   : > { %966 = vst.msk [vmem:[#allocation3] sm:$0xf] %vm315_vm3, %v964_v2 }
 0x207   : > { %v1052_v3 = vpop.permute.xlu1 %1051 }
 0x208   : > { %1054 = vst.msk [vmem:[#allocation3] sm:$0xf] %vm674_vm6, %v1052_v3 }
 0x20f   : > { %v1056_v4 = vld [vmem:[#allocation3] sm:$0xf] }
 0x210   : > { %v1064_v5 = vadd.f32 %v1184_v62, %v1056_v4 }
 0x212   : > { %1065 = vst.msk [vmem:[%s1587_s10 + $0x1] sm:$0xf] %vm687_vm7, %v1064_v5 }
 0x213 PF: > { %s18_s24 = sadd.s32 1, %s1333_s24  }
 0x214   : > { %p15_p4 = scmp.ge.s32.totalorder %s18_s24, 4  }
 0x216   :  { %17 = sbr.rel (!%p15_p4) target bundleno = 1 (0x1), region = 92 }

// kernel: transformer_decoder_forward.19
= control target key start
LH: loop header
LB: loop body
LE: loop exit
PB: predicated region body
PF: predicated region fallthrough
CT: control target
= control target key end

     0   :  { %vm18_vm0 = vcmask 130048   ;;  %v190_v0 = vmov 0.0   ;;  %vm32_vm1 = vcmask 261120   ;;  %vm191_vm2 = vmmov 0   ;;  %s254_s1 = inlined_call_operand.vmem [shape: f32[32,16], index: 1, kind: input, shape index: {}]   ;;  %s255_s0 = inlined_call_operand.vmem [shape: f32[24,32], index: 0, kind: input, shape index: {}]   ;;  %s256_s2 = inlined_call_operand.vmem [shape: f32[1,16], index: 2, kind: input, shape index: {}]   ;;  %s257_s3 = inlined_call_operand.vmem [shape: f32[24,16], index: 3, kind: output, shape index: {}]  }
   0x1   :  { %180 = vmatprep.subr.mxu1 %v190_v0  ;;  %v31_v1 = vld [vmem:[%s254_s1 + $0x18] sm:$0xff]  ;;  %163 = vmatprep.subr.mxu0 %v190_v0  ;;  %v30_v2 = vld [vmem:[%s254_s1 + $0x10] sm:$0xff]  ;;  %20 = vst.msk [vmem:[#allocation2 + $0x8] sm:$0xff] %vm18_vm0, %v190_v0  ;;  %19 = vst.msk [vmem:[#allocation2] sm:$0xff] %vm18_vm0, %v190_v0 }
   0x2   :  { %21 = vst.msk [vmem:[#allocation2 + $0x10] sm:$0xff] %vm18_vm0, %v190_v0  ;;  %184 = vmatpush3.msra.mxu1 %v31_v1  ;;  %164 = vmatpush3.msra.mxu0 %v31_v1  ;;  %v29_v3 = vld [vmem:[%s254_s1 + $0x8] sm:$0xff]  ;;  %v28_v4 = vld [vmem:[%s254_s1] sm:$0xff]  ;;  %v27_v7 = vld [vmem:[%s255_s0 + $0x10] sm:$0xff] }
   0x3   :  { %181 = vmatprep.subr.mxu1 %v190_v0  ;;  %165 = vmatprep.subr.mxu0 %v190_v0  ;;  %v26_v5 = vld [vmem:[%s255_s0 + $0x8] sm:$0xff]  ;;  %v25_v6 = vld [vmem:[%s255_s0] sm:$0xff] }
   0x4   :  { %185 = vmatpush3.msra.mxu1 %v30_v2  ;;  %166 = vmatpush3.msra.mxu0 %v30_v2  ;;  %v155_v20 = vld [vmem:[%s256_s2] ss:$0 sm:$0xff] }
   0x5   :  { %182 = vmatprep.subr.mxu1 %v190_v0  ;;  %167 = vmatprep.subr.mxu0 %v190_v0 }
   0x6   :  { %186 = vmatpush3.msra.mxu1 %v29_v3  ;;  %168 = vmatpush3.msra.mxu0 %v29_v3 }
   0x7   :  { %183 = vmatprep.subr.mxu1 %v190_v0  ;;  %174 = vmatprep.mubr.msk.f32.mxu1 %vm191_vm2, %v190_v0 }
   0x8   :  { %187 = vmatpush3.msra.mxu1 %v28_v4  ;;  %169 = vmatprep.subr.mxu0 %v190_v0  ;;  %v23_v8 = vld [vmem:[#allocation2 + $0x8] sm:$0xff]  ;;  %v22_v10 = vld [vmem:[#allocation2] sm:$0xff] }
   0x9   :  { %175 = vmatmul.mubr.msk.f32.vlgmr.msra.gmra.mxu1 %vm32_vm1, %v26_v5  ;;  %170 = vmatpush3.msra.mxu0 %v28_v4  ;;  %v24_v14 = vld [vmem:[#allocation2 + $0x10] sm:$0xff] }
   0xa   :  { %171 = vmatprep.mubr.msk.f32.mxu0 %vm191_vm2, %v190_v0  ;;  %177 = vmatprep.mubr.msk.f32.mxu1 %vm191_vm2, %v190_v0 }
   0xb   :  { %172 = vmatmul.mubr.msk.f32.vlgmr.msra.gmra.mxu0 %vm32_vm1, %v25_v6 }
   0xd   :  { %178 = vmatmul.mubr.msk.f32.gmra.mxu1 %vm32_vm1, %v27_v7 }
  0xc9   :  { %v113_v9 = vpop.f32.mrf.mxu1 }
  0xca   :  { %v123_v11 = vadd.f32 %v113_v9, %v23_v8 }
  0xcb   :  { %v108_v12 = vpop.f32.mrf.mxu0  ;;  %v176_v13 = vpop.f32.mrf.mxu1 }
  0xcc   :  { %127 = vst.msk [vmem:[#allocation2 + $0x8] sm:$0xff] %vm18_vm0, %v123_v11  ;;  %v122_v15 = vadd.f32 %v108_v12, %v22_v10 }
  0xcd   :  { %v173_v16 = vpop.f32.mrf.mxu0  ;;  %v118_v17 = vpop.f32.mrf.mxu1 }
  0xce   :  { %126 = vst.msk [vmem:[#allocation2] sm:$0xff] %vm18_vm0, %v122_v15  ;;  %v124_v18 = vadd.f32 %v118_v17, %v24_v14 }
  0xcf   :  { %v179_v19 = vpop.f32.mrf.mxu1 }
  0xd0   :  { %128 = vst.msk [vmem:[#allocation2 + $0x10] sm:$0xff] %vm18_vm0, %v124_v18 }
  0xd3   :  { %v133_v21 = vld [vmem:[#allocation2 + $0x8] sm:$0xff] }
  0xd4   :  { %v143_v22 = vadd.f32 %v155_v20, %v133_v21 }
  0xd5   :  { %v132_v23 = vld [vmem:[#allocation2] sm:$0xff] }
  0xd6   :  { %146 = vst.msk [vmem:[%s257_s3 + $0x8] sm:$0xff] %vm18_vm0, %v143_v22  ;;  %v142_v24 = vadd.f32 %v155_v20, %v132_v23 }
  0xd7   :  { %v134_v25 = vld [vmem:[#allocation2 + $0x10] sm:$0xff] }
  0xd8   :  { %145 = vst.msk [vmem:[%s257_s3] sm:$0xff] %vm18_vm0, %v142_v24  ;;  %v144_v26 = vadd.f32 %v155_v20, %v134_v25 }
  0xda   :  { %147 = vst.msk [vmem:[%s257_s3 + $0x10] sm:$0xff] %vm18_vm0, %v144_v26 }

// kernel: transformer_decoder_forward.13
= control target key start
LH: loop header
LB: loop body
LE: loop exit
PB: predicated region body
PF: predicated region fallthrough
CT: control target
= control target key end

     0   :  { %s1821_s27 = smov 0   ;;  %s1823_s28 = smov 0   ;;  %s1978_s0 = inlined_call_operand.vmem [shape: f32[2,12,32], index: 0, kind: input, shape index: {}]   ;;  %s1979_s1 = inlined_call_operand.vmem [shape: f32[2,5,32], index: 1, kind: input, shape index: {}]   ;;  %s1980_s2 = inlined_call_operand.vmem [shape: f32[2,5,32], index: 2, kind: input, shape index: {}]   ;;  %s1981_s3 = inlined_call_operand.vmem [shape: f32[2,12,32], index: 3, kind: input, shape index: {}]   ;;  %s1982_s4 = inlined_call_operand.vmem [shape: f32[32,32], index: 4, kind: input, shape index: {}]   ;;  %s1983_s5 = inlined_call_operand.vmem [shape: f32[1,32], index: 5, kind: input, shape index: {}]   ;;  %s1984_s6 = inlined_call_operand.vmem [shape: f32[1,32], index: 6, kind: input, shape index: {}]   ;;  %s1985_s7 = inlined_call_operand.vmem [shape: f32[1,32], index: 7, kind: input, shape index: {}]   ;;  %s1986_s8 = inlined_call_operand.vmem [shape: f32[2,12,32], index: 8, kind: output, shape index: {}]  }
   0x1   :  { %s1825_s29 = smov 0  }
   0x2 LB: > { %s30_s30 = sadd.s32 1, %s1764_s28  ;;  %p1551_p0 = scmp.ge.s32.totalorder %s1768_s29, 1  ;;  %s1768_s29 = sphi %s1825_s29, %s18_s29   ;;  %s1764_s28 = sphi %s1823_s28, %s1988_s28   ;;  %s1760_s27 = sphi %s1821_s27, %s1987_s27  }
   0x3   : > { %p32_p1 = scmp.ge.s32.totalorder %s30_s30, 2  ;;  %p318_p2 = scmp.lt.s32.totalorder %s1768_s29, 3 }
   0x5   : > { %s1990_s30 = smov (%p32_p1, %s30_s30), 0  ;;  %p319_p3 = pnand %p1551_p0, %p318_p2 }
   0x6   : > { %p378_p4 = scmp.lt.s32.totalorder (!%p319_p3), %s1760_s27, 1  ;;  %s1770_s17 = smov (!%p319_p3), 120  }
   0x7   : > { %322 = sbr.rel (%p319_p3) target bundleno = 1503 (0x5df), region = 52  ;;  %s1771_s18 = smov (!%p319_p3), 112  }
   0x8   : > { %s1772_s19 = smov (!%p319_p3), 104   ;;  %s1773_s23 = smov (!%p319_p3), 8  }
   0x9   : > { %s1774_s12 = smov (!%p319_p3), 16   ;;  %s1775_s15 = smov (!%p319_p3), 24  }
   0xc   : > { %s1992_s27 = smov (!%p378_p4, %s1760_s27), 1  ;;  %vm436_vm0 = vcmask 64512   ;;  %v422_v12 = vlaneseq  ;;  %vm527_vm3 = vcmask 35840   ;;  %vm523_vm5 = vcmask 39936  }
   0xd   : > { %s1554_s9 = sshll.u32 %s1992_s27, 3  ;;  %s1843_s10 = sshll.u32 %s1992_s27, 4  ;;  %vm553_vm6 = vcmask 1044480   ;;  %vm633_vm7 = vcmask 60416   ;;  %vm841_vm8 = vcmask 126016   ;;  %vm839_vm9 = vcmask 130112  }
   0xe   : > { %s390_s13 = scalar_lea.vmem %s1979_s1, %s1554_s9  ;;  %s385_s16 = scalar_lea.vmem %s1978_s0, %s1843_s10  ;;  %v429_v13 = vand.u32 127, %v422_v12  ;;  %v423_v16 = vshrl.u32 %v422_v12, 7  ;;  %vm1049_vm10 = vcmask 191616   ;;  %vm1047_vm11 = vcmask 195712  }
   0xf   : > { %v417_v0 = vld [vmem:[%s390_s13] sm:$0x1f]  ;;  %v416_v1 = vld [vmem:[%s385_s16 + $0x8] sm:$0xf]  ;;  %s394_s22 = scalar_lea.vmem %s1980_s2, %s1554_s9  ;;  %vm1257_vm12 = vcmask 257216   ;;  %vm1255_vm13 = vcmask 261312   ;;  %s413_s27 = scalar_lea.vmem %s1986_s8, %s1843_s10 }
  0x10   : > { %v415_v2 = vld [vmem:[%s385_s16] sm:$0xff]  ;;  %639 = vrot.lane.b32.xlu0 %v417_v0, %s1770_s17  ;;  %1625 = vmatprep.subr.msk.mxu0 %vm436_vm0, %v417_v0  ;;  %v430_v14 = vmul.u32 3, %v429_v13  ;;  %v424_v17 = vadd.s32 8, %v423_v16  ;;  %vm1272_vm14 = vcmask 261120   ;;  %vm1359_vm15 = vcmask 257024  }
  0x11   : > { %1626 = vmatpush3.xpose.msk.msra.mxu0 %vm436_vm0, %v417_v0  ;;  %637 = vrot.lane.b32.xlu1 %v416_v1, %s1770_s17  ;;  %v418_v53 = vld [vmem:[%s394_s22] sm:$0x1f] }
  0x12   : > { %1627 = vmatprep.mubr.msk.f32.mxu0 %vm436_vm0, %v415_v2  ;;  %v1560_v15 = vadd.s32 4294967295, %v430_v14  ;;  %1630 = vmatprep.subr.msk.mxu0 %vm553_vm6, %v418_v53 }
  0x14   : > { %635 = vrot.lane.b32.xlu0 %v415_v2, %s1770_s17  ;;  %1628 = vmatmul.mubr.msk.f32.vlgmr.msra.gmra.mxu0 %vm436_vm0, %v416_v1  ;;  %vm432_vm1 = vcmp.gt.s32.totalorder %v1560_v15, 0 }
  0x15   : > { %847 = vrot.lane.b32.xlu1 %v417_v0, %s1771_s18  ;;  %v433_v18 = vsel %vm432_vm1, %v1560_v15, 0  ;;  %1631 = vmatpush3.msk.msra.mxu0 %vm553_vm6, %v418_v53 }
  0x16   : > { %vm435_vm2 = vcmp.lt.s32.totalorder %v424_v17, %v433_v18  ;;  %vm434_vm4 = vcmp.lt.s32.totalorder %v423_v16, %v433_v18 }
  0x18   : > { %843 = vrot.lane.b32.xlu0 %v415_v2, %s1771_s18 }
  0x19   : > { %845 = vrot.lane.b32.xlu1 %v416_v1, %s1771_s18 }
  0x1c   : > { %1055 = vrot.lane.b32.xlu0 %v417_v0, %s1772_s19 }
  0x1d   : > { %1051 = vrot.lane.b32.xlu1 %v415_v2, %s1772_s19 }
  0x20   : > { %1053 = vrot.lane.b32.xlu0 %v416_v1, %s1772_s19 }
  0x82   : > { %v640_v3 = vpop.permute.xlu0 %639 }
  0x83   : > { %1635 = vmatprep.subr.msk.mxu1 %vm436_vm0, %v640_v3  ;;  %v638_v4 = vpop.permute.xlu1 %637 }
  0x84   : > { %1636 = vmatpush3.xpose.msk.msra.mxu1 %vm436_vm0, %v640_v3 }
  0x86   : > { %v636_v5 = vpop.permute.xlu0 %635 }
  0x87   : > { %v848_v6 = vpop.permute.xlu1 %847  ;;  %1637 = vmatprep.mubr.msk.f32.mxu1 %vm436_vm0, %v636_v5 }
  0x88   : > { %1638 = vmatmul.mubr.msk.f32.vlgmr.msra.gmra.mxu1 %vm436_vm0, %v638_v4  ;;  %1645 = vmatprep.subr.msk.mxu1 %vm436_vm0, %v848_v6 }
  0x89   : > { %1646 = vmatpush3.xpose.msk.msra.mxu1 %vm436_vm0, %v848_v6 }
  0x8a   : > { %v844_v7 = vpop.permute.xlu0 %843 }
  0x8b   : > { %v846_v8 = vpop.permute.xlu1 %845  ;;  %1647 = vmatprep.mubr.msk.f32.mxu1 %vm436_vm0, %v844_v7 }
  0x8c   : > { %1648 = vmatmul.mubr.msk.f32.vlgmr.msra.gmra.mxu1 %vm436_vm0, %v846_v8 }
  0x8e   : > { %v1056_v9 = vpop.permute.xlu0 %1055 }
  0x8f   : > { %1655 = vmatprep.subr.msk.mxu1 %vm436_vm0, %v1056_v9  ;;  %v1052_v10 = vpop.permute.xlu1 %1051 }
  0x90   : > { %1656 = vmatpush3.xpose.msk.msra.mxu1 %vm436_vm0, %v1056_v9  ;;  %1657 = vmatprep.mubr.msk.f32.mxu1 %vm436_vm0, %v1052_v10 }
  0x92   : > { %v1054_v11 = vpop.permute.xlu0 %1053 }
  0x93   : > { %1658 = vmatmul.mubr.msk.f32.vlgmr.msra.gmra.mxu1 %vm436_vm0, %v1054_v11 }
  0xd4   : > { %v1629_v19 = vpop.f32.mrf.mxu0 }
  0xd5   : > { %v522_v20 = vsel %vm435_vm2, -inf, %v1629_v19 }
  0xd6   : > { %v512_v21 = vpop.f32.mrf.mxu0  ;;  %v528_v22 = vsel %vm527_vm3, %v522_v20, -inf }
  0xd7   : > { %v521_v23 = vsel %vm434_vm4, -inf, %v512_v21  ;;  %529 = vmax.xlane.f32.xlu0 %v528_v22 }
  0xd8   : > { %v524_v24 = vsel %vm523_vm5, %v521_v23, -inf }
  0xd9   : > { %525 = vmax.xlane.f32.xlu1 %v524_v24 }
 0x148   : > { %v1639_v25 = vpop.f32.mrf.mxu1 }
 0x149   : > { %v723_v26 = vsel %vm435_vm2, -inf, %v1639_v25 }
 0x14a   : > { %v713_v27 = vpop.f32.mrf.mxu1  ;;  %v727_v28 = vsel %vm527_vm3, %v723_v26, -inf }
 0x14b   : > { %v722_v29 = vsel %vm434_vm4, -inf, %v713_v27  ;;  %728 = vmax.xlane.f32.xlu1 %v727_v28 }
 0x14c   : > { %v1649_v30 = vpop.f32.mrf.mxu1  ;;  %v724_v31 = vsel %vm523_vm5, %v722_v29, -inf }
 0x14d   : > { %v931_v32 = vsel %vm435_vm2, -inf, %v1649_v30  ;;  %725 = vmax.xlane.f32.xlu0 %v724_v31 }
 0x14e   : > { %v921_v33 = vpop.f32.mrf.mxu1  ;;  %v935_v34 = vsel %vm527_vm3, %v931_v32, -inf }
 0x14f   : > { %v930_v35 = vsel %vm434_vm4, -inf, %v921_v33  ;;  %936 = vmax.xlane.f32.xlu1 %v935_v34 }
 0x150   : > { %v932_v36 = vsel %vm523_vm5, %v930_v35, -inf }
 0x151   : > { %933 = vmax.xlane.f32.xlu0 %v932_v36 }
 0x153   : > { %v1659_v37 = vpop.f32.mrf.mxu1 }
 0x154   : > { %v1139_v38 = vsel %vm435_vm2, -inf, %v1659_v37 }
 0x155   : > { %v1129_v39 = vpop.f32.mrf.mxu1  ;;  %v1143_v40 = vsel %vm527_vm3, %v1139_v38, -inf }
 0x156   : > { %v1138_v41 = vsel %vm434_vm4, -inf, %v1129_v39  ;;  %1144 = vmax.xlane.f32.xlu1 %v1143_v40 }
 0x157   : > { %v1140_v42 = vsel %vm523_vm5, %v1138_v41, -inf }
 0x158   : > { %1141 = vmax.xlane.f32.xlu0 %v1140_v42 }
 0x160   : > { %v530_v43 = vpop.xlane.xlu0 %529 }
 0x161   : > { %v532_v44 = vsub.f32 %v522_v20, %v530_v43 }
 0x162   : > { %v526_v45 = vpop.xlane.xlu1 %525 }
 0x163   : > { %v535_v46 = vmul.f32 1.442695, %v532_v44  ;;  %v531_v47 = vsub.f32 %v521_v23, %v526_v45 }
 0x165   : > { %1706 = vpow2.f32 %v535_v46  ;;  %v533_v48 = vmul.f32 1.442695, %v531_v47 }
 0x167   : > { %1708 = vpow2.f32 %v533_v48 }
 0x172   : > { %v1895_v49 = vpop.eup %1706 }
 0x173   : > { %v540_v50 = vsel %vm527_vm3, %v1895_v49, 0.0 }
 0x174   : > { %v1709_v51 = vpop.eup %1708  ;;  %541 = vadd.xlane.f32.xlu1 %v540_v50  ;;  %v1264_v50 = vld [vmem:[%s1982_s4 + $0x18] sm:$0xff] }
 0x175   : > { %v537_v52 = vsel %vm523_vm5, %v1709_v51, 0.0  ;;  %1665 = vmatprep.subr.mxu1 %v1264_v50 }
 0x176   : > { %538 = vadd.xlane.f32.xlu0 %v537_v52  ;;  %1666 = vmatpush3.msra.mxu1 %v1264_v50 }
 0x1d4   : > { %v729_v54 = vpop.xlane.xlu1 %728 }
 0x1d5   : > { %v731_v55 = vsub.f32 %v723_v26, %v729_v54 }
 0x1d6   : > { %v726_v56 = vpop.xlane.xlu0 %725 }
 0x1d7   : > { %v734_v57 = vmul.f32 1.442695, %v731_v55  ;;  %v730_v58 = vsub.f32 %v722_v29, %v726_v56  ;;  %v1261_v55 = vld [vmem:[%s1982_s4] sm:$0xff] }
 0x1d8   : > { %v937_v59 = vpop.xlane.xlu1 %936 }
 0x1d9   : > { %1710 = vpow2.f32 %v734_v57  ;;  %v732_v60 = vmul.f32 1.442695, %v730_v58  ;;  %v939_v61 = vsub.f32 %v931_v32, %v937_v59 }
 0x1da   : > { %v934_v62 = vpop.xlane.xlu0 %933 }
 0x1db   : > { %1712 = vpow2.f32 %v732_v60  ;;  %v942_v63 = vmul.f32 1.442695, %v939_v61  ;;  %v938_v0 = vsub.f32 %v930_v35, %v934_v62 }
 0x1dd   : > { %1714 = vpow2.f32 %v942_v63  ;;  %v940_v1 = vmul.f32 1.442695, %v938_v0 }
 0x1df   : > { %1716 = vpow2.f32 %v940_v1  ;;  %v1145_v2 = vpop.xlane.xlu1 %1144 }
 0x1e0   : > { %v1147_v3 = vsub.f32 %v1139_v38, %v1145_v2 }
 0x1e1   : > { %v1142_v4 = vpop.xlane.xlu0 %1141 }
 0x1e2   : > { %v1150_v5 = vmul.f32 1.442695, %v1147_v3  ;;  %v1146_v6 = vsub.f32 %v1138_v41, %v1142_v4  ;;  %v1585_v3 = vld [vmem:[%s1983_s5] ss:$0 sm:$0xff] }
 0x1e4   : > { %1718 = vpow2.f32 %v1150_v5  ;;  %v1148_v7 = vmul.f32 1.442695, %v1146_v6 }
 0x1e6   : > { %v1711_v8 = vpop.eup %1710  ;;  %1720 = vpow2.f32 %v1148_v7 }
 0x1e7   : > { %v739_v9 = vsel %vm527_vm3, %v1711_v8, 0.0 }
 0x1e8   : > { %v1713_v10 = vpop.eup %1712  ;;  %740 = vadd.xlane.f32.xlu1 %v739_v9 }
 0x1e9   : > { %v736_v11 = vsel %vm523_vm5, %v1713_v10, 0.0 }
 0x1ea   : > { %v1715_v12 = vpop.eup %1714  ;;  %737 = vadd.xlane.f32.xlu0 %v736_v11 }
 0x1eb   : > { %v947_v13 = vsel %vm527_vm3, %v1715_v12, 0.0 }
 0x1ec   : > { %v1717_v14 = vpop.eup %1716  ;;  %948 = vadd.xlane.f32.xlu1 %v947_v13 }
 0x1ed   : > { %v944_v15 = vsel %vm523_vm5, %v1717_v14, 0.0 }
 0x1ee   : > { %945 = vadd.xlane.f32.xlu0 %v944_v15 }
 0x1f1   : > { %v1719_v16 = vpop.eup %1718 }
 0x1f2   : > { %v1155_v17 = vsel %vm527_vm3, %v1719_v16, 0.0 }
 0x1f3   : > { %v1721_v18 = vpop.eup %1720  ;;  %1156 = vadd.xlane.f32.xlu1 %v1155_v17 }
 0x1f4   : > { %v1152_v19 = vsel %vm523_vm5, %v1721_v18, 0.0 }
 0x1f5   : > { %1153 = vadd.xlane.f32.xlu0 %v1152_v19 }
 0x1fd   : > { %v542_v20 = vpop.xlane.xlu1 %541 }
 0x1fe   : > { %1722 = vrcp.f32 %v542_v20 }
 0x1ff   : > { %v539_v21 = vpop.xlane.xlu0 %538 }
 0x200   : > { %1724 = vrcp.f32 %v539_v21 }
 0x204   : > { %954 = vrot.lane.b32.xlu1 %v418_v53, %s1771_s18  ;;  %s403_s18 = scalar_lea.vmem %s1981_s3, %s1843_s10 }
 0x205   : > { %v420_v5 = vld [vmem:[%s403_s18 + $0x8] sm:$0xf] }
 0x208   : > { %1162 = vrot.lane.b32.xlu1 %v418_v53, %s1772_s19 }
 0x20b   : > { %746 = vrot.lane.b32.xlu0 %v418_v53, %s1770_s17  ;;  %v1723_v22 = vpop.eup %1722  ;;  %v1262_v53 = vld [vmem:[%s1982_s4 + $0x8] sm:$0xff] }
 0x20c   : > { %v546_v25 = vmul.f32 %v1723_v22, %v1895_v49 }
 0x20d   : > { %v1725_v23 = vpop.eup %1724 }
 0x20e   : > { %v545_v24 = vmul.f32 %v1725_v23, %v1709_v51  ;;  %v1263_v51 = vld [vmem:[%s1982_s4 + $0x10] sm:$0xff] }
 0x20f   : > { %1667 = vmatprep.subr.mxu1 %v1263_v51 }
 0x210   : > { %1632 = vmatprep.mubr.msk.f32.mxu0 %vm523_vm5, %v545_v24  ;;  %1668 = vmatpush3.msra.mxu1 %v1263_v51 }
 0x211   : > { %1633 = vmatmul.mubr.msk.f32.vlgmr.msra.gmra.mxu0 %vm523_vm5, %v546_v25  ;;  %1669 = vmatprep.subr.mxu1 %v1262_v53 }
 0x212   : > { %1670 = vmatpush3.msra.mxu1 %v1262_v53 }
 0x213   : > { %1671 = vmatprep.subr.mxu1 %v1261_v55 }
 0x214   : > { %1672 = vmatpush3.msra.mxu1 %v1261_v55 }
 0x271   : > { %v741_v26 = vpop.xlane.xlu1 %740 }
 0x272   : > { %1726 = vrcp.f32 %v741_v26 }
 0x273   : > { %v738_v27 = vpop.xlane.xlu0 %737 }
 0x274   : > { %1728 = vrcp.f32 %v738_v27 }
 0x275   : > { %v949_v28 = vpop.xlane.xlu1 %948 }
 0x276   : > { %1730 = vrcp.f32 %v949_v28 }
 0x277   : > { %v946_v29 = vpop.xlane.xlu0 %945 }
 0x278   : > { %1732 = vrcp.f32 %v946_v29 }
 0x27c   : > { %v1157_v30 = vpop.xlane.xlu1 %1156 }
 0x27d   : > { %1734 = vrcp.f32 %v1157_v30 }
 0x27e   : > { %v1154_v31 = vpop.xlane.xlu0 %1153 }
 0x27f   : > { %1736 = vrcp.f32 %v1154_v31  ;;  %v1727_v32 = vpop.eup %1726 }
 0x280   : > { %v955_v33 = vpop.permute.xlu1 %954  ;;  %v745_v37 = vmul.f32 %v1727_v32, %v1711_v8  ;;  %v419_v8 = vld [vmem:[%s403_s18] sm:$0xff] }
 0x281   : > { %v1729_v34 = vpop.eup %1728 }
 0x282   : > { %v747_v35 = vpop.permute.xlu0 %746  ;;  %v744_v36 = vmul.f32 %v1729_v34, %v1713_v10 }
 0x283   : > { %1640 = vmatprep.subr.msk.mxu0 %vm553_vm6, %v747_v35  ;;  %v1731_v38 = vpop.eup %1730 }
 0x284   : > { %1641 = vmatpush3.msk.msra.mxu0 %vm553_vm6, %v747_v35  ;;  %1642 = vmatprep.mubr.msk.f32.mxu0 %vm523_vm5, %v744_v36  ;;  %v1163_v39 = vpop.permute.xlu1 %1162  ;;  %v953_v42 = vmul.f32 %v1731_v38, %v1715_v12 }
 0x285   : > { %v1733_v40 = vpop.eup %1732  ;;  %1643 = vmatmul.mubr.msk.f32.vlgmr.msra.gmra.mxu0 %vm523_vm5, %v745_v37  ;;  %1650 = vmatprep.subr.msk.mxu0 %vm553_vm6, %v955_v33 }
 0x286   : > { %1651 = vmatpush3.msk.msra.mxu0 %vm553_vm6, %v955_v33  ;;  %v952_v41 = vmul.f32 %v1733_v40, %v1717_v14  ;;  %v1588_v40 = vld [vmem:[%s1984_s6] ss:$0 sm:$0xff] }
 0x287   : > { %1660 = vmatprep.subr.msk.mxu0 %vm553_vm6, %v1163_v39 }
 0x288   : > { %1652 = vmatprep.mubr.msk.f32.mxu0 %vm523_vm5, %v952_v41 }
 0x289   : > { %1653 = vmatmul.mubr.msk.f32.vlgmr.msra.gmra.mxu0 %vm523_vm5, %v953_v42 }
 0x28a   : > { %1661 = vmatpush3.msk.msra.mxu0 %vm553_vm6, %v1163_v39  ;;  %v1735_v43 = vpop.eup %1734 }
 0x28b   : > { %v1161_v46 = vmul.f32 %v1735_v43, %v1719_v16  ;;  %v1589_v43 = vld [vmem:[%s1985_s7] ss:$0 sm:$0xff] }
 0x28c   : > { %v1737_v44 = vpop.eup %1736 }
 0x28d   : > { %v1160_v45 = vmul.f32 %v1737_v44, %v1721_v18 }
 0x28f   : > { %1662 = vmatprep.mubr.msk.f32.mxu0 %vm523_vm5, %v1160_v45 }
 0x290   : > { %1663 = vmatmul.mubr.msk.f32.vlgmr.msra.gmra.mxu0 %vm523_vm5, %v1161_v46 }
 0x2d1   : > { %v1634_v47 = vpop.f32.mrf.mxu0 }
 0x2d2   : > { %634 = vst.msk [vmem:[#allocation2 + $0x8] sm:$0xf] %vm633_vm7, %v1634_v47 }
 0x2d3   : > { %v623_v48 = vpop.f32.mrf.mxu0 }
 0x2d4   : > { %632 = vst.msk [vmem:[#allocation2] sm:$0xff] %vm436_vm0, %v623_v48 }
 0x345   : > { %v1644_v49 = vpop.f32.mrf.mxu0 }
 0x346   : > { %835 = vrot.lane.b32.xlu1 %v1644_v49, %s1773_s23 }
 0x347   : > { %v822_v52 = vpop.f32.mrf.mxu0 }
 0x348   : > { %833 = vrot.lane.b32.xlu0 %v822_v52, %s1773_s23 }
 0x349   : > { %v1654_v54 = vpop.f32.mrf.mxu0 }
 0x34a   : > { %1043 = vrot.lane.b32.xlu1 %v1654_v54, %s1774_s12 }
 0x34b   : > { %v1030_v56 = vpop.f32.mrf.mxu0 }
 0x34c   : > { %1041 = vrot.lane.b32.xlu0 %v1030_v56, %s1774_s12 }
 0x350   : > { %v1664_v57 = vpop.f32.mrf.mxu0 }
 0x351   : > { %1251 = vrot.lane.b32.xlu1 %v1664_v57, %s1775_s15 }
 0x352   : > { %v1238_v58 = vpop.f32.mrf.mxu0 }
 0x353   : > { %1249 = vrot.lane.b32.xlu0 %v1238_v58, %s1775_s15 }
 0x3b8   : > { %v836_v59 = vpop.permute.xlu1 %835 }
 0x3b9   : > { %842 = vst.msk [vmem:[#allocation2 + $0x8] sm:$0xf] %vm841_vm8, %v836_v59 }
 0x3ba   : > { %v834_v60 = vpop.permute.xlu0 %833 }
 0x3bb   : > { %840 = vst.msk [vmem:[#allocation2] sm:$0xff] %vm839_vm9, %v834_v60 }
 0x3bc   : > { %v1044_v61 = vpop.permute.xlu1 %1043 }
 0x3bd   : > { %1050 = vst.msk [vmem:[#allocation2 + $0x8] sm:$0xf] %vm1049_vm10, %v1044_v61 }
 0x3be   : > { %v1042_v62 = vpop.permute.xlu0 %1041 }
 0x3bf   : > { %1048 = vst.msk [vmem:[#allocation2] sm:$0xff] %vm1047_vm11, %v1042_v62 }
 0x3c3   : > { %v1252_v63 = vpop.permute.xlu1 %1251 }
 0x3c4   : > { %1258 = vst.msk [vmem:[#allocation2 + $0x8] sm:$0xf] %vm1257_vm12, %v1252_v63 }
 0x3c5   : > { %v1250_v0 = vpop.permute.xlu0 %1249 }
 0x3c6   : > { %1256 = vst.msk [vmem:[#allocation2] sm:$0xff] %vm1255_vm13, %v1250_v0 }
 0x3cb   : > { %v1260_v2 = vld [vmem:[#allocation2 + $0x8] sm:$0xf] }
 0x3cd   : > { %v1259_v1 = vld [vmem:[#allocation2] sm:$0xff] }
 0x3ce   : > { %1673 = vmatprep.mubr.msk.f32.mxu1 %vm1272_vm14, %v1259_v1 }
 0x3cf   : > { %1674 = vmatmul.mubr.msk.f32.vlgmr.msra.gmra.mxu1 %vm1272_vm14, %v1260_v2 }
 0x48f   : > { %v1675_v4 = vpop.f32.mrf.mxu1 }
 0x490   : > { %v1351_v6 = vadd.f32 %v1675_v4, %v1585_v3 }
 0x491   : > { %v1345_v7 = vpop.f32.mrf.mxu1 }
 0x492   : > { %v1346_v9 = vadd.f32 %v1585_v3, %v1345_v7  ;;  %v1355_v10 = vadd.f32 %v1351_v6, %v420_v5 }
 0x494   : > { %v1360_v11 = vsel %vm1359_vm15, %v1355_v10, 0.0  ;;  %v1354_v12 = vadd.f32 %v1346_v9, %v419_v8 }
 0x495   : > { %1361 = vadd.xlane.f32.xlu1 %v1360_v11 }
 0x496   : > { %v1356_v13 = vsel %vm1272_vm14, %v1354_v12, 0.0 }
 0x497   : > { %1357 = vadd.xlane.f32.xlu0 %v1356_v13 }
 0x51e   : > { %v1362_v14 = vpop.xlane.xlu1 %1361 }
 0x51f   : > { %v1365_v15 = vmul.f32 0.03125, %v1362_v14 }
 0x520   : > { %v1358_v16 = vpop.xlane.xlu0 %1357 }
 0x521   : > { %v1364_v17 = vmul.f32 0.03125, %v1358_v16  ;;  %v1367_v18 = vsub.f32 %v1355_v10, %v1365_v15 }
 0x523   : > { %v1366_v19 = vsub.f32 %v1354_v12, %v1364_v17  ;;  %v1369_v22 = vmul.f32 %v1367_v18, %v1367_v18  ;;  %v1402_v45 = vmul.f32 %v1588_v40, %v1367_v18 }
 0x525   : > { %v1368_v20 = vmul.f32 %v1366_v19, %v1366_v19  ;;  %v1373_v23 = vsel %vm1359_vm15, %v1369_v22, 0.0  ;;  %v1401_v41 = vmul.f32 %v1588_v40, %v1366_v19 }
 0x527   : > { %v1370_v21 = vsel %vm1272_vm14, %v1368_v20, 0.0 }
 0x528   : > { %1371 = vadd.xlane.f32.xlu0 %v1370_v21 }
 0x52c   : > { %1374 = vadd.xlane.f32.xlu0 %v1373_v23 }
 0x5b1   : > { %v1372_v24 = vpop.xlane.xlu0 %1371 }
 0x5b2   : > { %v1376_v25 = vmul.f32 0.032258064, %v1372_v24 }
 0x5b4   : > { %1738 = vrsqrt.f32 %v1376_v25  ;;  %vm1380_vm0 = vcmp.eq.f32.partialorder %v1376_v25, inf  ;;  %v1383_v30 = vand.u32 2147483648, %v1376_v25  ;;  %vm1382_vm1 = vcmp.eq.f32.partialorder %v1376_v25, 0.0 }
 0x5b5   : > { %v1375_v26 = vpop.xlane.xlu0 %1374 }
 0x5b6   : > { %v1377_v27 = vmul.f32 0.032258064, %v1375_v26 }
 0x5b8   : > { %1740 = vrsqrt.f32 %v1377_v27  ;;  %vm1387_vm2 = vcmp.eq.f32.partialorder %v1377_v27, inf  ;;  %v1390_v36 = vand.u32 2147483648, %v1377_v27  ;;  %vm1389_vm3 = vcmp.eq.f32.partialorder %v1377_v27, 0.0 }
 0x5c1   : > { %v1739_v28 = vpop.eup %1738 }
 0x5c2   : > { %v1379_v29 = vmul.f32 %v1739_v28, %v1376_v25 }
 0x5c4   : > { %v1381_v31 = vsel %vm1380_vm0, %v1376_v25, %v1379_v29 }
 0x5c5   : > { %v1741_v32 = vpop.eup %1740  ;;  %v1384_v33 = vsel %vm1382_vm1, %v1383_v30, %v1381_v31 }
 0x5c6   : > { %v1392_v34 = vadd.f32 1e-06, %v1384_v33  ;;  %v1386_v35 = vmul.f32 %v1741_v32, %v1377_v27 }
 0x5c8   : > { %1742 = vrcp.f32 %v1392_v34  ;;  %v1388_v37 = vsel %vm1387_vm2, %v1377_v27, %v1386_v35 }
 0x5c9   : > { %v1391_v38 = vsel %vm1389_vm3, %v1390_v36, %v1388_v37 }
 0x5ca   : > { %v1393_v39 = vadd.f32 1e-06, %v1391_v38 }
 0x5cc   : > { %1744 = vrcp.f32 %v1393_v39 }
 0x5d5   : > { %v1743_v42 = vpop.eup %1742 }
 0x5d6   : > { %v1404_v44 = vmul.f32 %v1743_v42, %v1401_v41 }
 0x5d8   : > { %v1414_v46 = vadd.f32 %v1589_v43, %v1404_v44 }
 0x5d9   : > { %v1745_v47 = vpop.eup %1744 }
 0x5da   : > { %1416 = vst.msk [vmem:[%s413_s27] sm:$0xff] %vm1272_vm14, %v1414_v46  ;;  %v1406_v48 = vmul.f32 %v1745_v47, %v1402_v45 }
 0x5dc   : > { %v1415_v49 = vadd.f32 %v1589_v43, %v1406_v48 }
 0x5de   : > { %1417 = vst.msk [vmem:[%s413_s27 + $0x8] sm:$0xf] %vm1359_vm15, %v1415_v49 }
 0x5df PF: > { %s18_s29 = sadd.s32 1, %s1768_s29   ;;  %s1987_s27 = smov %s1764_s28 }
 0x5e0   : > { %p15_p5 = scmp.ge.s32.totalorder %s18_s29, 4   ;;  %s1988_s28 = smov %s1990_s30 }
 0x5e2   :  { %17 = sbr.rel (!%p15_p5) target bundleno = 2 (0x2), region = 91 }

// kernel: transformer_decoder_forward.14
= control target key start
LH: loop header
LB: loop body
LE: loop exit
PB: predicated region body
PF: predicated region fallthrough
CT: control target
= control target key end

     0   :  { %v396_v0 = vmov 0.0   ;;  %vm397_vm0 = vmmov 0   ;;  %vm40_vm1 = vcmask 261120   ;;  %s513_s1 = inlined_call_operand.vmem [shape: f32[32,32], index: 1, kind: input, shape index: {}]   ;;  %s514_s3 = inlined_call_operand.vmem [shape: f32[32,32], index: 3, kind: input, shape index: {}]   ;;  %s515_s0 = inlined_call_operand.vmem [shape: f32[24,32], index: 0, kind: input, shape index: {}]   ;;  %s516_s2 = inlined_call_operand.vmem [shape: f32[1,32], index: 2, kind: input, shape index: {}]   ;;  %s517_s4 = inlined_call_operand.vmem [shape: f32[1,32], index: 4, kind: input, shape index: {}]   ;;  %s518_s5 = inlined_call_operand.vmem [shape: f32[1,32], index: 5, kind: input, shape index: {}]   ;;  %s519_s6 = inlined_call_operand.vmem [shape: f32[1,32], index: 6, kind: input, shape index: {}]   ;;  %s520_s7 = inlined_call_operand.vmem [shape: f32[24,32], index: 7, kind: output, shape index: {}]  }
   0x1   :  { %348 = vmatprep.subr.mxu0 %v396_v0  ;;  %v32_v1 = vld [vmem:[%s513_s1 + $0x18] sm:$0xff]  ;;  %v31_v2 = vld [vmem:[%s513_s1 + $0x10] sm:$0xff]  ;;  %356 = vmatprep.mubr.msk.f32.mxu0 %vm397_vm0, %v396_v0  ;;  %v30_v3 = vld [vmem:[%s513_s1 + $0x8] sm:$0xff] }
   0x2   :  { %349 = vmatpush3.msra.mxu0 %v32_v1  ;;  %365 = vmatprep.subr.mxu1 %v396_v0  ;;  %v136_v4 = vld [vmem:[%s514_s3 + $0x18] sm:$0xff]  ;;  %v29_v5 = vld [vmem:[%s513_s1] sm:$0xff]  ;;  %v27_v7 = vld [vmem:[%s515_s0 + $0x8] sm:$0xff] }
   0x3   :  { %350 = vmatprep.subr.mxu0 %v396_v0  ;;  %373 = vmatprep.mubr.msk.f32.mxu1 %vm397_vm0, %v396_v0  ;;  %v26_v6 = vld [vmem:[%s515_s0] sm:$0xff]  ;;  %v28_v8 = vld [vmem:[%s515_s0 + $0x10] sm:$0xff]  ;;  %v134_v10 = vld [vmem:[%s514_s3 + $0x8] sm:$0xff] }
   0x4   :  { %351 = vmatpush3.msra.mxu0 %v31_v2  ;;  %366 = vmatpush3.msra.mxu1 %v136_v4  ;;  %v135_v9 = vld [vmem:[%s514_s3 + $0x10] sm:$0xff]  ;;  %v133_v11 = vld [vmem:[%s514_s3] sm:$0xff] }
   0x5   :  { %352 = vmatprep.subr.mxu0 %v396_v0  ;;  %367 = vmatprep.subr.mxu1 %v396_v0  ;;  %v324_v12 = vld [vmem:[%s516_s2] ss:$0 sm:$0xff] }
   0x6   :  { %353 = vmatpush3.msra.mxu0 %v30_v3  ;;  %368 = vmatpush3.msra.mxu1 %v135_v9  ;;  %v328_v25 = vld [vmem:[%s517_s4] ss:$0 sm:$0xff] }
   0x7   :  { %354 = vmatprep.subr.mxu0 %v396_v0  ;;  %369 = vmatprep.subr.mxu1 %v396_v0 }
   0x8   :  { %355 = vmatpush3.msra.mxu0 %v29_v5  ;;  %370 = vmatpush3.msra.mxu1 %v134_v10 }
   0x9   :  { %357 = vmatmul.mubr.msk.f32.vlgmr.msra.gmra.mxu0 %vm40_vm1, %v26_v6  ;;  %371 = vmatprep.subr.mxu1 %v396_v0 }
   0xa   :  { %359 = vmatprep.mubr.msk.f32.mxu0 %vm397_vm0, %v396_v0  ;;  %372 = vmatpush3.msra.mxu1 %v133_v11 }
   0xd   :  { %360 = vmatmul.mubr.msk.f32.gmra.mxu0 %vm40_vm1, %v27_v7 }
   0xe   :  { %362 = vmatprep.mubr.msk.f32.mxu0 %vm397_vm0, %v396_v0 }
  0x11   :  { %363 = vmatmul.mubr.msk.f32.gmra.mxu0 %vm40_vm1, %v28_v8 }
  0xc9   :  { %v116_v13 = vpop.f32.mrf.mxu0 }
  0xca   :  { %v117_v14 = vadd.f32 %v324_v12, %v116_v13 }
  0xcb   :  { %v358_v15 = vpop.f32.mrf.mxu0 }
  0xcc   :  { %v130_v16 = vmax.f32 %v117_v14, 0.0 }
  0xcd   :  { %v121_v17 = vpop.f32.mrf.mxu0 }
  0xce   :  { %v122_v18 = vadd.f32 %v324_v12, %v121_v17  ;;  %374 = vmatmul.mubr.msk.f32.vlgmr.msra.gmra.mxu1 %vm40_vm1, %v130_v16  ;;  %v332_v16 = vld [vmem:[%s518_s5] ss:$0 sm:$0xff] }
  0xcf   :  { %v361_v19 = vpop.f32.mrf.mxu0  ;;  %376 = vmatprep.mubr.msk.f32.mxu1 %vm397_vm0, %v396_v0 }
  0xd0   :  { %v131_v20 = vmax.f32 %v122_v18, 0.0  ;;  %v333_v19 = vld [vmem:[%s519_s6] ss:$0 sm:$0xff] }
  0xd1   :  { %v126_v21 = vpop.f32.mrf.mxu0 }
  0xd2   :  { %v127_v22 = vadd.f32 %v324_v12, %v126_v21  ;;  %377 = vmatmul.mubr.msk.f32.gmra.mxu1 %vm40_vm1, %v131_v20 }
  0xd3   :  { %v364_v23 = vpop.f32.mrf.mxu0  ;;  %379 = vmatprep.mubr.msk.f32.mxu1 %vm397_vm0, %v396_v0 }
  0xd4   :  { %v132_v24 = vmax.f32 %v127_v22, 0.0 }
  0xd6   :  { %380 = vmatmul.mubr.msk.f32.gmra.mxu1 %vm40_vm1, %v132_v24 }
 0x18e   :  { %v219_v26 = vpop.f32.mrf.mxu1 }
 0x18f   :  { %v220_v27 = vadd.f32 %v328_v25, %v219_v26 }
 0x190   :  { %v375_v28 = vpop.f32.mrf.mxu1 }
 0x191   :  { %v233_v29 = vadd.f32 %v220_v27, %v26_v6 }
 0x192   :  { %v224_v30 = vpop.f32.mrf.mxu1 }
 0x193   :  { %v225_v31 = vadd.f32 %v328_v25, %v224_v30  ;;  %v236_v32 = vsel %vm40_vm1, %v233_v29, 0.0 }
 0x194   :  { %237 = vadd.xlane.f32.xlu0 %v236_v32  ;;  %v378_v33 = vpop.f32.mrf.mxu1 }
 0x195   :  { %v234_v34 = vadd.f32 %v225_v31, %v27_v7 }
 0x196   :  { %v229_v35 = vpop.f32.mrf.mxu1 }
 0x197   :  { %v230_v36 = vadd.f32 %v328_v25, %v229_v35  ;;  %v239_v37 = vsel %vm40_vm1, %v234_v34, 0.0 }
 0x198   :  { %240 = vadd.xlane.f32.xlu0 %v239_v37  ;;  %v381_v38 = vpop.f32.mrf.mxu1 }
 0x199   :  { %v235_v39 = vadd.f32 %v230_v36, %v28_v8 }
 0x19b   :  { %v242_v40 = vsel %vm40_vm1, %v235_v39, 0.0 }
 0x19c   :  { %243 = vadd.xlane.f32.xlu1 %v242_v40 }
 0x21d   :  { %v238_v41 = vpop.xlane.xlu0 %237 }
 0x21e   :  { %v246_v42 = vmul.f32 0.03125, %v238_v41 }
 0x220   :  { %v249_v43 = vsub.f32 %v233_v29, %v246_v42 }
 0x221   :  { %v241_v44 = vpop.xlane.xlu0 %240 }
 0x222   :  { %v247_v45 = vmul.f32 0.03125, %v241_v44  ;;  %v252_v46 = vmul.f32 %v249_v43, %v249_v43  ;;  %v298_v17 = vmul.f32 %v332_v16, %v249_v43 }
 0x224   :  { %v250_v47 = vsub.f32 %v234_v34, %v247_v45  ;;  %v255_v48 = vsel %vm40_vm1, %v252_v46, 0.0 }
 0x225   :  { %256 = vadd.xlane.f32.xlu1 %v255_v48  ;;  %v244_v49 = vpop.xlane.xlu1 %243 }
 0x226   :  { %v248_v50 = vmul.f32 0.03125, %v244_v49  ;;  %v253_v51 = vmul.f32 %v250_v47, %v250_v47  ;;  %v299_v21 = vmul.f32 %v332_v16, %v250_v47 }
 0x228   :  { %v251_v52 = vsub.f32 %v235_v39, %v248_v50  ;;  %v258_v53 = vsel %vm40_vm1, %v253_v51, 0.0 }
 0x229   :  { %259 = vadd.xlane.f32.xlu0 %v258_v53 }
 0x22a   :  { %v254_v54 = vmul.f32 %v251_v52, %v251_v52  ;;  %v300_v25 = vmul.f32 %v332_v16, %v251_v52 }
 0x22c   :  { %v261_v55 = vsel %vm40_vm1, %v254_v54, 0.0 }
 0x22d   :  { %262 = vadd.xlane.f32.xlu1 %v261_v55 }
 0x2ae   :  { %v257_v56 = vpop.xlane.xlu1 %256 }
 0x2af   :  { %v264_v57 = vmul.f32 0.032258064, %v257_v56 }
 0x2b1   :  { %384 = vrsqrt.f32 %v264_v57  ;;  %vm269_vm2 = vcmp.eq.f32.partialorder %v264_v57, inf  ;;  %v272_v0 = vand.u32 2147483648, %v264_v57  ;;  %vm271_vm3 = vcmp.eq.f32.partialorder %v264_v57, 0.0 }
 0x2b2   :  { %v260_v58 = vpop.xlane.xlu0 %259 }
 0x2b3   :  { %v265_v59 = vmul.f32 0.032258064, %v260_v58 }
 0x2b5   :  { %386 = vrsqrt.f32 %v265_v59  ;;  %vm276_vm4 = vcmp.eq.f32.partialorder %v265_v59, inf  ;;  %v279_v6 = vand.u32 2147483648, %v265_v59  ;;  %vm278_vm5 = vcmp.eq.f32.partialorder %v265_v59, 0.0 }
 0x2b6   :  { %v263_v60 = vpop.xlane.xlu1 %262 }
 0x2b7   :  { %v266_v61 = vmul.f32 0.032258064, %v263_v60 }
 0x2b9   :  { %388 = vrsqrt.f32 %v266_v61  ;;  %vm283_vm6 = vcmp.eq.f32.partialorder %v266_v61, inf  ;;  %v286_v12 = vand.u32 2147483648, %v266_v61  ;;  %vm285_vm7 = vcmp.eq.f32.partialorder %v266_v61, 0.0 }
 0x2be   :  { %v385_v62 = vpop.eup %384 }
 0x2bf   :  { %v268_v63 = vmul.f32 %v385_v62, %v264_v57 }
 0x2c1   :  { %v270_v1 = vsel %vm269_vm2, %v264_v57, %v268_v63 }
 0x2c2   :  { %v387_v2 = vpop.eup %386  ;;  %v273_v3 = vsel %vm271_vm3, %v272_v0, %v270_v1 }
 0x2c3   :  { %v288_v4 = vadd.f32 1e-06, %v273_v3  ;;  %v275_v5 = vmul.f32 %v387_v2, %v265_v59 }
 0x2c5   :  { %390 = vrcp.f32 %v288_v4  ;;  %v277_v7 = vsel %vm276_vm4, %v265_v59, %v275_v5 }
 0x2c6   :  { %v389_v8 = vpop.eup %388  ;;  %v280_v9 = vsel %vm278_vm5, %v279_v6, %v277_v7 }
 0x2c7   :  { %v289_v10 = vadd.f32 1e-06, %v280_v9  ;;  %v282_v11 = vmul.f32 %v389_v8, %v266_v61 }
 0x2c9   :  { %392 = vrcp.f32 %v289_v10  ;;  %v284_v13 = vsel %vm283_vm6, %v266_v61, %v282_v11 }
 0x2ca   :  { %v287_v14 = vsel %vm285_vm7, %v286_v12, %v284_v13 }
 0x2cb   :  { %v290_v15 = vadd.f32 1e-06, %v287_v14 }
 0x2cd   :  { %394 = vrcp.f32 %v290_v15 }
 0x2d2   :  { %v391_v18 = vpop.eup %390 }
 0x2d3   :  { %v302_v20 = vmul.f32 %v391_v18, %v298_v17 }
 0x2d5   :  { %v314_v22 = vadd.f32 %v333_v19, %v302_v20 }
 0x2d6   :  { %v393_v23 = vpop.eup %392 }
 0x2d7   :  { %317 = vst.msk [vmem:[%s520_s7] sm:$0xff] %vm40_vm1, %v314_v22  ;;  %v304_v24 = vmul.f32 %v393_v23, %v299_v21 }
 0x2d9   :  { %v315_v26 = vadd.f32 %v333_v19, %v304_v24 }
 0x2da   :  { %v395_v27 = vpop.eup %394 }
 0x2db   :  { %318 = vst.msk [vmem:[%s520_s7 + $0x8] sm:$0xff] %vm40_vm1, %v315_v26  ;;  %v306_v28 = vmul.f32 %v395_v27, %v300_v25 }
 0x2dd   :  { %v316_v29 = vadd.f32 %v333_v19, %v306_v28 }
 0x2df   :  { %319 = vst.msk [vmem:[%s520_s7 + $0x10] sm:$0xff] %vm40_vm1, %v316_v29 }

</bundles_post_ra>
